<compile_context>
chip_gen: v6e
topology: v6e:2x2x1
jax: 0.10.0
libtpu: 0.0.40
codegen_flags: <defaults>
</compile_context>

<pallas_src>
import functools

import jax
import jax.numpy as jnp
from jax import lax
from jax.experimental import pallas as pl
from jax.experimental.pallas import tpu as pltpu

LRELU_SLOPE = 0.2
BN_EPS = 1e-5
ROW_TILE = 512                       # row tile for the (large, no-BN) first conv
FUSED_VMEM_BUDGET = 24 * 1024 * 1024  # safety cap for the single-block fused path


def _round_up(x, m):
    return (x + m - 1) // m * m


# ----------------------------- Pallas kernels ------------------------------

def _conv_bias_kernel(p_ref, w_ref, b_ref, o_ref):
    """Conv (im2col matmul) + bias.  bf16 MXU inputs, f32 accumulation."""
    y = jnp.dot(p_ref[...], w_ref[...], preferred_element_type=jnp.float32)
    o_ref[...] = (y + b_ref[...]).astype(o_ref.dtype)


def _conv_bn_lrelu_kernel(p_ref, w_ref, g_ref, be_ref, o_ref, *, n_rows):
    """Fused Conv2d -> BatchNorm2d (training-mode batch stats) -> LeakyReLU(0.2).

    The whole layer is a single block, so batch statistics come straight from the
    f32 accumulator (two-pass variance).  Padded patch rows produce exactly-zero
    matmul rows (no bias), so the mean uses the plain sum; padded rows are masked
    out of the variance.
    """
    y = jnp.dot(p_ref[...], w_ref[...], preferred_element_type=jnp.float32)
    inv_r = 1.0 / float(n_rows)
    mean = jnp.sum(y, axis=0, keepdims=True) * inv_r
    diff = y - mean
    if y.shape[0] != n_rows:          # mask zero-padded rows for the variance
        rows = lax.broadcasted_iota(jnp.int32, y.shape, 0)
        diff = jnp.where(rows < n_rows, diff, 0.0)
    var = jnp.sum(diff * diff, axis=0, keepdims=True) * inv_r     # biased, as BN
    scale = g_ref[...] * lax.rsqrt(var + BN_EPS)
    shift = be_ref[...] - mean * scale
    z = y * scale + shift
    o_ref[...] = jnp.where(z >= 0.0, z, LRELU_SLOPE * z).astype(o_ref.dtype)


# ------------------------------ pallas_call wrappers ------------------------

def _run_conv_bias(patches, w_mat, bias, tr):
    r_pad, kd = patches.shape
    c_out = w_mat.shape[1]
    return pl.pallas_call(
        _conv_bias_kernel,
        out_shape=jax.ShapeDtypeStruct((r_pad, c_out), jnp.bfloat16),
        grid=(r_pad // tr,),
        in_specs=[pl.BlockSpec((tr, kd), lambda i: (i, 0)),
                  pl.BlockSpec((kd, c_out), lambda i: (0, 0)),   # weights resident
                  pl.BlockSpec((1, c_out), lambda i: (0, 0))],
        out_specs=pl.BlockSpec((tr, c_out), lambda i: (i, 0)),
        compiler_params=pltpu.CompilerParams(
            dimension_semantics=("parallel",)),
    )(patches, w_mat, bias)


def _run_conv_bn_lrelu(patches, w_mat, gamma, beta, n_rows):
    r_pad, kd = patches.shape
    c_out = w_mat.shape[1]
    kernel = functools.partial(_conv_bn_lrelu_kernel, n_rows=n_rows)
    return pl.pallas_call(
        kernel,
        out_shape=jax.ShapeDtypeStruct((r_pad, c_out), jnp.bfloat16),
        grid=(1,),
        in_specs=[pl.BlockSpec((r_pad, kd), lambda i: (0, 0)),
                  pl.BlockSpec((kd, c_out), lambda i: (0, 0)),
                  pl.BlockSpec((1, c_out), lambda i: (0, 0)),
                  pl.BlockSpec((1, c_out), lambda i: (0, 0))],
        out_specs=pl.BlockSpec((r_pad, c_out), lambda i: (0, 0)),
        compiler_params=pltpu.CompilerParams(
            dimension_semantics=("arbitrary",)),
    )(patches, w_mat, gamma, beta)


# ------------------------------ XLA-side glue -------------------------------

def _im2col_nhwc(x, k, stride, pad):
    """x: (N, H, W, C) -> (N*Ho*Wo, K*K*C); rows in (N,Ho,Wo) order, cols (KH,KW,C)."""
    n, h, w, c = x.shape
    xp = jnp.pad(x, ((0, 0), (pad, pad), (pad, pad), (0, 0)))
    ho = (h + 2 * pad - k) // stride + 1
    wo = (w + 2 * pad - k) // stride + 1
    cols = []
    for i in range(k):
        for j in range(k):
            cols.append(xp[:, i:i + stride * ho:stride, j:j + stride * wo:stride, :])
    patches = jnp.concatenate(cols, axis=-1)                 # (N, Ho, Wo, K*K*C)
    return patches.reshape(n * ho * wo, k * k * c), ho, wo


def _pack_weight(w, c_in_pad):
    """(C_out, C_in, K, K) -> (K*K*c_in_pad, C_out) bf16, rows ordered (KH, KW, C_in)."""
    c_out, c_in, k, _ = w.shape
    wp = jnp.pad(w, ((0, 0), (0, c_in_pad - c_in), (0, 0), (0, 0)))
    wp = jnp.transpose(wp, (2, 3, 1, 0)).reshape(k * k * c_in_pad, c_out)
    return wp.astype(jnp.bfloat16)


def _prep_patches(x_nhwc, k, stride, pad, row_align):
    """Pad C_in to mult of 8 (=> Kdim mult of 128), im2col, pad rows to row_align."""
    n, h, w, c_in = x_nhwc.shape
    c_in_p = _round_up(c_in, 8)
    x_p = jnp.pad(x_nhwc, ((0, 0), (0, 0), (0, 0), (0, c_in_p - c_in)))
    patches, ho, wo = _im2col_nhwc(x_p, k, stride, pad)
    r = n * ho * wo
    r_pad = _round_up(r, row_align)
    patches = jnp.pad(patches, ((0, r_pad - r), (0, 0))).astype(jnp.bfloat16)
    return patches, c_in_p, r, ho, wo


def conv_layer(x_nhwc, w, b, *, stride, pad):
    """Conv2d + bias (no BN / activation), row-tiled.  NHWC bf16 -> NHWC bf16."""
    n, h, w_sp, _ = x_nhwc.shape
    c_out, _, k, _ = w.shape
    ho = (h + 2 * pad - k) // stride + 1
    wo = (w_sp + 2 * pad - k) // stride + 1
    r = n * ho * wo
    tr = min(ROW_TILE, _round_up(r, 8))
    patches, c_in_p, r, ho, wo = _prep_patches(x_nhwc, k, stride, pad, row_align=tr)
    w_mat = _pack_weight(w, c_in_p)
    b2 = b.astype(jnp.float32).reshape(1, c_out)
    y = _run_conv_bias(patches, w_mat, b2, tr)
    return y[:r].reshape(n, ho, wo, c_out)


def conv_bn_lrelu_layer(x_nhwc, w, gamma, beta, *, stride, pad):
    """Conv2d -> BatchNorm2d (batch stats) -> LeakyReLU(0.2), one fused pallas_call.

    The conv bias is intentionally not added: BN's mean subtraction cancels it exactly.
    """
    n = x_nhwc.shape[0]
    c_out, _, k, _ = w.shape
    patches, c_in_p, r, ho, wo = _prep_patches(x_nhwc, k, stride, pad, row_align=8)
    # Single-block fused path: make sure everything fits VMEM comfortably (v7x: 64 MiB).
    fused_bytes = patches.size * 2 + patches.shape[0] * c_out * (4 + 2)
    if fused_bytes > FUSED_VMEM_BUDGET:
        raise NotImplementedError(
            "layer too large for the fused single-block Conv+BN path")
    w_mat = _pack_weight(w, c_in_p)
    g2 = gamma.astype(jnp.float32).reshape(1, c_out)
    b2 = beta.astype(jnp.float32).reshape(1, c_out)
    out = _run_conv_bn_lrelu(patches, w_mat, g2, b2, r)
    return out[:r].reshape(n, ho, wo, c_out)


def final_conv_sigmoid(h_nhwc, w, b):
    """Conv2d(8f, 1, 4, 2, 0) + Sigmoid tail (1 output lane) kept in plain XLA."""
    n = h_nhwc.shape[0]
    patches, ho, wo = _im2col_nhwc(h_nhwc.astype(jnp.float32), 4, 2, 0)
    w_flat = jnp.transpose(w, (2, 3, 1, 0)).reshape(-1, 1).astype(jnp.float32)
    logits = patches @ w_flat + b.astype(jnp.float32).reshape(1, 1)
    return jax.nn.sigmoid(logits).reshape(n, ho, wo, 1)


# ------------------------------ model ---------------------------------------

def init_params(key, channels_img, features_d):
    """Synthetic init matching Conv2d / BatchNorm2d shapes of the PyTorch module."""
    f = features_d
    dims = [(f, channels_img), (2 * f, f), (4 * f, 2 * f), (8 * f, 4 * f), (1, 8 * f)]
    params = []
    for i, (co, ci) in enumerate(dims):
        key, k1, k2 = jax.random.split(key, 3)
        bound = 1.0 / float(ci * 4 * 4) ** 0.5
        w = jax.random.uniform(k1, (co, ci, 4, 4), jnp.float32, -bound, bound)
        b = jax.random.uniform(k2, (co,), jnp.float32, -bound, bound)
        bn = None
        if 1 <= i <= 3:  # the three `layer(...)` blocks have BatchNorm (gamma=1, beta=0)
            bn = (jnp.ones((co,), jnp.float32), jnp.zeros((co,), jnp.float32))
        params.append((w, b, bn))
    return params


def discriminator_forward(x_nchw, params):
    # Single NCHW -> NHWC transpose at entry; activations stay NHWC/bf16 between layers.
    h = jnp.transpose(x_nchw, (0, 2, 3, 1)).astype(jnp.bfloat16)

    # Block 0: plain Conv2d(channels_img, f, 4, 2, 1)  (no BN / activation in the spec)
    w0, b0, _ = params[0]
    h = conv_layer(h, w0, b0, stride=2, pad=1)

    # Blocks 1-3: fused Conv2d -> BatchNorm2d (training batch stats) -> LeakyReLU(0.2)
    for i in range(1, 4):
        w, _b, bn = params[i]          # conv bias unused: cancelled exactly by BN
        g, be = bn
        h = conv_bn_lrelu_layer(h, w, g, be, stride=2, pad=1)

    # Final Conv2d(8f, 1, 4, 2, 0) + Sigmoid
    w4, b4, _ = params[4]
    out = final_conv_sigmoid(h, w4, b4)
    return jnp.transpose(out, (0, 3, 1, 2))            # NCHW, (N, 1, 1, 1) for 64x64


if __name__ == "__main__":
    key = jax.random.PRNGKey(0)
    k_x, k_p = jax.random.split(key)

    # 64x64 input is required by the architecture (64 -> 32 -> 16 -> 8 -> 4 -> 1).
    N, channels_img, features_d, H = 2, 3, 4, 64
    x = jax.random.normal(k_x, (N, channels_img, H, H), jnp.float32)
    params = init_params(k_p, channels_img, features_d)

    fwd = jax.jit(discriminator_forward)
    out = jax.block_until_ready(fwd(x, params))

    assert out.shape == (N, 1, 1, 1), out.shape
    assert bool(jnp.all((out >= 0.0) & (out <= 1.0)))
    print("KERNEL_OK")
</pallas_src>

<mosaic_0001>
module attributes {stable_mosaic.version = 11 : i64} {
  func.func @_conv_bias_kernel(%arg0: i32, %arg1: memref<512x128xbf16, #tpu.memory_space<vmem>>, %arg2: memref<128x4xbf16, #tpu.memory_space<vmem>>, %arg3: memref<1x4xf32, #tpu.memory_space<vmem>>, %arg4: memref<512x4xbf16, #tpu.memory_space<vmem>>) attributes {dimension_semantics = [#tpu.dimension_semantics<parallel>], iteration_bounds = array<i64: 4>, scalar_prefetch = 0 : i64, scratch_operands = 0 : i64, tpu.core_type = #tpu.core_type<tc>, window_params = [{transform_indices = @transform_0, window_bounds = array<i64: 512, 128>}, {pipeline_mode = #tpu.pipeline_mode<synchronous>, transform_indices = @transform_1, window_bounds = array<i64: 128, 4>}, {pipeline_mode = #tpu.pipeline_mode<synchronous>, transform_indices = @transform_2, window_bounds = array<i64: 1, 4>}, {transform_indices = @transform_3, window_bounds = array<i64: 512, 4>}]} {
    %c0 = arith.constant 0 : index
    %c0_0 = arith.constant 0 : index
    %0 = vector.load %arg1[%c0, %c0_0] : memref<512x128xbf16, #tpu.memory_space<vmem>>, vector<512x128xbf16>
    %c0_1 = arith.constant 0 : index
    %c0_2 = arith.constant 0 : index
    %1 = vector.load %arg2[%c0_1, %c0_2] : memref<128x4xbf16, #tpu.memory_space<vmem>>, vector<128x4xbf16>
    %cst = arith.constant dense<0.000000e+00> : vector<512x4xf32>
    %2 = tpu.matmul %0, %1, %cst {dimension_numbers = #tpu.dot_dimension_numbers<[1], [0], [0], [1], [0, 0, 1, 1], [], []>} : vector<512x128xbf16>, vector<128x4xbf16>, vector<512x4xf32> -> vector<512x4xf32>
    %c0_3 = arith.constant 0 : index
    %c0_4 = arith.constant 0 : index
    %3 = vector.load %arg3[%c0_3, %c0_4] : memref<1x4xf32, #tpu.memory_space<vmem>>, vector<1x4xf32>
    %4 = vector.broadcast %3 : vector<1x4xf32> to vector<512x4xf32>
    %5 = arith.addf %2, %4 : vector<512x4xf32>
    %6 = arith.truncf %5 : vector<512x4xf32> to vector<512x4xbf16>
    %c0_5 = arith.constant 0 : index
    %c0_6 = arith.constant 0 : index
    %7 = vector.load %arg4[%c0_5, %c0_6] : memref<512x4xbf16, #tpu.memory_space<vmem>>, vector<512x4xbf16>
    tpu.vector_store %arg4[%c0_5, %c0_6], %6 {strides = array<i32>} : memref<512x4xbf16, #tpu.memory_space<vmem>>, vector<512x4xbf16>,
    return
  }
  func.func @transform_0(%arg0: i32) -> (i32, i32) {
    %c0_i32 = arith.constant 0 : i32
    %c0_i32_0 = arith.constant 0 : i32
    return %arg0, %c0_i32 : i32, i32
  }
  func.func @transform_1(%arg0: i32) -> (i32, i32) {
    %c0_i32 = arith.constant 0 : i32
    %c0_i32_0 = arith.constant 0 : i32
    %c0_i32_1 = arith.constant 0 : i32
    return %c0_i32, %c0_i32_0 : i32, i32
  }
  func.func @transform_2(%arg0: i32) -> (i32, i32) {
    %c0_i32 = arith.constant 0 : i32
    %c0_i32_0 = arith.constant 0 : i32
    %c0_i32_1 = arith.constant 0 : i32
    return %c0_i32, %c0_i32_0 : i32, i32
  }
  func.func @transform_3(%arg0: i32) -> (i32, i32) {
    %c0_i32 = arith.constant 0 : i32
    %c0_i32_0 = arith.constant 0 : i32
    return %arg0, %c0_i32 : i32, i32
  }
}

module attributes {stable_mosaic.version = 11 : i64} {
  func.func @_conv_bn_lrelu_kernel(%arg0: i32, %arg1: memref<512x128xbf16, #tpu.memory_space<vmem>>, %arg2: memref<128x8xbf16, #tpu.memory_space<vmem>>, %arg3: memref<1x8xf32, #tpu.memory_space<vmem>>, %arg4: memref<1x8xf32, #tpu.memory_space<vmem>>, %arg5: memref<512x8xbf16, #tpu.memory_space<vmem>>) attributes {dimension_semantics = [#tpu.dimension_semantics<arbitrary>], iteration_bounds = array<i64: 1>, scalar_prefetch = 0 : i64, scratch_operands = 0 : i64, tpu.core_type = #tpu.core_type<tc>, window_params = [{pipeline_mode = #tpu.pipeline_mode<synchronous>, transform_indices = @transform_0, window_bounds = array<i64: 512, 128>}, {pipeline_mode = #tpu.pipeline_mode<synchronous>, transform_indices = @transform_1, window_bounds = array<i64: 128, 8>}, {pipeline_mode = #tpu.pipeline_mode<synchronous>, transform_indices = @transform_2, window_bounds = array<i64: 1, 8>}, {pipeline_mode = #tpu.pipeline_mode<synchronous>, transform_indices = @transform_3, window_bounds = array<i64: 1, 8>}, {pipeline_mode = #tpu.pipeline_mode<synchronous>, transform_indices = @transform_4, window_bounds = array<i64: 512, 8>}]} {
    %c0 = arith.constant 0 : index
    %c0_0 = arith.constant 0 : index
    %0 = vector.load %arg1[%c0, %c0_0] : memref<512x128xbf16, #tpu.memory_space<vmem>>, vector<512x128xbf16>
    %c0_1 = arith.constant 0 : index
    %c0_2 = arith.constant 0 : index
    %1 = vector.load %arg2[%c0_1, %c0_2] : memref<128x8xbf16, #tpu.memory_space<vmem>>, vector<128x8xbf16>
    %cst = arith.constant dense<0.000000e+00> : vector<512x8xf32>
    %2 = tpu.matmul %0, %1, %cst {dimension_numbers = #tpu.dot_dimension_numbers<[1], [0], [0], [1], [0, 0, 1, 1], [], []>} : vector<512x128xbf16>, vector<128x8xbf16>, vector<512x8xf32> -> vector<512x8xf32>
    %cst_3 = arith.constant dense<0.000000e+00> : vector<8xf32>
    %3 = vector.multi_reduction <add>, %2, %cst_3 [0] : vector<512x8xf32> to vector<8xf32>
    %4 = vector.shape_cast %3 : vector<8xf32> to vector<1x8xf32>
    %cst_4 = arith.constant 0.001953125 : f32
    %5 = vector.broadcast %cst_4 : f32 to vector<1x8xf32>
    %6 = arith.mulf %4, %5 : vector<1x8xf32>
    %7 = vector.broadcast %6 : vector<1x8xf32> to vector<512x8xf32>
    %8 = arith.subf %2, %7 : vector<512x8xf32>
    %9 = arith.mulf %8, %8 : vector<512x8xf32>
    %cst_5 = arith.constant dense<0.000000e+00> : vector<8xf32>
    %10 = vector.multi_reduction <add>, %9, %cst_5 [0] : vector<512x8xf32> to vector<8xf32>
    %11 = vector.shape_cast %10 : vector<8xf32> to vector<1x8xf32>
    %cst_6 = arith.constant 0.001953125 : f32
    %12 = vector.broadcast %cst_6 : f32 to vector<1x8xf32>
    %13 = arith.mulf %11, %12 : vector<1x8xf32>
    %c0_7 = arith.constant 0 : index
    %c0_8 = arith.constant 0 : index
    %14 = vector.load %arg3[%c0_7, %c0_8] : memref<1x8xf32, #tpu.memory_space<vmem>>, vector<1x8xf32>
    %cst_9 = arith.constant 9.99999974E-6 : f32
    %15 = vector.broadcast %cst_9 : f32 to vector<1x8xf32>
    %16 = arith.addf %13, %15 : vector<1x8xf32>
    %17 = math.rsqrt %16 : vector<1x8xf32>
    %18 = arith.mulf %14, %17 : vector<1x8xf32>
    %c0_10 = arith.constant 0 : index
    %c0_11 = arith.constant 0 : index
    %19 = vector.load %arg4[%c0_10, %c0_11] : memref<1x8xf32, #tpu.memory_space<vmem>>, vector<1x8xf32>
    %20 = arith.mulf %6, %18 : vector<1x8xf32>
    %21 = arith.subf %19, %20 : vector<1x8xf32>
    %22 = vector.broadcast %18 : vector<1x8xf32> to vector<512x8xf32>
    %23 = arith.mulf %2, %22 : vector<512x8xf32>
    %24 = vector.broadcast %21 : vector<1x8xf32> to vector<512x8xf32>
    %25 = arith.addf %23, %24 : vector<512x8xf32>
    %cst_12 = arith.constant 0.000000e+00 : f32
    %26 = vector.broadcast %cst_12 : f32 to vector<512x8xf32>
    %27 = arith.cmpf oge, %25, %26 : vector<512x8xf32>
    %cst_13 = arith.constant 2.000000e-01 : f32
    %28 = vector.broadcast %cst_13 : f32 to vector<512x8xf32>
    %29 = arith.mulf %28, %25 : vector<512x8xf32>
    %30 = arith.select %27, %25, %29 : vector<512x8xi1>, vector<512x8xf32>
    %31 = arith.truncf %30 : vector<512x8xf32> to vector<512x8xbf16>
    %c0_14 = arith.constant 0 : index
    %c0_15 = arith.constant 0 : index
    %32 = vector.load %arg5[%c0_14, %c0_15] : memref<512x8xbf16, #tpu.memory_space<vmem>>, vector<512x8xbf16>
    tpu.vector_store %arg5[%c0_14, %c0_15], %31 {strides = array<i32>} : memref<512x8xbf16, #tpu.memory_space<vmem>>, vector<512x8xbf16>,
    return
  }
  func.func @transform_0(%arg0: i32) -> (i32, i32) {
    %c0_i32 = arith.constant 0 : i32
    %c0_i32_0 = arith.constant 0 : i32
    %c0_i32_1 = arith.constant 0 : i32
    return %c0_i32, %c0_i32_0 : i32, i32
  }
  func.func @transform_1(%arg0: i32) -> (i32, i32) {
    %c0_i32 = arith.constant 0 : i32
    %c0_i32_0 = arith.constant 0 : i32
    %c0_i32_1 = arith.constant 0 : i32
    return %c0_i32, %c0_i32_0 : i32, i32
  }
  func.func @transform_2(%arg0: i32) -> (i32, i32) {
    %c0_i32 = arith.constant 0 : i32
    %c0_i32_0 = arith.constant 0 : i32
    %c0_i32_1 = arith.constant 0 : i32
    return %c0_i32, %c0_i32_0 : i32, i32
  }
  func.func @transform_3(%arg0: i32) -> (i32, i32) {
    %c0_i32 = arith.constant 0 : i32
    %c0_i32_0 = arith.constant 0 : i32
    %c0_i32_1 = arith.constant 0 : i32
    return %c0_i32, %c0_i32_0 : i32, i32
  }
  func.func @transform_4(%arg0: i32) -> (i32, i32) {
    %c0_i32 = arith.constant 0 : i32
    %c0_i32_0 = arith.constant 0 : i32
    %c0_i32_1 = arith.constant 0 : i32
    return %c0_i32, %c0_i32_0 : i32, i32
  }
}

module attributes {stable_mosaic.version = 11 : i64} {
  func.func @_conv_bn_lrelu_kernel(%arg0: i32, %arg1: memref<128x128xbf16, #tpu.memory_space<vmem>>, %arg2: memref<128x16xbf16, #tpu.memory_space<vmem>>, %arg3: memref<1x16xf32, #tpu.memory_space<vmem>>, %arg4: memref<1x16xf32, #tpu.memory_space<vmem>>, %arg5: memref<128x16xbf16, #tpu.memory_space<vmem>>) attributes {dimension_semantics = [#tpu.dimension_semantics<arbitrary>], iteration_bounds = array<i64: 1>, scalar_prefetch = 0 : i64, scratch_operands = 0 : i64, tpu.core_type = #tpu.core_type<tc>, window_params = [{pipeline_mode = #tpu.pipeline_mode<synchronous>, transform_indices = @transform_0, window_bounds = array<i64: 128, 128>}, {pipeline_mode = #tpu.pipeline_mode<synchronous>, transform_indices = @transform_1, window_bounds = array<i64: 128, 16>}, {pipeline_mode = #tpu.pipeline_mode<synchronous>, transform_indices = @transform_2, window_bounds = array<i64: 1, 16>}, {pipeline_mode = #tpu.pipeline_mode<synchronous>, transform_indices = @transform_3, window_bounds = array<i64: 1, 16>}, {pipeline_mode = #tpu.pipeline_mode<synchronous>, transform_indices = @transform_4, window_bounds = array<i64: 128, 16>}]} {
    %c0 = arith.constant 0 : index
    %c0_0 = arith.constant 0 : index
    %0 = vector.load %arg1[%c0, %c0_0] : memref<128x128xbf16, #tpu.memory_space<vmem>>, vector<128x128xbf16>
    %c0_1 = arith.constant 0 : index
    %c0_2 = arith.constant 0 : index
    %1 = vector.load %arg2[%c0_1, %c0_2] : memref<128x16xbf16, #tpu.memory_space<vmem>>, vector<128x16xbf16>
    %cst = arith.constant dense<0.000000e+00> : vector<128x16xf32>
    %2 = tpu.matmul %0, %1, %cst {dimension_numbers = #tpu.dot_dimension_numbers<[1], [0], [0], [1], [0, 0, 1, 1], [], []>} : vector<128x128xbf16>, vector<128x16xbf16>, vector<128x16xf32> -> vector<128x16xf32>
    %cst_3 = arith.constant dense<0.000000e+00> : vector<16xf32>
    %3 = vector.multi_reduction <add>, %2, %cst_3 [0] : vector<128x16xf32> to vector<16xf32>
    %4 = vector.shape_cast %3 : vector<16xf32> to vector<1x16xf32>
    %cst_4 = arith.constant 7.812500e-03 : f32
    %5 = vector.broadcast %cst_4 : f32 to vector<1x16xf32>
    %6 = arith.mulf %4, %5 : vector<1x16xf32>
    %7 = vector.broadcast %6 : vector<1x16xf32> to vector<128x16xf32>
    %8 = arith.subf %2, %7 : vector<128x16xf32>
    %9 = arith.mulf %8, %8 : vector<128x16xf32>
    %cst_5 = arith.constant dense<0.000000e+00> : vector<16xf32>
    %10 = vector.multi_reduction <add>, %9, %cst_5 [0] : vector<128x16xf32> to vector<16xf32>
    %11 = vector.shape_cast %10 : vector<16xf32> to vector<1x16xf32>
    %cst_6 = arith.constant 7.812500e-03 : f32
    %12 = vector.broadcast %cst_6 : f32 to vector<1x16xf32>
    %13 = arith.mulf %11, %12 : vector<1x16xf32>
    %c0_7 = arith.constant 0 : index
    %c0_8 = arith.constant 0 : index
    %14 = vector.load %arg3[%c0_7, %c0_8] : memref<1x16xf32, #tpu.memory_space<vmem>>, vector<1x16xf32>
    %cst_9 = arith.constant 9.99999974E-6 : f32
    %15 = vector.broadcast %cst_9 : f32 to vector<1x16xf32>
    %16 = arith.addf %13, %15 : vector<1x16xf32>
    %17 = math.rsqrt %16 : vector<1x16xf32>
    %18 = arith.mulf %14, %17 : vector<1x16xf32>
    %c0_10 = arith.constant 0 : index
    %c0_11 = arith.constant 0 : index
    %19 = vector.load %arg4[%c0_10, %c0_11] : memref<1x16xf32, #tpu.memory_space<vmem>>, vector<1x16xf32>
    %20 = arith.mulf %6, %18 : vector<1x16xf32>
    %21 = arith.subf %19, %20 : vector<1x16xf32>
    %22 = vector.broadcast %18 : vector<1x16xf32> to vector<128x16xf32>
    %23 = arith.mulf %2, %22 : vector<128x16xf32>
    %24 = vector.broadcast %21 : vector<1x16xf32> to vector<128x16xf32>
    %25 = arith.addf %23, %24 : vector<128x16xf32>
    %cst_12 = arith.constant 0.000000e+00 : f32
    %26 = vector.broadcast %cst_12 : f32 to vector<128x16xf32>
    %27 = arith.cmpf oge, %25, %26 : vector<128x16xf32>
    %cst_13 = arith.constant 2.000000e-01 : f32
    %28 = vector.broadcast %cst_13 : f32 to vector<128x16xf32>
    %29 = arith.mulf %28, %25 : vector<128x16xf32>
    %30 = arith.select %27, %25, %29 : vector<128x16xi1>, vector<128x16xf32>
    %31 = arith.truncf %30 : vector<128x16xf32> to vector<128x16xbf16>
    %c0_14 = arith.constant 0 : index
    %c0_15 = arith.constant 0 : index
    %32 = vector.load %arg5[%c0_14, %c0_15] : memref<128x16xbf16, #tpu.memory_space<vmem>>, vector<128x16xbf16>
    tpu.vector_store %arg5[%c0_14, %c0_15], %31 {strides = array<i32>} : memref<128x16xbf16, #tpu.memory_space<vmem>>, vector<128x16xbf16>,
    return
  }
  func.func @transform_0(%arg0: i32) -> (i32, i32) {
    %c0_i32 = arith.constant 0 : i32
    %c0_i32_0 = arith.constant 0 : i32
    %c0_i32_1 = arith.constant 0 : i32
    return %c0_i32, %c0_i32_0 : i32, i32
  }
  func.func @transform_1(%arg0: i32) -> (i32, i32) {
    %c0_i32 = arith.constant 0 : i32
    %c0_i32_0 = arith.constant 0 : i32
    %c0_i32_1 = arith.constant 0 : i32
    return %c0_i32, %c0_i32_0 : i32, i32
  }
  func.func @transform_2(%arg0: i32) -> (i32, i32) {
    %c0_i32 = arith.constant 0 : i32
    %c0_i32_0 = arith.constant 0 : i32
    %c0_i32_1 = arith.constant 0 : i32
    return %c0_i32, %c0_i32_0 : i32, i32
  }
  func.func @transform_3(%arg0: i32) -> (i32, i32) {
    %c0_i32 = arith.constant 0 : i32
    %c0_i32_0 = arith.constant 0 : i32
    %c0_i32_1 = arith.constant 0 : i32
    return %c0_i32, %c0_i32_0 : i32, i32
  }
  func.func @transform_4(%arg0: i32) -> (i32, i32) {
    %c0_i32 = arith.constant 0 : i32
    %c0_i32_0 = arith.constant 0 : i32
    %c0_i32_1 = arith.constant 0 : i32
    return %c0_i32, %c0_i32_0 : i32, i32
  }
}

module attributes {stable_mosaic.version = 11 : i64} {
  func.func @_conv_bn_lrelu_kernel(%arg0: i32, %arg1: memref<32x256xbf16, #tpu.memory_space<vmem>>, %arg2: memref<256x32xbf16, #tpu.memory_space<vmem>>, %arg3: memref<1x32xf32, #tpu.memory_space<vmem>>, %arg4: memref<1x32xf32, #tpu.memory_space<vmem>>, %arg5: memref<32x32xbf16, #tpu.memory_space<vmem>>) attributes {dimension_semantics = [#tpu.dimension_semantics<arbitrary>], iteration_bounds = array<i64: 1>, scalar_prefetch = 0 : i64, scratch_operands = 0 : i64, tpu.core_type = #tpu.core_type<tc>, window_params = [{pipeline_mode = #tpu.pipeline_mode<synchronous>, transform_indices = @transform_0, window_bounds = array<i64: 32, 256>}, {pipeline_mode = #tpu.pipeline_mode<synchronous>, transform_indices = @transform_1, window_bounds = array<i64: 256, 32>}, {pipeline_mode = #tpu.pipeline_mode<synchronous>, transform_indices = @transform_2, window_bounds = array<i64: 1, 32>}, {pipeline_mode = #tpu.pipeline_mode<synchronous>, transform_indices = @transform_3, window_bounds = array<i64: 1, 32>}, {pipeline_mode = #tpu.pipeline_mode<synchronous>, transform_indices = @transform_4, window_bounds = array<i64: 32, 32>}]} {
    %c0 = arith.constant 0 : index
    %c0_0 = arith.constant 0 : index
    %0 = vector.load %arg1[%c0, %c0_0] : memref<32x256xbf16, #tpu.memory_space<vmem>>, vector<32x256xbf16>
    %c0_1 = arith.constant 0 : index
    %c0_2 = arith.constant 0 : index
    %1 = vector.load %arg2[%c0_1, %c0_2] : memref<256x32xbf16, #tpu.memory_space<vmem>>, vector<256x32xbf16>
    %cst = arith.constant dense<0.000000e+00> : vector<32x32xf32>
    %2 = tpu.matmul %0, %1, %cst {dimension_numbers = #tpu.dot_dimension_numbers<[1], [0], [0], [1], [0, 0, 1, 1], [], []>} : vector<32x256xbf16>, vector<256x32xbf16>, vector<32x32xf32> -> vector<32x32xf32>
    %cst_3 = arith.constant dense<0.000000e+00> : vector<32xf32>
    %3 = vector.multi_reduction <add>, %2, %cst_3 [0] : vector<32x32xf32> to vector<32xf32>
    %4 = vector.shape_cast %3 : vector<32xf32> to vector<1x32xf32>
    %cst_4 = arith.constant 3.125000e-02 : f32
    %5 = vector.broadcast %cst_4 : f32 to vector<1x32xf32>
    %6 = arith.mulf %4, %5 : vector<1x32xf32>
    %7 = vector.broadcast %6 : vector<1x32xf32> to vector<32x32xf32>
    %8 = arith.subf %2, %7 : vector<32x32xf32>
    %9 = arith.mulf %8, %8 : vector<32x32xf32>
    %cst_5 = arith.constant dense<0.000000e+00> : vector<32xf32>
    %10 = vector.multi_reduction <add>, %9, %cst_5 [0] : vector<32x32xf32> to vector<32xf32>
    %11 = vector.shape_cast %10 : vector<32xf32> to vector<1x32xf32>
    %cst_6 = arith.constant 3.125000e-02 : f32
    %12 = vector.broadcast %cst_6 : f32 to vector<1x32xf32>
    %13 = arith.mulf %11, %12 : vector<1x32xf32>
    %c0_7 = arith.constant 0 : index
    %c0_8 = arith.constant 0 : index
    %14 = vector.load %arg3[%c0_7, %c0_8] : memref<1x32xf32, #tpu.memory_space<vmem>>, vector<1x32xf32>
    %cst_9 = arith.constant 9.99999974E-6 : f32
    %15 = vector.broadcast %cst_9 : f32 to vector<1x32xf32>
    %16 = arith.addf %13, %15 : vector<1x32xf32>
    %17 = math.rsqrt %16 : vector<1x32xf32>
    %18 = arith.mulf %14, %17 : vector<1x32xf32>
    %c0_10 = arith.constant 0 : index
    %c0_11 = arith.constant 0 : index
    %19 = vector.load %arg4[%c0_10, %c0_11] : memref<1x32xf32, #tpu.memory_space<vmem>>, vector<1x32xf32>
    %20 = arith.mulf %6, %18 : vector<1x32xf32>
    %21 = arith.subf %19, %20 : vector<1x32xf32>
    %22 = vector.broadcast %18 : vector<1x32xf32> to vector<32x32xf32>
    %23 = arith.mulf %2, %22 : vector<32x32xf32>
    %24 = vector.broadcast %21 : vector<1x32xf32> to vector<32x32xf32>
    %25 = arith.addf %23, %24 : vector<32x32xf32>
    %cst_12 = arith.constant 0.000000e+00 : f32
    %26 = vector.broadcast %cst_12 : f32 to vector<32x32xf32>
    %27 = arith.cmpf oge, %25, %26 : vector<32x32xf32>
    %cst_13 = arith.constant 2.000000e-01 : f32
    %28 = vector.broadcast %cst_13 : f32 to vector<32x32xf32>
    %29 = arith.mulf %28, %25 : vector<32x32xf32>
    %30 = arith.select %27, %25, %29 : vector<32x32xi1>, vector<32x32xf32>
    %31 = arith.truncf %30 : vector<32x32xf32> to vector<32x32xbf16>
    %c0_14 = arith.constant 0 : index
    %c0_15 = arith.constant 0 : index
    %32 = vector.load %arg5[%c0_14, %c0_15] : memref<32x32xbf16, #tpu.memory_space<vmem>>, vector<32x32xbf16>
    tpu.vector_store %arg5[%c0_14, %c0_15], %31 {strides = array<i32>} : memref<32x32xbf16, #tpu.memory_space<vmem>>, vector<32x32xbf16>,
    return
  }
  func.func @transform_0(%arg0: i32) -> (i32, i32) {
    %c0_i32 = arith.constant 0 : i32
    %c0_i32_0 = arith.constant 0 : i32
    %c0_i32_1 = arith.constant 0 : i32
    return %c0_i32, %c0_i32_0 : i32, i32
  }
  func.func @transform_1(%arg0: i32) -> (i32, i32) {
    %c0_i32 = arith.constant 0 : i32
    %c0_i32_0 = arith.constant 0 : i32
    %c0_i32_1 = arith.constant 0 : i32
    return %c0_i32, %c0_i32_0 : i32, i32
  }
  func.func @transform_2(%arg0: i32) -> (i32, i32) {
    %c0_i32 = arith.constant 0 : i32
    %c0_i32_0 = arith.constant 0 : i32
    %c0_i32_1 = arith.constant 0 : i32
    return %c0_i32, %c0_i32_0 : i32, i32
  }
  func.func @transform_3(%arg0: i32) -> (i32, i32) {
    %c0_i32 = arith.constant 0 : i32
    %c0_i32_0 = arith.constant 0 : i32
    %c0_i32_1 = arith.constant 0 : i32
    return %c0_i32, %c0_i32_0 : i32, i32
  }
  func.func @transform_4(%arg0: i32) -> (i32, i32) {
    %c0_i32 = arith.constant 0 : i32
    %c0_i32_0 = arith.constant 0 : i32
    %c0_i32_1 = arith.constant 0 : i32
    return %c0_i32, %c0_i32_0 : i32, i32
  }
}

</mosaic_0001>

<bundles_post_ra>
// kernel: discriminator_forward.4
= control target key start
LH: loop header
LB: loop body
LE: loop exit
PB: predicated region body
PF: predicated region fallthrough
CT: control target
= control target key end

     0   :  { %s1560_s12 = smov 0   ;;  %s1841_s0 = inlined_call_operand.vmem [shape: bf16[2048,128], index: 0, kind: input, shape index: {}]   ;;  %s1842_s1 = inlined_call_operand.vmem [shape: bf16[128,4], index: 1, kind: input, shape index: {}]   ;;  %s1843_s2 = inlined_call_operand.vmem [shape: f32[1,4], index: 2, kind: input, shape index: {}]   ;;  %s1844_s3 = inlined_call_operand.vmem [shape: bf16[2048,4], index: 3, kind: output, shape index: {}]  }
   0x1 LB: > { %s1168_s13 = sadd.s32 4294967295, %s1538_s12   ;;  %p1172_p0 = scmp.ge.s32.totalorder %s1538_s12, 1  ;;  %s1538_s12 = sphi %s1560_s12, %s13_s12  }
   0x2   : > { %p138_p1 = scmp.lt.s32.totalorder %s1538_s12, 5 }
   0x4   : > { %p139_p2 = pnand %p1172_p0, %p138_p1 }
   0x5   : > { %s1173_s16 = sshll.u32 (!%p139_p2), %s1168_s13, 6 }
   0x6   : > { %142 = sbr.rel (%p139_p2) target bundleno = 304 (0x130), region = 32  ;;  %p163_p3 = scmp.lt.s32.totalorder (!%p139_p2), %s1173_s16, 255 }
   0xb   : > { %v1492_v0 = vld [vmem:[%s1842_s1 + $0x38] sm:$0xff]   ;;  %v1493_v1 = vld [vmem:[%s1842_s1 + $0x30] sm:$0xff]   ;;  %s1846_s16 = smov (!%p163_p3, %s1173_s16), 255  ;;  %v1494_v2 = vld [vmem:[%s1842_s1 + $0x28] sm:$0xff]   ;;  %vm1047_vm0 = vcmask 27648  }
   0xc   : > { %1388 = vmatprep.subr.bf16.mxu0 %v1492_v0  ;;  %1468 = vmatprep.subr.bf16.mxu1 %v1492_v0  ;;  %s1174_s21 = sshll.u32 %s1846_s16, 2  ;;  %v1495_v3 = vld [vmem:[%s1842_s1 + $0x20] sm:$0xff]   ;;  %v1496_v6 = vld [vmem:[%s1842_s1 + $0x18] sm:$0xff]   ;;  %v1497_v7 = vld [vmem:[%s1842_s1 + $0x10] sm:$0xff]  }
   0xd   : > { %1389 = vmatpush3.bf16.msra.mxu0 %v1492_v0  ;;  %1476 = vmatpush3.bf16.msra.mxu1 %v1492_v0  ;;  %s1585_s24 = scalar_lea.vmem %s1841_s0, %s1174_s21  ;;  %v1498_v8 = vld [vmem:[%s1842_s1 + $0x8] sm:$0xff]   ;;  %v1499_v9 = vld [vmem:[%s1842_s1] sm:$0xff]   ;;  %s1646_s13 = scalar_lea.vmem %s1844_s3, %s1174_s21 }
   0xe   : > { %1390 = vmatprep.subr.bf16.mxu0 %v1493_v1  ;;  %1469 = vmatprep.subr.bf16.mxu1 %v1493_v1  ;;  %v1500_v4 = vld [vmem:[%s1585_s24] sm:$0xff]   ;;  %v1502_v10 = vld [vmem:[%s1585_s24 + $0x8] sm:$0xff]   ;;  %v1504_v12 = vld [vmem:[%s1585_s24 + $0x10] sm:$0xff]  }
   0xf   : > { %v1501_v5 = vld [vmem:[%s1585_s24 + $0x80] sm:$0xff]   ;;  %1404 = vmatprep.mubr.bf16.mxu0 %v1500_v4  ;;  %v1503_v11 = vld [vmem:[%s1585_s24 + $0x88] sm:$0xff]   ;;  %v1505_v13 = vld [vmem:[%s1585_s24 + $0x90] sm:$0xff]  }
  0x10   : > { %1436 = vmatprep.mubr.bf16.mxu1 %v1501_v5  ;;  %v1506_v14 = vld [vmem:[%s1585_s24 + $0x18] sm:$0xff]   ;;  %v1508_v16 = vld [vmem:[%s1585_s24 + $0x20] sm:$0xff]   ;;  %v1510_v18 = vld [vmem:[%s1585_s24 + $0x28] sm:$0xff]  }
  0x11   : > { %1391 = vmatpush3.bf16.msra.mxu0 %v1493_v1  ;;  %1477 = vmatpush3.bf16.msra.mxu1 %v1493_v1  ;;  %v1507_v15 = vld [vmem:[%s1585_s24 + $0x98] sm:$0xff]   ;;  %v1509_v17 = vld [vmem:[%s1585_s24 + $0xa0] sm:$0xff]   ;;  %v1511_v19 = vld [vmem:[%s1585_s24 + $0xa8] sm:$0xff]  }
  0x12   : > { %1392 = vmatprep.subr.bf16.mxu0 %v1494_v2  ;;  %1470 = vmatprep.subr.bf16.mxu1 %v1494_v2  ;;  %v1512_v20 = vld [vmem:[%s1585_s24 + $0x30] sm:$0xff]   ;;  %v1514_v22 = vld [vmem:[%s1585_s24 + $0x38] sm:$0xff]   ;;  %v1516_v24 = vld [vmem:[%s1585_s24 + $0x40] sm:$0xff]  }
  0x13   : > { %v1513_v21 = vld [vmem:[%s1585_s24 + $0xb0] sm:$0xff]   ;;  %v1515_v23 = vld [vmem:[%s1585_s24 + $0xb8] sm:$0xff]   ;;  %v1517_v25 = vld [vmem:[%s1585_s24 + $0xc0] sm:$0xff]  }
  0x14   : > { %v1518_v26 = vld [vmem:[%s1585_s24 + $0x48] sm:$0xff]   ;;  %v1520_v28 = vld [vmem:[%s1585_s24 + $0x50] sm:$0xff]   ;;  %v1522_v30 = vld [vmem:[%s1585_s24 + $0x58] sm:$0xff]  }
  0x15   : > { %1393 = vmatpush3.bf16.msra.mxu0 %v1494_v2  ;;  %1478 = vmatpush3.bf16.msra.mxu1 %v1494_v2  ;;  %v1519_v27 = vld [vmem:[%s1585_s24 + $0xc8] sm:$0xff]   ;;  %v1521_v29 = vld [vmem:[%s1585_s24 + $0xd0] sm:$0xff]   ;;  %v1523_v31 = vld [vmem:[%s1585_s24 + $0xd8] sm:$0xff]  }
  0x16   : > { %1394 = vmatprep.subr.bf16.mxu0 %v1495_v3  ;;  %1471 = vmatprep.subr.bf16.mxu1 %v1495_v3  ;;  %v1524_v32 = vld [vmem:[%s1585_s24 + $0x60] sm:$0xff]   ;;  %v1526_v34 = vld [vmem:[%s1585_s24 + $0x68] sm:$0xff]   ;;  %v1528_v36 = vld [vmem:[%s1585_s24 + $0x70] sm:$0xff]  }
  0x17   : > { %v1525_v33 = vld [vmem:[%s1585_s24 + $0xe0] sm:$0xff]   ;;  %v1527_v35 = vld [vmem:[%s1585_s24 + $0xe8] sm:$0xff]   ;;  %v1529_v37 = vld [vmem:[%s1585_s24 + $0xf0] sm:$0xff]  }
  0x18   : > { %v1530_v38 = vld [vmem:[%s1585_s24 + $0x78] sm:$0xff]   ;;  %v1637_v40 = vld [vmem:[%s1843_s2] ss:$0 sm:$0xff] }
  0x19   : > { %1395 = vmatpush3.bf16.msra.mxu0 %v1495_v3  ;;  %1479 = vmatpush3.bf16.msra.mxu1 %v1495_v3  ;;  %v1531_v39 = vld [vmem:[%s1585_s24 + $0xf8] sm:$0xff]  }
  0x1a   : > { %1396 = vmatprep.subr.bf16.mxu0 %v1496_v6  ;;  %1472 = vmatprep.subr.bf16.mxu1 %v1496_v6 }
  0x1d   : > { %1397 = vmatpush3.bf16.msra.mxu0 %v1496_v6  ;;  %1480 = vmatpush3.bf16.msra.mxu1 %v1496_v6 }
  0x1e   : > { %1398 = vmatprep.subr.bf16.mxu0 %v1497_v7  ;;  %1473 = vmatprep.subr.bf16.mxu1 %v1497_v7 }
  0x21   : > { %1399 = vmatpush3.bf16.msra.mxu0 %v1497_v7  ;;  %1481 = vmatpush3.bf16.msra.mxu1 %v1497_v7 }
  0x22   : > { %1400 = vmatprep.subr.bf16.mxu0 %v1498_v8  ;;  %1474 = vmatprep.subr.bf16.mxu1 %v1498_v8 }
  0x25   : > { %1401 = vmatpush3.bf16.msra.mxu0 %v1498_v8  ;;  %1482 = vmatpush3.bf16.msra.mxu1 %v1498_v8 }
  0x26   : > { %1402 = vmatprep.subr.bf16.mxu0 %v1499_v9  ;;  %1475 = vmatprep.subr.bf16.mxu1 %v1499_v9 }
  0x29   : > { %1403 = vmatpush3.bf16.msra.mxu0 %v1499_v9  ;;  %1483 = vmatpush3.bf16.msra.mxu1 %v1499_v9 }
  0x2c   : > { %1405 = vmatmul.mubr.bf16.vlgmr.msra.gmra.mxu0 %v1502_v10  ;;  %1437 = vmatmul.mubr.bf16.vlgmr.msra.gmra.mxu1 %v1503_v11 }
  0x2d   : > { %1408 = vmatprep.mubr.bf16.mxu0 %v1504_v12  ;;  %1440 = vmatprep.mubr.bf16.mxu1 %v1505_v13 }
  0x34   : > { %1409 = vmatmul.mubr.bf16.gmra.mxu0 %v1506_v14  ;;  %1441 = vmatmul.mubr.bf16.gmra.mxu1 %v1507_v15 }
  0x35   : > { %1412 = vmatprep.mubr.bf16.mxu0 %v1508_v16  ;;  %1444 = vmatprep.mubr.bf16.mxu1 %v1509_v17 }
  0x3c   : > { %1413 = vmatmul.mubr.bf16.gmra.mxu0 %v1510_v18  ;;  %1445 = vmatmul.mubr.bf16.gmra.mxu1 %v1511_v19 }
  0x3d   : > { %1416 = vmatprep.mubr.bf16.mxu0 %v1512_v20  ;;  %1448 = vmatprep.mubr.bf16.mxu1 %v1513_v21 }
  0x44   : > { %1417 = vmatmul.mubr.bf16.gmra.mxu0 %v1514_v22  ;;  %1449 = vmatmul.mubr.bf16.gmra.mxu1 %v1515_v23 }
  0x45   : > { %1420 = vmatprep.mubr.bf16.mxu0 %v1516_v24  ;;  %1452 = vmatprep.mubr.bf16.mxu1 %v1517_v25 }
  0x4c   : > { %1421 = vmatmul.mubr.bf16.gmra.mxu0 %v1518_v26  ;;  %1453 = vmatmul.mubr.bf16.gmra.mxu1 %v1519_v27 }
  0x4d   : > { %1424 = vmatprep.mubr.bf16.mxu0 %v1520_v28  ;;  %1456 = vmatprep.mubr.bf16.mxu1 %v1521_v29 }
  0x54   : > { %1425 = vmatmul.mubr.bf16.gmra.mxu0 %v1522_v30  ;;  %1457 = vmatmul.mubr.bf16.gmra.mxu1 %v1523_v31 }
  0x55   : > { %1428 = vmatprep.mubr.bf16.mxu0 %v1524_v32  ;;  %1460 = vmatprep.mubr.bf16.mxu1 %v1525_v33 }
  0x5c   : > { %1429 = vmatmul.mubr.bf16.gmra.mxu0 %v1526_v34  ;;  %1461 = vmatmul.mubr.bf16.gmra.mxu1 %v1527_v35 }
  0x5d   : > { %1432 = vmatprep.mubr.bf16.mxu0 %v1528_v36  ;;  %1464 = vmatprep.mubr.bf16.mxu1 %v1529_v37 }
  0x64   : > { %1433 = vmatmul.mubr.bf16.gmra.mxu0 %v1530_v38  ;;  %1465 = vmatmul.mubr.bf16.gmra.mxu1 %v1531_v39 }
  0xec   : > { %v1406_v41 = vpop.f32.mrf.mxu0  ;;  %v1438_v42 = vpop.f32.mrf.mxu1 }
  0xed   : > { %v545_v43 = vadd.f32 %v1406_v41, %v1637_v40  ;;  %v673_v44 = vadd.f32 %v1438_v42, %v1637_v40 }
  0xee   : > { %v536_v45 = vpop.f32.mrf.mxu0  ;;  %v664_v46 = vpop.f32.mrf.mxu1 }
  0xef   : > { %v1286_v47 = vpack.c.bf16 %v545_v43, %v545_v43  ;;  %v1318_v48 = vpack.c.bf16 %v673_v44, %v673_v44  ;;  %v537_v49 = vadd.f32 %v1637_v40, %v536_v45  ;;  %v665_v50 = vadd.f32 %v1637_v40, %v664_v46 }
  0xf0   : > { %v1407_v51 = vpop.f32.mrf.mxu0  ;;  %v1439_v52 = vpop.f32.mrf.mxu1 }
  0xf1   : > { %1050 = vst.msk [vmem:[%s1646_s13 + $0x8] sm:$0xf] %vm1047_vm0, %v1286_v47  ;;  %1082 = vst.msk [vmem:[%s1646_s13 + $0x88] sm:$0xf] %vm1047_vm0, %v1318_v48  ;;  %v1284_v53 = vpack.c.bf16 %v537_v49, %v537_v49  ;;  %v1316_v54 = vpack.c.bf16 %v665_v50, %v665_v50  ;;  %v548_v55 = vadd.f32 %v1407_v51, %v1637_v40 }
  0xf2   : > { %v676_v56 = vadd.f32 %v1439_v52, %v1637_v40  ;;  %v539_v57 = vpop.f32.mrf.mxu0  ;;  %v667_v58 = vpop.f32.mrf.mxu1 }
  0xf3   : > { %1048 = vst.msk [vmem:[%s1646_s13] sm:$0xf] %vm1047_vm0, %v1284_v53  ;;  %1080 = vst.msk [vmem:[%s1646_s13 + $0x80] sm:$0xf] %vm1047_vm0, %v1316_v54  ;;  %v1287_v59 = vpack.c.bf16 %v548_v55, %v548_v55  ;;  %v540_v61 = vadd.f32 %v1637_v40, %v539_v57  ;;  %v668_v62 = vadd.f32 %v1637_v40, %v667_v58 }
  0xf4   : > { %v1319_v60 = vpack.c.bf16 %v676_v56, %v676_v56  ;;  %v1410_v63 = vpop.f32.mrf.mxu0  ;;  %v1442_v0 = vpop.f32.mrf.mxu1 }
  0xf5   : > { %1051 = vst.msk [vmem:[%s1646_s13 + $0xc] sm:$0xf] %vm1047_vm0, %v1287_v59  ;;  %v1285_v1 = vpack.c.bf16 %v540_v61, %v540_v61  ;;  %v1317_v2 = vpack.c.bf16 %v668_v62, %v668_v62  ;;  %v561_v3 = vadd.f32 %v1410_v63, %v1637_v40  ;;  %v689_v4 = vadd.f32 %v1442_v0, %v1637_v40 }
  0xf6   : > { %1083 = vst.msk [vmem:[%s1646_s13 + $0x8c] sm:$0xf] %vm1047_vm0, %v1319_v60  ;;  %v552_v5 = vpop.f32.mrf.mxu0  ;;  %v680_v6 = vpop.f32.mrf.mxu1 }
  0xf7   : > { %1049 = vst.msk [vmem:[%s1646_s13 + $0x4] sm:$0xf] %vm1047_vm0, %v1285_v1  ;;  %1081 = vst.msk [vmem:[%s1646_s13 + $0x84] sm:$0xf] %vm1047_vm0, %v1317_v2  ;;  %v1290_v7 = vpack.c.bf16 %v561_v3, %v561_v3  ;;  %v1322_v8 = vpack.c.bf16 %v689_v4, %v689_v4  ;;  %v553_v9 = vadd.f32 %v1637_v40, %v552_v5 }
  0xf8   : > { %v681_v10 = vadd.f32 %v1637_v40, %v680_v6  ;;  %v1411_v11 = vpop.f32.mrf.mxu0  ;;  %v1443_v12 = vpop.f32.mrf.mxu1 }
  0xf9   : > { %1054 = vst.msk [vmem:[%s1646_s13 + $0x18] sm:$0xf] %vm1047_vm0, %v1290_v7  ;;  %1086 = vst.msk [vmem:[%s1646_s13 + $0x98] sm:$0xf] %vm1047_vm0, %v1322_v8  ;;  %v1288_v13 = vpack.c.bf16 %v553_v9, %v553_v9  ;;  %v564_v15 = vadd.f32 %v1411_v11, %v1637_v40  ;;  %v692_v16 = vadd.f32 %v1443_v12, %v1637_v40 }
  0xfa   : > { %v1320_v14 = vpack.c.bf16 %v681_v10, %v681_v10  ;;  %v555_v17 = vpop.f32.mrf.mxu0  ;;  %v683_v18 = vpop.f32.mrf.mxu1 }
  0xfb   : > { %1052 = vst.msk [vmem:[%s1646_s13 + $0x10] sm:$0xf] %vm1047_vm0, %v1288_v13  ;;  %v1291_v19 = vpack.c.bf16 %v564_v15, %v564_v15  ;;  %v1323_v20 = vpack.c.bf16 %v692_v16, %v692_v16  ;;  %v556_v21 = vadd.f32 %v1637_v40, %v555_v17  ;;  %v684_v22 = vadd.f32 %v1637_v40, %v683_v18 }
  0xfc   : > { %1084 = vst.msk [vmem:[%s1646_s13 + $0x90] sm:$0xf] %vm1047_vm0, %v1320_v14  ;;  %v1414_v23 = vpop.f32.mrf.mxu0  ;;  %v1446_v24 = vpop.f32.mrf.mxu1 }
  0xfd   : > { %1055 = vst.msk [vmem:[%s1646_s13 + $0x1c] sm:$0xf] %vm1047_vm0, %v1291_v19  ;;  %1087 = vst.msk [vmem:[%s1646_s13 + $0x9c] sm:$0xf] %vm1047_vm0, %v1323_v20  ;;  %v1289_v25 = vpack.c.bf16 %v556_v21, %v556_v21  ;;  %v1321_v26 = vpack.c.bf16 %v684_v22, %v684_v22  ;;  %v577_v27 = vadd.f32 %v1414_v23, %v1637_v40 }
  0xfe   : > { %v705_v28 = vadd.f32 %v1446_v24, %v1637_v40  ;;  %v568_v29 = vpop.f32.mrf.mxu0  ;;  %v696_v30 = vpop.f32.mrf.mxu1 }
  0xff   : > { %1053 = vst.msk [vmem:[%s1646_s13 + $0x14] sm:$0xf] %vm1047_vm0, %v1289_v25  ;;  %1085 = vst.msk [vmem:[%s1646_s13 + $0x94] sm:$0xf] %vm1047_vm0, %v1321_v26  ;;  %v1294_v31 = vpack.c.bf16 %v577_v27, %v577_v27  ;;  %v569_v33 = vadd.f32 %v1637_v40, %v568_v29  ;;  %v697_v34 = vadd.f32 %v1637_v40, %v696_v30 }
 0x100   : > { %v1326_v32 = vpack.c.bf16 %v705_v28, %v705_v28  ;;  %v1415_v35 = vpop.f32.mrf.mxu0  ;;  %v1447_v36 = vpop.f32.mrf.mxu1 }
 0x101   : > { %1058 = vst.msk [vmem:[%s1646_s13 + $0x28] sm:$0xf] %vm1047_vm0, %v1294_v31  ;;  %v1292_v37 = vpack.c.bf16 %v569_v33, %v569_v33  ;;  %v1324_v38 = vpack.c.bf16 %v697_v34, %v697_v34  ;;  %v580_v39 = vadd.f32 %v1415_v35, %v1637_v40  ;;  %v708_v41 = vadd.f32 %v1447_v36, %v1637_v40 }
 0x102   : > { %1090 = vst.msk [vmem:[%s1646_s13 + $0xa8] sm:$0xf] %vm1047_vm0, %v1326_v32  ;;  %v571_v42 = vpop.f32.mrf.mxu0  ;;  %v699_v43 = vpop.f32.mrf.mxu1 }
 0x103   : > { %1056 = vst.msk [vmem:[%s1646_s13 + $0x20] sm:$0xf] %vm1047_vm0, %v1292_v37  ;;  %1088 = vst.msk [vmem:[%s1646_s13 + $0xa0] sm:$0xf] %vm1047_vm0, %v1324_v38  ;;  %v1295_v44 = vpack.c.bf16 %v580_v39, %v580_v39  ;;  %v1327_v45 = vpack.c.bf16 %v708_v41, %v708_v41  ;;  %v572_v46 = vadd.f32 %v1637_v40, %v571_v42 }
 0x104   : > { %v700_v47 = vadd.f32 %v1637_v40, %v699_v43  ;;  %v1418_v48 = vpop.f32.mrf.mxu0  ;;  %v1450_v49 = vpop.f32.mrf.mxu1 }
 0x105   : > { %1059 = vst.msk [vmem:[%s1646_s13 + $0x2c] sm:$0xf] %vm1047_vm0, %v1295_v44  ;;  %1091 = vst.msk [vmem:[%s1646_s13 + $0xac] sm:$0xf] %vm1047_vm0, %v1327_v45  ;;  %v1293_v50 = vpack.c.bf16 %v572_v46, %v572_v46  ;;  %v593_v52 = vadd.f32 %v1418_v48, %v1637_v40  ;;  %v721_v53 = vadd.f32 %v1450_v49, %v1637_v40 }
 0x106   : > { %v1325_v51 = vpack.c.bf16 %v700_v47, %v700_v47  ;;  %v584_v54 = vpop.f32.mrf.mxu0  ;;  %v712_v55 = vpop.f32.mrf.mxu1 }
 0x107   : > { %1057 = vst.msk [vmem:[%s1646_s13 + $0x24] sm:$0xf] %vm1047_vm0, %v1293_v50  ;;  %v1298_v56 = vpack.c.bf16 %v593_v52, %v593_v52  ;;  %v1330_v57 = vpack.c.bf16 %v721_v53, %v721_v53  ;;  %v585_v58 = vadd.f32 %v1637_v40, %v584_v54  ;;  %v713_v59 = vadd.f32 %v1637_v40, %v712_v55 }
 0x108   : > { %1089 = vst.msk [vmem:[%s1646_s13 + $0xa4] sm:$0xf] %vm1047_vm0, %v1325_v51  ;;  %v1419_v60 = vpop.f32.mrf.mxu0  ;;  %v1451_v61 = vpop.f32.mrf.mxu1 }
 0x109   : > { %1062 = vst.msk [vmem:[%s1646_s13 + $0x38] sm:$0xf] %vm1047_vm0, %v1298_v56  ;;  %1094 = vst.msk [vmem:[%s1646_s13 + $0xb8] sm:$0xf] %vm1047_vm0, %v1330_v57  ;;  %v1296_v62 = vpack.c.bf16 %v585_v58, %v585_v58  ;;  %v1328_v63 = vpack.c.bf16 %v713_v59, %v713_v59  ;;  %v596_v0 = vadd.f32 %v1419_v60, %v1637_v40 }
 0x10a   : > { %v724_v1 = vadd.f32 %v1451_v61, %v1637_v40  ;;  %v587_v2 = vpop.f32.mrf.mxu0  ;;  %v715_v3 = vpop.f32.mrf.mxu1 }
 0x10b   : > { %1060 = vst.msk [vmem:[%s1646_s13 + $0x30] sm:$0xf] %vm1047_vm0, %v1296_v62  ;;  %1092 = vst.msk [vmem:[%s1646_s13 + $0xb0] sm:$0xf] %vm1047_vm0, %v1328_v63  ;;  %v1299_v4 = vpack.c.bf16 %v596_v0, %v596_v0  ;;  %v588_v6 = vadd.f32 %v1637_v40, %v587_v2  ;;  %v716_v7 = vadd.f32 %v1637_v40, %v715_v3 }
 0x10c   : > { %v1331_v5 = vpack.c.bf16 %v724_v1, %v724_v1  ;;  %v1422_v8 = vpop.f32.mrf.mxu0  ;;  %v1454_v9 = vpop.f32.mrf.mxu1 }
 0x10d   : > { %1063 = vst.msk [vmem:[%s1646_s13 + $0x3c] sm:$0xf] %vm1047_vm0, %v1299_v4  ;;  %v1297_v10 = vpack.c.bf16 %v588_v6, %v588_v6  ;;  %v1329_v11 = vpack.c.bf16 %v716_v7, %v716_v7  ;;  %v609_v12 = vadd.f32 %v1422_v8, %v1637_v40  ;;  %v737_v13 = vadd.f32 %v1454_v9, %v1637_v40 }
 0x10e   : > { %1095 = vst.msk [vmem:[%s1646_s13 + $0xbc] sm:$0xf] %vm1047_vm0, %v1331_v5  ;;  %v600_v14 = vpop.f32.mrf.mxu0  ;;  %v728_v15 = vpop.f32.mrf.mxu1 }
 0x10f   : > { %1061 = vst.msk [vmem:[%s1646_s13 + $0x34] sm:$0xf] %vm1047_vm0, %v1297_v10  ;;  %1093 = vst.msk [vmem:[%s1646_s13 + $0xb4] sm:$0xf] %vm1047_vm0, %v1329_v11  ;;  %v1302_v16 = vpack.c.bf16 %v609_v12, %v609_v12  ;;  %v1334_v17 = vpack.c.bf16 %v737_v13, %v737_v13  ;;  %v601_v18 = vadd.f32 %v1637_v40, %v600_v14 }
 0x110   : > { %v729_v19 = vadd.f32 %v1637_v40, %v728_v15  ;;  %v1423_v20 = vpop.f32.mrf.mxu0  ;;  %v1455_v21 = vpop.f32.mrf.mxu1 }
 0x111   : > { %1066 = vst.msk [vmem:[%s1646_s13 + $0x48] sm:$0xf] %vm1047_vm0, %v1302_v16  ;;  %1098 = vst.msk [vmem:[%s1646_s13 + $0xc8] sm:$0xf] %vm1047_vm0, %v1334_v17  ;;  %v1300_v22 = vpack.c.bf16 %v601_v18, %v601_v18  ;;  %v612_v24 = vadd.f32 %v1423_v20, %v1637_v40  ;;  %v740_v25 = vadd.f32 %v1455_v21, %v1637_v40 }
 0x112   : > { %v1332_v23 = vpack.c.bf16 %v729_v19, %v729_v19  ;;  %v603_v26 = vpop.f32.mrf.mxu0  ;;  %v731_v27 = vpop.f32.mrf.mxu1 }
 0x113   : > { %1064 = vst.msk [vmem:[%s1646_s13 + $0x40] sm:$0xf] %vm1047_vm0, %v1300_v22  ;;  %v1303_v28 = vpack.c.bf16 %v612_v24, %v612_v24  ;;  %v1335_v29 = vpack.c.bf16 %v740_v25, %v740_v25  ;;  %v604_v30 = vadd.f32 %v1637_v40, %v603_v26  ;;  %v732_v31 = vadd.f32 %v1637_v40, %v731_v27 }
 0x114   : > { %1096 = vst.msk [vmem:[%s1646_s13 + $0xc0] sm:$0xf] %vm1047_vm0, %v1332_v23  ;;  %v1426_v32 = vpop.f32.mrf.mxu0  ;;  %v1458_v33 = vpop.f32.mrf.mxu1 }
 0x115   : > { %1067 = vst.msk [vmem:[%s1646_s13 + $0x4c] sm:$0xf] %vm1047_vm0, %v1303_v28  ;;  %1099 = vst.msk [vmem:[%s1646_s13 + $0xcc] sm:$0xf] %vm1047_vm0, %v1335_v29  ;;  %v1301_v34 = vpack.c.bf16 %v604_v30, %v604_v30  ;;  %v1333_v35 = vpack.c.bf16 %v732_v31, %v732_v31  ;;  %v625_v36 = vadd.f32 %v1426_v32, %v1637_v40 }
 0x116   : > { %v753_v37 = vadd.f32 %v1458_v33, %v1637_v40  ;;  %v616_v38 = vpop.f32.mrf.mxu0  ;;  %v744_v39 = vpop.f32.mrf.mxu1 }
 0x117   : > { %1065 = vst.msk [vmem:[%s1646_s13 + $0x44] sm:$0xf] %vm1047_vm0, %v1301_v34  ;;  %1097 = vst.msk [vmem:[%s1646_s13 + $0xc4] sm:$0xf] %vm1047_vm0, %v1333_v35  ;;  %v1306_v41 = vpack.c.bf16 %v625_v36, %v625_v36  ;;  %v617_v43 = vadd.f32 %v1637_v40, %v616_v38  ;;  %v745_v44 = vadd.f32 %v1637_v40, %v744_v39 }
 0x118   : > { %v1338_v42 = vpack.c.bf16 %v753_v37, %v753_v37  ;;  %v1427_v45 = vpop.f32.mrf.mxu0  ;;  %v1459_v46 = vpop.f32.mrf.mxu1 }
 0x119   : > { %1070 = vst.msk [vmem:[%s1646_s13 + $0x58] sm:$0xf] %vm1047_vm0, %v1306_v41  ;;  %v1304_v47 = vpack.c.bf16 %v617_v43, %v617_v43  ;;  %v1336_v48 = vpack.c.bf16 %v745_v44, %v745_v44  ;;  %v628_v49 = vadd.f32 %v1427_v45, %v1637_v40  ;;  %v756_v50 = vadd.f32 %v1459_v46, %v1637_v40 }
 0x11a   : > { %1102 = vst.msk [vmem:[%s1646_s13 + $0xd8] sm:$0xf] %vm1047_vm0, %v1338_v42  ;;  %v619_v51 = vpop.f32.mrf.mxu0  ;;  %v747_v52 = vpop.f32.mrf.mxu1 }
 0x11b   : > { %1068 = vst.msk [vmem:[%s1646_s13 + $0x50] sm:$0xf] %vm1047_vm0, %v1304_v47  ;;  %1100 = vst.msk [vmem:[%s1646_s13 + $0xd0] sm:$0xf] %vm1047_vm0, %v1336_v48  ;;  %v1307_v53 = vpack.c.bf16 %v628_v49, %v628_v49  ;;  %v1339_v54 = vpack.c.bf16 %v756_v50, %v756_v50  ;;  %v620_v55 = vadd.f32 %v1637_v40, %v619_v51 }
 0x11c   : > { %v748_v56 = vadd.f32 %v1637_v40, %v747_v52  ;;  %v1430_v57 = vpop.f32.mrf.mxu0  ;;  %v1462_v58 = vpop.f32.mrf.mxu1 }
 0x11d   : > { %1071 = vst.msk [vmem:[%s1646_s13 + $0x5c] sm:$0xf] %vm1047_vm0, %v1307_v53  ;;  %1103 = vst.msk [vmem:[%s1646_s13 + $0xdc] sm:$0xf] %vm1047_vm0, %v1339_v54  ;;  %v1305_v59 = vpack.c.bf16 %v620_v55, %v620_v55  ;;  %v641_v61 = vadd.f32 %v1430_v57, %v1637_v40  ;;  %v769_v62 = vadd.f32 %v1462_v58, %v1637_v40 }
 0x11e   : > { %v1337_v60 = vpack.c.bf16 %v748_v56, %v748_v56  ;;  %v632_v63 = vpop.f32.mrf.mxu0  ;;  %v760_v0 = vpop.f32.mrf.mxu1 }
 0x11f   : > { %1069 = vst.msk [vmem:[%s1646_s13 + $0x54] sm:$0xf] %vm1047_vm0, %v1305_v59  ;;  %v1310_v1 = vpack.c.bf16 %v641_v61, %v641_v61  ;;  %v1342_v2 = vpack.c.bf16 %v769_v62, %v769_v62  ;;  %v633_v3 = vadd.f32 %v1637_v40, %v632_v63  ;;  %v761_v4 = vadd.f32 %v1637_v40, %v760_v0 }
 0x120   : > { %1101 = vst.msk [vmem:[%s1646_s13 + $0xd4] sm:$0xf] %vm1047_vm0, %v1337_v60  ;;  %v1431_v5 = vpop.f32.mrf.mxu0  ;;  %v1463_v6 = vpop.f32.mrf.mxu1 }
 0x121   : > { %1074 = vst.msk [vmem:[%s1646_s13 + $0x68] sm:$0xf] %vm1047_vm0, %v1310_v1  ;;  %1106 = vst.msk [vmem:[%s1646_s13 + $0xe8] sm:$0xf] %vm1047_vm0, %v1342_v2  ;;  %v1308_v7 = vpack.c.bf16 %v633_v3, %v633_v3  ;;  %v1340_v8 = vpack.c.bf16 %v761_v4, %v761_v4  ;;  %v644_v9 = vadd.f32 %v1431_v5, %v1637_v40 }
 0x122   : > { %v772_v10 = vadd.f32 %v1463_v6, %v1637_v40  ;;  %v635_v11 = vpop.f32.mrf.mxu0  ;;  %v763_v12 = vpop.f32.mrf.mxu1 }
 0x123   : > { %1072 = vst.msk [vmem:[%s1646_s13 + $0x60] sm:$0xf] %vm1047_vm0, %v1308_v7  ;;  %1104 = vst.msk [vmem:[%s1646_s13 + $0xe0] sm:$0xf] %vm1047_vm0, %v1340_v8  ;;  %v1311_v13 = vpack.c.bf16 %v644_v9, %v644_v9  ;;  %v636_v15 = vadd.f32 %v1637_v40, %v635_v11  ;;  %v764_v16 = vadd.f32 %v1637_v40, %v763_v12 }
 0x124   : > { %v1343_v14 = vpack.c.bf16 %v772_v10, %v772_v10  ;;  %v1434_v17 = vpop.f32.mrf.mxu0  ;;  %v1466_v18 = vpop.f32.mrf.mxu1 }
 0x125   : > { %1075 = vst.msk [vmem:[%s1646_s13 + $0x6c] sm:$0xf] %vm1047_vm0, %v1311_v13  ;;  %v1309_v19 = vpack.c.bf16 %v636_v15, %v636_v15  ;;  %v1341_v20 = vpack.c.bf16 %v764_v16, %v764_v16  ;;  %v657_v21 = vadd.f32 %v1434_v17, %v1637_v40  ;;  %v785_v22 = vadd.f32 %v1466_v18, %v1637_v40 }
 0x126   : > { %1107 = vst.msk [vmem:[%s1646_s13 + $0xec] sm:$0xf] %vm1047_vm0, %v1343_v14  ;;  %v648_v23 = vpop.f32.mrf.mxu0  ;;  %v776_v24 = vpop.f32.mrf.mxu1 }
 0x127   : > { %1073 = vst.msk [vmem:[%s1646_s13 + $0x64] sm:$0xf] %vm1047_vm0, %v1309_v19  ;;  %1105 = vst.msk [vmem:[%s1646_s13 + $0xe4] sm:$0xf] %vm1047_vm0, %v1341_v20  ;;  %v1314_v25 = vpack.c.bf16 %v657_v21, %v657_v21  ;;  %v1346_v26 = vpack.c.bf16 %v785_v22, %v785_v22  ;;  %v649_v27 = vadd.f32 %v1637_v40, %v648_v23 }
 0x128   : > { %v777_v28 = vadd.f32 %v1637_v40, %v776_v24  ;;  %v1435_v29 = vpop.f32.mrf.mxu0  ;;  %v1467_v30 = vpop.f32.mrf.mxu1 }
 0x129   : > { %1078 = vst.msk [vmem:[%s1646_s13 + $0x78] sm:$0xf] %vm1047_vm0, %v1314_v25  ;;  %1110 = vst.msk [vmem:[%s1646_s13 + $0xf8] sm:$0xf] %vm1047_vm0, %v1346_v26  ;;  %v1312_v31 = vpack.c.bf16 %v649_v27, %v649_v27  ;;  %v660_v33 = vadd.f32 %v1435_v29, %v1637_v40  ;;  %v788_v34 = vadd.f32 %v1467_v30, %v1637_v40 }
 0x12a   : > { %v1344_v32 = vpack.c.bf16 %v777_v28, %v777_v28  ;;  %v651_v35 = vpop.f32.mrf.mxu0  ;;  %v779_v36 = vpop.f32.mrf.mxu1 }
 0x12b   : > { %1076 = vst.msk [vmem:[%s1646_s13 + $0x70] sm:$0xf] %vm1047_vm0, %v1312_v31  ;;  %v1315_v37 = vpack.c.bf16 %v660_v33, %v660_v33  ;;  %v1347_v38 = vpack.c.bf16 %v788_v34, %v788_v34  ;;  %v652_v39 = vadd.f32 %v1637_v40, %v651_v35  ;;  %v780_v41 = vadd.f32 %v1637_v40, %v779_v36 }
 0x12c   : > { %1108 = vst.msk [vmem:[%s1646_s13 + $0xf0] sm:$0xf] %vm1047_vm0, %v1344_v32 }
 0x12d   : > { %1079 = vst.msk [vmem:[%s1646_s13 + $0x7c] sm:$0xf] %vm1047_vm0, %v1315_v37  ;;  %1111 = vst.msk [vmem:[%s1646_s13 + $0xfc] sm:$0xf] %vm1047_vm0, %v1347_v38  ;;  %v1313_v42 = vpack.c.bf16 %v652_v39, %v652_v39  ;;  %v1345_v43 = vpack.c.bf16 %v780_v41, %v780_v41 }
 0x12f   : > { %1077 = vst.msk [vmem:[%s1646_s13 + $0x74] sm:$0xf] %vm1047_vm0, %v1313_v42  ;;  %1109 = vst.msk [vmem:[%s1646_s13 + $0xf4] sm:$0xf] %vm1047_vm0, %v1345_v43 }
 0x130 PF: > { %s13_s12 = sadd.s32 1, %s1538_s12  }
 0x131   : > { %p10_p4 = scmp.ge.s32.totalorder %s13_s12, 6  }
 0x133   :  { %12 = sbr.rel (!%p10_p4) target bundleno = 1 (0x1), region = 62 }

// kernel: discriminator_forward.5
= control target key start
LH: loop header
LB: loop body
LE: loop exit
PB: predicated region body
PF: predicated region fallthrough
CT: control target
= control target key end

     0   :  { %vm627_vm0 = vcmask 64512   ;;  %s4113_s1 = inlined_call_operand.vmem [shape: bf16[128,8], index: 1, kind: input, shape index: {}]   ;;  %s4114_s0 = inlined_call_operand.vmem [shape: bf16[512,128], index: 0, kind: input, shape index: {}]   ;;  %s4115_s2 = inlined_call_operand.vmem [shape: f32[1,8], index: 2, kind: input, shape index: {}]   ;;  %s4116_s3 = inlined_call_operand.vmem [shape: f32[1,8], index: 3, kind: input, shape index: {}]   ;;  %s4117_s4 = inlined_call_operand.vmem [shape: bf16[512,8], index: 4, kind: output, shape index: {}]  }
   0x1   :  { %v1992_v0 = vld [vmem:[%s4113_s1 + $0x38] sm:$0xff]   ;;  %v1993_v1 = vld [vmem:[%s4113_s1 + $0x30] sm:$0xff]   ;;  %v1994_v2 = vld [vmem:[%s4113_s1 + $0x28] sm:$0xff]  }
   0x2   :  { %1896 = vmatprep.subr.bf16.mxu0 %v1992_v0  ;;  %1976 = vmatprep.subr.bf16.mxu1 %v1992_v0  ;;  %v1995_v3 = vld [vmem:[%s4113_s1 + $0x20] sm:$0xff]   ;;  %v1996_v5 = vld [vmem:[%s4113_s1 + $0x18] sm:$0xff]   ;;  %v1997_v6 = vld [vmem:[%s4113_s1 + $0x10] sm:$0xff]  }
   0x3   :  { %1897 = vmatpush3.bf16.msra.mxu0 %v1992_v0  ;;  %1984 = vmatpush3.bf16.msra.mxu1 %v1992_v0  ;;  %v2000_v4 = vld [vmem:[%s4114_s0] sm:$0xff]   ;;  %v1998_v7 = vld [vmem:[%s4113_s1 + $0x8] sm:$0xff]   ;;  %v2002_v11 = vld [vmem:[%s4114_s0 + $0x10] sm:$0xff]  }
   0x4   :  { %1898 = vmatprep.subr.bf16.mxu0 %v1993_v1  ;;  %1977 = vmatprep.subr.bf16.mxu1 %v1993_v1  ;;  %v1999_v8 = vld [vmem:[%s4113_s1] sm:$0xff]   ;;  %v2001_v10 = vld [vmem:[%s4114_s0 + $0x8] sm:$0xff]   ;;  %v2018_v13 = vld [vmem:[%s4114_s0 + $0x90] sm:$0xff]  }
   0x5   :  { %1912 = vmatprep.mubr.bf16.mxu0 %v2000_v4  ;;  %v2016_v9 = vld [vmem:[%s4114_s0 + $0x80] sm:$0xff]   ;;  %v2017_v12 = vld [vmem:[%s4114_s0 + $0x88] sm:$0xff]   ;;  %v2003_v14 = vld [vmem:[%s4114_s0 + $0x18] sm:$0xff]  }
   0x6   :  { %1944 = vmatprep.mubr.bf16.mxu1 %v2016_v9  ;;  %v2004_v15 = vld [vmem:[%s4114_s0 + $0x20] sm:$0xff]   ;;  %v2019_v16 = vld [vmem:[%s4114_s0 + $0x98] sm:$0xff]   ;;  %v2005_v18 = vld [vmem:[%s4114_s0 + $0x28] sm:$0xff]  }
   0x7   :  { %1899 = vmatpush3.bf16.msra.mxu0 %v1993_v1  ;;  %1985 = vmatpush3.bf16.msra.mxu1 %v1993_v1  ;;  %v2020_v17 = vld [vmem:[%s4114_s0 + $0xa0] sm:$0xff]   ;;  %v2021_v19 = vld [vmem:[%s4114_s0 + $0xa8] sm:$0xff]   ;;  %v2006_v20 = vld [vmem:[%s4114_s0 + $0x30] sm:$0xff]  }
   0x8   :  { %1900 = vmatprep.subr.bf16.mxu0 %v1994_v2  ;;  %1978 = vmatprep.subr.bf16.mxu1 %v1994_v2  ;;  %v2022_v21 = vld [vmem:[%s4114_s0 + $0xb0] sm:$0xff]   ;;  %v2007_v22 = vld [vmem:[%s4114_s0 + $0x38] sm:$0xff]   ;;  %v2008_v24 = vld [vmem:[%s4114_s0 + $0x40] sm:$0xff]  }
   0x9   :  { %v2023_v23 = vld [vmem:[%s4114_s0 + $0xb8] sm:$0xff]   ;;  %v2024_v25 = vld [vmem:[%s4114_s0 + $0xc0] sm:$0xff]   ;;  %v2009_v26 = vld [vmem:[%s4114_s0 + $0x48] sm:$0xff]  }
   0xa   :  { %v2025_v27 = vld [vmem:[%s4114_s0 + $0xc8] sm:$0xff]   ;;  %v2010_v28 = vld [vmem:[%s4114_s0 + $0x50] sm:$0xff]   ;;  %v2011_v30 = vld [vmem:[%s4114_s0 + $0x58] sm:$0xff]  }
   0xb   :  { %1901 = vmatpush3.bf16.msra.mxu0 %v1994_v2  ;;  %1986 = vmatpush3.bf16.msra.mxu1 %v1994_v2  ;;  %v2026_v29 = vld [vmem:[%s4114_s0 + $0xd0] sm:$0xff]   ;;  %v2027_v31 = vld [vmem:[%s4114_s0 + $0xd8] sm:$0xff]   ;;  %v2012_v32 = vld [vmem:[%s4114_s0 + $0x60] sm:$0xff]  }
   0xc   :  { %1902 = vmatprep.subr.bf16.mxu0 %v1995_v3  ;;  %1979 = vmatprep.subr.bf16.mxu1 %v1995_v3  ;;  %v2028_v33 = vld [vmem:[%s4114_s0 + $0xe0] sm:$0xff]   ;;  %v2013_v34 = vld [vmem:[%s4114_s0 + $0x68] sm:$0xff]   ;;  %v2014_v36 = vld [vmem:[%s4114_s0 + $0x70] sm:$0xff]  }
   0xd   :  { %v2029_v35 = vld [vmem:[%s4114_s0 + $0xe8] sm:$0xff]   ;;  %v2030_v37 = vld [vmem:[%s4114_s0 + $0xf0] sm:$0xff]   ;;  %v2015_v38 = vld [vmem:[%s4114_s0 + $0x78] sm:$0xff]  }
   0xe   :  { %v2031_v39 = vld [vmem:[%s4114_s0 + $0xf8] sm:$0xff]  }
   0xf   :  { %1903 = vmatpush3.bf16.msra.mxu0 %v1995_v3  ;;  %1987 = vmatpush3.bf16.msra.mxu1 %v1995_v3 }
  0x10   :  { %1904 = vmatprep.subr.bf16.mxu0 %v1996_v5  ;;  %1980 = vmatprep.subr.bf16.mxu1 %v1996_v5 }
  0x13   :  { %1905 = vmatpush3.bf16.msra.mxu0 %v1996_v5  ;;  %1988 = vmatpush3.bf16.msra.mxu1 %v1996_v5 }
  0x14   :  { %1906 = vmatprep.subr.bf16.mxu0 %v1997_v6  ;;  %1981 = vmatprep.subr.bf16.mxu1 %v1997_v6 }
  0x17   :  { %1907 = vmatpush3.bf16.msra.mxu0 %v1997_v6  ;;  %1989 = vmatpush3.bf16.msra.mxu1 %v1997_v6 }
  0x18   :  { %1908 = vmatprep.subr.bf16.mxu0 %v1998_v7  ;;  %1982 = vmatprep.subr.bf16.mxu1 %v1998_v7 }
  0x1b   :  { %1909 = vmatpush3.bf16.msra.mxu0 %v1998_v7  ;;  %1990 = vmatpush3.bf16.msra.mxu1 %v1998_v7 }
  0x1c   :  { %1910 = vmatprep.subr.bf16.mxu0 %v1999_v8  ;;  %1983 = vmatprep.subr.bf16.mxu1 %v1999_v8 }
  0x1f   :  { %1911 = vmatpush3.bf16.msra.mxu0 %v1999_v8  ;;  %1991 = vmatpush3.bf16.msra.mxu1 %v1999_v8 }
  0x22   :  { %1913 = vmatmul.mubr.bf16.vlgmr.msra.gmra.mxu0 %v2001_v10  ;;  %1945 = vmatmul.mubr.bf16.vlgmr.msra.gmra.mxu1 %v2017_v12 }
  0x23   :  { %1916 = vmatprep.mubr.bf16.mxu0 %v2002_v11  ;;  %1948 = vmatprep.mubr.bf16.mxu1 %v2018_v13 }
  0x2a   :  { %1917 = vmatmul.mubr.bf16.gmra.mxu0 %v2003_v14  ;;  %1949 = vmatmul.mubr.bf16.gmra.mxu1 %v2019_v16 }
  0x2b   :  { %1920 = vmatprep.mubr.bf16.mxu0 %v2004_v15  ;;  %1952 = vmatprep.mubr.bf16.mxu1 %v2020_v17 }
  0x32   :  { %1921 = vmatmul.mubr.bf16.gmra.mxu0 %v2005_v18  ;;  %1953 = vmatmul.mubr.bf16.gmra.mxu1 %v2021_v19 }
  0x33   :  { %1924 = vmatprep.mubr.bf16.mxu0 %v2006_v20  ;;  %1956 = vmatprep.mubr.bf16.mxu1 %v2022_v21 }
  0x3a   :  { %1925 = vmatmul.mubr.bf16.gmra.mxu0 %v2007_v22  ;;  %1957 = vmatmul.mubr.bf16.gmra.mxu1 %v2023_v23 }
  0x3b   :  { %1928 = vmatprep.mubr.bf16.mxu0 %v2008_v24  ;;  %1960 = vmatprep.mubr.bf16.mxu1 %v2024_v25 }
  0x42   :  { %1929 = vmatmul.mubr.bf16.gmra.mxu0 %v2009_v26  ;;  %1961 = vmatmul.mubr.bf16.gmra.mxu1 %v2025_v27 }
  0x43   :  { %1932 = vmatprep.mubr.bf16.mxu0 %v2010_v28  ;;  %1964 = vmatprep.mubr.bf16.mxu1 %v2026_v29 }
  0x4a   :  { %1933 = vmatmul.mubr.bf16.gmra.mxu0 %v2011_v30  ;;  %1965 = vmatmul.mubr.bf16.gmra.mxu1 %v2027_v31 }
  0x4b   :  { %1936 = vmatprep.mubr.bf16.mxu0 %v2012_v32  ;;  %1968 = vmatprep.mubr.bf16.mxu1 %v2028_v33 }
  0x52   :  { %1937 = vmatmul.mubr.bf16.gmra.mxu0 %v2013_v34  ;;  %1969 = vmatmul.mubr.bf16.gmra.mxu1 %v2029_v35 }
  0x53   :  { %1940 = vmatprep.mubr.bf16.mxu0 %v2014_v36  ;;  %1972 = vmatprep.mubr.bf16.mxu1 %v2030_v37 }
  0x5a   :  { %1941 = vmatmul.mubr.bf16.gmra.mxu0 %v2015_v38  ;;  %1973 = vmatmul.mubr.bf16.gmra.mxu1 %v2031_v39 }
  0xe2   :  { %v2179_v40 = vpop.f32.mrf.mxu0  ;;  %v2185_v43 = vpop.f32.mrf.mxu1 }
  0xe3   :  { %4196 = vst [vmem:[#allocation2_spill] sm:$0xff] %v2179_v40  ;;  %v631_v50 = vsel %vm627_vm0, %v2179_v40, 0.0 }
  0xe4   :  { %v2181_v41 = vpop.f32.mrf.mxu0  ;;  %v2195_v49 = vpop.f32.mrf.mxu1 }
  0xe5   :  { %v628_v45 = vsel %vm627_vm0, %v2181_v41, 0.0 }
  0xe6   :  { %v2183_v42 = vpop.f32.mrf.mxu0  ;;  %v2205_v56 = vpop.f32.mrf.mxu1 }
  0xe7   :  { %4197 = vst [vmem:[#allocation3_spill] sm:$0xff] %v2183_v42  ;;  %v633_v53 = vsel %vm627_vm0, %v2183_v42, 0.0 }
  0xe8   :  { %v2187_v44 = vpop.f32.mrf.mxu0  ;;  %v2215_v63 = vpop.f32.mrf.mxu1 }
  0xe9   :  { %v629_v46 = vsel %vm627_vm0, %v2187_v44, 0.0 }
  0xea   :  { %v630_v47 = vadd.f32 %v629_v46, %v628_v45  ;;  %v2193_v48 = vpop.f32.mrf.mxu0  ;;  %v2225_v6 = vpop.f32.mrf.mxu1 }
  0xeb   :  { %v639_v0 = vsel %vm627_vm0, %v2193_v48, 0.0 }
  0xec   :  { %v632_v51 = vadd.f32 %v631_v50, %v630_v47  ;;  %v2199_v52 = vpop.f32.mrf.mxu0  ;;  %v2235_v13 = vpop.f32.mrf.mxu1 }
  0xed   :  { %4198 = vst [vmem:[#allocation4_spill] sm:$0xff] %v2199_v52  ;;  %v635_v57 = vsel %vm627_vm0, %v2199_v52, 0.0 }
  0xee   :  { %v634_v54 = vadd.f32 %v633_v53, %v632_v51  ;;  %v2203_v55 = vpop.f32.mrf.mxu0  ;;  %v2245_v20 = vpop.f32.mrf.mxu1 }
  0xef   :  { %v641_v3 = vsel %vm627_vm0, %v2203_v55, 0.0  ;;  %4200 = vst [vmem:[#allocation6_spill] sm:$0xff] %v2245_v20 }
  0xf0   :  { %v636_v58 = vadd.f32 %v635_v57, %v634_v54  ;;  %v2209_v59 = vpop.f32.mrf.mxu0  ;;  %v2255_v27 = vpop.f32.mrf.mxu1 }
  0xf1   :  { %4199 = vst [vmem:[#allocation5_spill] sm:$0xff] %v2209_v59  ;;  %v637_v60 = vsel %vm627_vm0, %v2209_v59, 0.0  ;;  %4201 = vst [vmem:[#allocation7_spill] sm:$0xff] %v2255_v27 }
  0xf2   :  { %v638_v61 = vadd.f32 %v637_v60, %v636_v58  ;;  %v2213_v62 = vpop.f32.mrf.mxu0  ;;  %v2265_v34 = vpop.f32.mrf.mxu1 }
  0xf3   :  { %v647_v14 = vsel %vm627_vm0, %v2213_v62, 0.0  ;;  %4202 = vst [vmem:[#allocation8_spill] sm:$0xff] %v2265_v34 }
  0xf4   :  { %v640_v1 = vadd.f32 %v639_v0, %v638_v61  ;;  %v2219_v2 = vpop.f32.mrf.mxu0  ;;  %v2275_v46 = vpop.f32.mrf.mxu1 }
  0xf5   :  { %v643_v7 = vsel %vm627_vm0, %v2219_v2, 0.0  ;;  %4203 = vst [vmem:[#allocation9_spill] sm:$0xff] %v2275_v46 }
  0xf6   :  { %v642_v4 = vadd.f32 %v641_v3, %v640_v1  ;;  %v2223_v5 = vpop.f32.mrf.mxu0  ;;  %v2285_v58 = vpop.f32.mrf.mxu1 }
  0xf7   :  { %v649_v17 = vsel %vm627_vm0, %v2223_v5, 0.0  ;;  %4204 = vst [vmem:[#allocation10_spill] sm:$0xff] %v2285_v58 }
  0xf8   :  { %v644_v8 = vadd.f32 %v643_v7, %v642_v4  ;;  %v2229_v9 = vpop.f32.mrf.mxu0  ;;  %v2295_v7 = vpop.f32.mrf.mxu1 }
  0xf9   :  { %v645_v10 = vsel %vm627_vm0, %v2229_v9, 0.0  ;;  %4205 = vst [vmem:[#allocation11_spill] sm:$0xff] %v2295_v7 }
  0xfa   :  { %v646_v11 = vadd.f32 %v645_v10, %v644_v8  ;;  %v2233_v12 = vpop.f32.mrf.mxu0 }
  0xfb   :  { %v655_v28 = vsel %vm627_vm0, %v2233_v12, 0.0 }
  0xfc   :  { %v648_v15 = vadd.f32 %v647_v14, %v646_v11  ;;  %v2239_v16 = vpop.f32.mrf.mxu0 }
  0xfd   :  { %v651_v21 = vsel %vm627_vm0, %v2239_v16, 0.0 }
  0xfe   :  { %v650_v18 = vadd.f32 %v649_v17, %v648_v15  ;;  %v2243_v19 = vpop.f32.mrf.mxu0 }
  0xff   :  { %v657_v31 = vsel %vm627_vm0, %v2243_v19, 0.0 }
 0x100   :  { %v652_v22 = vadd.f32 %v651_v21, %v650_v18  ;;  %v2249_v23 = vpop.f32.mrf.mxu0  ;;  %v2305_v18 = vpop.f32.mrf.mxu1 }
 0x101   :  { %v653_v24 = vsel %vm627_vm0, %v2249_v23, 0.0  ;;  %4206 = vst [vmem:[#allocation12_spill] sm:$0xff] %v2305_v18 }
 0x102   :  { %v654_v25 = vadd.f32 %v653_v24, %v652_v22  ;;  %v2253_v26 = vpop.f32.mrf.mxu0 }
 0x103   :  { %v663_v47 = vsel %vm627_vm0, %v2253_v26, 0.0 }
 0x104   :  { %v656_v29 = vadd.f32 %v655_v28, %v654_v25  ;;  %v2259_v30 = vpop.f32.mrf.mxu0 }
 0x105   :  { %v659_v35 = vsel %vm627_vm0, %v2259_v30, 0.0 }
 0x106   :  { %v658_v32 = vadd.f32 %v657_v31, %v656_v29  ;;  %v2263_v33 = vpop.f32.mrf.mxu0  ;;  %v2315_v31 = vpop.f32.mrf.mxu1 }
 0x107   :  { %v665_v53 = vsel %vm627_vm0, %v2263_v33, 0.0  ;;  %4207 = vst [vmem:[#allocation13_spill] sm:$0xff] %v2315_v31 }
 0x108   :  { %v660_v36 = vadd.f32 %v659_v35, %v658_v32  ;;  %v2269_v37 = vpop.f32.mrf.mxu0 }
 0x109   :  { %v661_v38 = vsel %vm627_vm0, %v2269_v37, 0.0 }
 0x10a   :  { %v662_v39 = vadd.f32 %v661_v38, %v660_v36  ;;  %v2273_v45 = vpop.f32.mrf.mxu0 }
 0x10b   :  { %v671_v8 = vsel %vm627_vm0, %v2273_v45, 0.0 }
 0x10c   :  { %v664_v50 = vadd.f32 %v663_v47, %v662_v39  ;;  %v2279_v51 = vpop.f32.mrf.mxu0 }
 0x10d   :  { %v667_v60 = vsel %vm627_vm0, %v2279_v51, 0.0 }
 0x10e   :  { %v666_v54 = vadd.f32 %v665_v53, %v664_v50  ;;  %v2283_v57 = vpop.f32.mrf.mxu0  ;;  %v2325_v50 = vpop.f32.mrf.mxu1 }
 0x10f   :  { %v673_v14 = vsel %vm627_vm0, %v2283_v57, 0.0  ;;  %4208 = vst [vmem:[#allocation14_spill] sm:$0xff] %v2325_v50 }
 0x110   :  { %v668_v61 = vadd.f32 %v667_v60, %v666_v54  ;;  %v2289_v0 = vpop.f32.mrf.mxu0 }
 0x111   :  { %v669_v1 = vsel %vm627_vm0, %v2289_v0, 0.0 }
 0x112   :  { %v670_v3 = vadd.f32 %v669_v1, %v668_v61  ;;  %v2293_v4 = vpop.f32.mrf.mxu0 }
 0x113   :  { %v679_v32 = vsel %vm627_vm0, %v2293_v4, 0.0 }
 0x114   :  { %v672_v10 = vadd.f32 %v671_v8, %v670_v3  ;;  %v2299_v11 = vpop.f32.mrf.mxu0  ;;  %v2333_v3 = vpop.f32.mrf.mxu1 }
 0x115   :  { %v675_v21 = vsel %vm627_vm0, %v2299_v11, 0.0  ;;  %4209 = vst [vmem:[#allocation15_spill] sm:$0xff] %v2333_v3 }
 0x116   :  { %v674_v15 = vadd.f32 %v673_v14, %v672_v10  ;;  %v2303_v17 = vpop.f32.mrf.mxu0 }
 0x117   :  { %v681_v38 = vsel %vm627_vm0, %v2303_v17, 0.0 }
 0x118   :  { %v676_v22 = vadd.f32 %v675_v21, %v674_v15  ;;  %v2309_v24 = vpop.f32.mrf.mxu0  ;;  %v2339_v21 = vpop.f32.mrf.mxu1 }
 0x119   :  { %v677_v25 = vsel %vm627_vm0, %v2309_v24, 0.0  ;;  %4210 = vst [vmem:[#allocation16_spill] sm:$0xff] %v2339_v21 }
 0x11a   :  { %v678_v28 = vadd.f32 %v677_v25, %v676_v22  ;;  %v2313_v29 = vpop.f32.mrf.mxu0  ;;  %v691_v22 = vsel %vm627_vm0, %v2195_v49, 0.0 }
 0x11b   :  { %v687_v8 = vsel %vm627_vm0, %v2313_v29, 0.0 }
 0x11c   :  { %v680_v35 = vadd.f32 %v679_v32, %v678_v28  ;;  %v2319_v36 = vpop.f32.mrf.mxu0  ;;  %v693_v28 = vsel %vm627_vm0, %v2215_v63, 0.0 }
 0x11d   :  { %v683_v53 = vsel %vm627_vm0, %v2319_v36, 0.0 }
 0x11e   :  { %v682_v39 = vadd.f32 %v681_v38, %v680_v35  ;;  %v2323_v47 = vpop.f32.mrf.mxu0  ;;  %v2345_v35 = vpop.f32.mrf.mxu1  ;;  %v695_v38 = vsel %vm627_vm0, %v2185_v43, 0.0 }
 0x11f   :  { %v689_v14 = vsel %vm627_vm0, %v2323_v47, 0.0  ;;  %4211 = vst [vmem:[#allocation17_spill] sm:$0xff] %v2345_v35 }
 0x120   :  { %v684_v54 = vadd.f32 %v683_v53, %v682_v39  ;;  %v2329_v60 = vpop.f32.mrf.mxu0  ;;  %v697_v53 = vsel %vm627_vm0, %v2205_v56, 0.0 }
 0x121   :  { %v685_v61 = vsel %vm627_vm0, %v2329_v60, 0.0 }
 0x122   :  { %v686_v1 = vadd.f32 %v685_v61, %v684_v54  ;;  %v2351_v61 = vpop.f32.mrf.mxu1 }
 0x123   :  { %4212 = vst [vmem:[#allocation18_spill] sm:$0xff] %v2351_v61 }
 0x124   :  { %v688_v10 = vadd.f32 %v687_v8, %v686_v1  ;;  %v699_v1 = vsel %vm627_vm0, %v2235_v13, 0.0 }
 0x126   :  { %v690_v15 = vadd.f32 %v689_v14, %v688_v10  ;;  %v701_v10 = vsel %vm627_vm0, %v2255_v27, 0.0 }
 0x128   :  { %v692_v25 = vadd.f32 %v691_v22, %v690_v15  ;;  %v2357_v15 = vpop.f32.mrf.mxu1  ;;  %v703_v22 = vsel %vm627_vm0, %v2225_v6, 0.0 }
 0x129   :  { %4213 = vst [vmem:[#allocation19_spill] sm:$0xff] %v2357_v15 }
 0x12a   :  { %v694_v32 = vadd.f32 %v693_v28, %v692_v25  ;;  %v705_v28 = vsel %vm627_vm0, %v2245_v20, 0.0 }
 0x12c   :  { %v696_v39 = vadd.f32 %v695_v38, %v694_v32  ;;  %v2363_v38 = vpop.f32.mrf.mxu1 }
 0x12d   :  { %4214 = vst [vmem:[#allocation20_spill] sm:$0xff] %v2363_v38 }
 0x12e   :  { %v698_v54 = vadd.f32 %v697_v53, %v696_v39  ;;  %v707_v39 = vsel %vm627_vm0, %v2275_v46, 0.0  ;;  %v715_v46 = vsel %vm627_vm0, %v2315_v31, 0.0  ;;  %v723_v31 = vsel %vm627_vm0, %v2345_v35, 0.0 }
 0x130   :  { %v700_v8 = vadd.f32 %v699_v1, %v698_v54  ;;  %v709_v54 = vsel %vm627_vm0, %v2295_v7, 0.0 }
 0x132   :  { %v702_v14 = vadd.f32 %v701_v10, %v700_v8  ;;  %v2369_v8 = vpop.f32.mrf.mxu1  ;;  %v711_v10 = vsel %vm627_vm0, %v2265_v34, 0.0  ;;  %v719_v34 = vsel %vm627_vm0, %v2305_v18, 0.0  ;;  %v727_v18 = vsel %vm627_vm0, %v2339_v21, 0.0 }
 0x133   :  { %4215 = vst [vmem:[#allocation21_spill] sm:$0xff] %v2369_v8  ;;  %v731_v35 = vsel %vm627_vm0, %v2369_v8, 0.0  ;;  %v735_v21 = vsel %vm627_vm0, %v2363_v38, 0.0 }
 0x134   :  { %v704_v25 = vadd.f32 %v703_v22, %v702_v14  ;;  %v713_v22 = vsel %vm627_vm0, %v2285_v58, 0.0 }
 0x136   :  { %v706_v32 = vadd.f32 %v705_v28, %v704_v25  ;;  %v2375_v28 = vpop.f32.mrf.mxu1 }
 0x137   :  { %4216 = vst [vmem:[#allocation22_spill] sm:$0xff] %v2375_v28 }
 0x138   :  { %v708_v53 = vadd.f32 %v707_v39, %v706_v32  ;;  %v717_v39 = vsel %vm627_vm0, %v2333_v3, 0.0 }
 0x13a   :  { %v710_v1 = vadd.f32 %v709_v54, %v708_v53  ;;  %v2381_v54 = vpop.f32.mrf.mxu1 }
 0x13b   :  { %4217 = vst [vmem:[#allocation23_spill] sm:$0xff] %v2381_v54 }
 0x13c   :  { %v712_v14 = vadd.f32 %v711_v10, %v710_v1  ;;  %v721_v10 = vsel %vm627_vm0, %v2325_v50, 0.0 }
 0x13e   :  { %v714_v25 = vadd.f32 %v713_v22, %v712_v14  ;;  %v2387_v22 = vpop.f32.mrf.mxu1 }
 0x13f   :  { %4218 = vst [vmem:[#allocation24_spill] sm:$0xff] %v2387_v22  ;;  %v743_v38 = vsel %vm627_vm0, %v2387_v22, 0.0 }
 0x140   :  { %v716_v32 = vadd.f32 %v715_v46, %v714_v25  ;;  %v725_v25 = vsel %vm627_vm0, %v2357_v15, 0.0 }
 0x142   :  { %v718_v53 = vadd.f32 %v717_v39, %v716_v32  ;;  %v2393_v39 = vpop.f32.mrf.mxu1 }
 0x143   :  { %4219 = vst [vmem:[#allocation25_spill] sm:$0xff] %v2393_v39  ;;  %v739_v8 = vsel %vm627_vm0, %v2393_v39, 0.0 }
 0x144   :  { %v720_v1 = vadd.f32 %v719_v34, %v718_v53  ;;  %v729_v53 = vsel %vm627_vm0, %v2351_v61, 0.0 }
 0x146   :  { %v722_v14 = vadd.f32 %v721_v10, %v720_v1  ;;  %v2399_v10 = vpop.f32.mrf.mxu1 }
 0x147   :  { %4220 = vst [vmem:[#allocation26_spill] sm:$0xff] %v2399_v10 }
 0x148   :  { %v724_v46 = vadd.f32 %v723_v31, %v722_v14  ;;  %v733_v14 = vsel %vm627_vm0, %v2381_v54, 0.0 }
 0x14a   :  { %v726_v32 = vadd.f32 %v725_v25, %v724_v46  ;;  %v2405_v25 = vpop.f32.mrf.mxu1 }
 0x14b   :  { %4221 = vst [vmem:[#allocation27_spill] sm:$0xff] %v2405_v25 }
 0x14c   :  { %v728_v34 = vadd.f32 %v727_v18, %v726_v32  ;;  %v737_v32 = vsel %vm627_vm0, %v2375_v28, 0.0 }
 0x14e   :  { %v730_v1 = vadd.f32 %v729_v53, %v728_v34  ;;  %v2411_v53 = vpop.f32.mrf.mxu1 }
 0x14f   :  { %4222 = vst [vmem:[#allocation28_spill] sm:$0xff] %v2411_v53  ;;  %v751_v22 = vsel %vm627_vm0, %v2411_v53, 0.0 }
 0x150   :  { %v732_v31 = vadd.f32 %v731_v35, %v730_v1  ;;  %v741_v1 = vsel %vm627_vm0, %v2405_v25, 0.0 }
 0x152   :  { %v734_v46 = vadd.f32 %v733_v14, %v732_v31  ;;  %v2417_v14 = vpop.f32.mrf.mxu1 }
 0x153   :  { %4223 = vst [vmem:[#allocation29_spill] sm:$0xff] %v2417_v14  ;;  %v747_v39 = vsel %vm627_vm0, %v2417_v14, 0.0 }
 0x154   :  { %v736_v18 = vadd.f32 %v735_v21, %v734_v46  ;;  %v745_v46 = vsel %vm627_vm0, %v2399_v10, 0.0 }
 0x156   :  { %v738_v34 = vadd.f32 %v737_v32, %v736_v18  ;;  %v2423_v32 = vpop.f32.mrf.mxu1 }
 0x157   :  { %4224 = vst [vmem:[#allocation30_spill] sm:$0xff] %v2423_v32 }
 0x158   :  { %v740_v35 = vadd.f32 %v739_v8, %v738_v34  ;;  %v2427_v34 = vpop.f32.mrf.mxu1 }
 0x159   :  { %4225 = vst [vmem:[#allocation31_spill] sm:$0xff] %v2427_v34 }
 0x15a   :  { %v742_v31 = vadd.f32 %v741_v1, %v740_v35  ;;  %v749_v35 = vsel %vm627_vm0, %v2427_v34, 0.0 }
 0x15c   :  { %v744_v21 = vadd.f32 %v743_v38, %v742_v31  ;;  %v753_v31 = vsel %vm627_vm0, %v2423_v32, 0.0 }
 0x15e   :  { %v746_v18 = vadd.f32 %v745_v46, %v744_v21 }
 0x160   :  { %v748_v8 = vadd.f32 %v747_v39, %v746_v18 }
 0x162   :  { %v750_v1 = vadd.f32 %v749_v35, %v748_v8 }
 0x164   :  { %v752_v38 = vadd.f32 %v751_v22, %v750_v1 }
 0x166   :  { %v754_v21 = vadd.f32 %v753_v31, %v752_v38 }
 0x168   :  { %v755_v46 = vrot.slane %v754_v21, 4 }
 0x16a   :  { %v756_v10 = vadd.f32 %v755_v46, %v754_v21 }
 0x16c   :  { %v757_v25 = vrot.slane %v756_v10, 2 }
 0x16e   :  { %v758_v28 = vadd.f32 %v757_v25, %v756_v10 }
 0x170   :  { %v759_v14 = vrot.slane %v758_v28, 1 }
 0x172   :  { %v760_v39 = vadd.f32 %v759_v14, %v758_v28 }
 0x174   :  { %v2435_v18 = vmul.f32 0.001953125, %v760_v39 }
 0x176   :  { %v762_v34 = vsub.f32 %v2181_v41, %v2435_v18  ;;  %v763_v8 = vsub.f32 %v2187_v44, %v2435_v18  ;;  %v764_v22 = vsub.f32 %v2179_v40, %v2435_v18  ;;  %v765_v35 = vsub.f32 %v2183_v42, %v2435_v18 }
 0x177   :  { %v766_v10 = vsub.f32 %v2199_v52, %v2435_v18  ;;  %v767_v25 = vsub.f32 %v2209_v59, %v2435_v18  ;;  %v768_v39 = vsub.f32 %v2193_v48, %v2435_v18  ;;  %v769_v52 = vsub.f32 %v2203_v55, %v2435_v18 }
 0x178   :  { %v826_v1 = vmul.f32 %v762_v34, %v762_v34  ;;  %v827_v38 = vmul.f32 %v763_v8, %v763_v8  ;;  %v828_v28 = vmul.f32 %v764_v22, %v764_v22  ;;  %v829_v14 = vmul.f32 %v765_v35, %v765_v35 }
 0x179   :  { %v830_v40 = vmul.f32 %v766_v10, %v766_v10  ;;  %v831_v22 = vmul.f32 %v767_v25, %v767_v25  ;;  %v770_v35 = vsub.f32 %v2219_v2, %v2435_v18  ;;  %v771_v10 = vsub.f32 %v2229_v9, %v2435_v18 }
 0x17a   :  { %v890_v31 = vsel %vm627_vm0, %v826_v1, 0.0  ;;  %v891_v21 = vsel %vm627_vm0, %v827_v38, 0.0  ;;  %v893_v34 = vsel %vm627_vm0, %v828_v28, 0.0  ;;  %v895_v42 = vsel %vm627_vm0, %v829_v14, 0.0 }
 0x17b   :  { %v892_v46 = vadd.f32 %v891_v21, %v890_v31  ;;  %v832_v1 = vmul.f32 %v768_v39, %v768_v39  ;;  %v897_v38 = vsel %vm627_vm0, %v830_v40, 0.0  ;;  %v833_v21 = vmul.f32 %v769_v52, %v769_v52 }
 0x17c   :  { %v899_v28 = vsel %vm627_vm0, %v831_v22, 0.0  ;;  %v772_v25 = vsub.f32 %v2213_v62, %v2435_v18  ;;  %v773_v39 = vsub.f32 %v2223_v5, %v2435_v18  ;;  %v774_v52 = vsub.f32 %v2239_v16, %v2435_v18 }
 0x17d   :  { %v894_v8 = vadd.f32 %v893_v34, %v892_v46  ;;  %v834_v34 = vmul.f32 %v770_v35, %v770_v35  ;;  %v903_v40 = vsel %vm627_vm0, %v833_v21, 0.0  ;;  %v775_v35 = vsub.f32 %v2249_v23, %v2435_v18 }
 0x17f   :  { %v896_v59 = vadd.f32 %v895_v42, %v894_v8  ;;  %v901_v42 = vsel %vm627_vm0, %v832_v1, 0.0  ;;  %v835_v8 = vmul.f32 %v771_v10, %v771_v10  ;;  %v905_v22 = vsel %vm627_vm0, %v834_v34, 0.0 }
 0x180   :  { %v776_v10 = vsub.f32 %v2233_v12, %v2435_v18 }
 0x181   :  { %v898_v31 = vadd.f32 %v897_v38, %v896_v59  ;;  %v836_v38 = vmul.f32 %v772_v25, %v772_v25  ;;  %v907_v1 = vsel %vm627_vm0, %v835_v8, 0.0  ;;  %v777_v25 = vsub.f32 %v2243_v19, %v2435_v18 }
 0x183   :  { %v900_v46 = vadd.f32 %v899_v28, %v898_v31  ;;  %v837_v28 = vmul.f32 %v773_v39, %v773_v39  ;;  %v909_v21 = vsel %vm627_vm0, %v836_v38, 0.0  ;;  %v778_v39 = vsub.f32 %v2259_v30, %v2435_v18 }
 0x185   :  { %v902_v14 = vadd.f32 %v901_v42, %v900_v46  ;;  %v838_v42 = vmul.f32 %v774_v52, %v774_v52  ;;  %v911_v34 = vsel %vm627_vm0, %v837_v28, 0.0  ;;  %v779_v52 = vsub.f32 %v2269_v37, %v2435_v18 }
 0x187   :  { %v904_v59 = vadd.f32 %v903_v40, %v902_v14  ;;  %v839_v40 = vmul.f32 %v775_v35, %v775_v35  ;;  %v913_v8 = vsel %vm627_vm0, %v838_v42, 0.0  ;;  %v780_v35 = vsub.f32 %v2253_v26, %v2435_v18 }
 0x189   :  { %v906_v31 = vadd.f32 %v905_v22, %v904_v59  ;;  %v840_v22 = vmul.f32 %v776_v10, %v776_v10  ;;  %v915_v38 = vsel %vm627_vm0, %v839_v40, 0.0  ;;  %v781_v10 = vsub.f32 %v2263_v33, %v2435_v18 }
 0x18b   :  { %v908_v46 = vadd.f32 %v907_v1, %v906_v31  ;;  %v841_v1 = vmul.f32 %v777_v25, %v777_v25  ;;  %v917_v28 = vsel %vm627_vm0, %v840_v22, 0.0  ;;  %v782_v25 = vsub.f32 %v2279_v51, %v2435_v18 }
 0x18d   :  { %v910_v14 = vadd.f32 %v909_v21, %v908_v46  ;;  %v842_v21 = vmul.f32 %v778_v39, %v778_v39  ;;  %v919_v42 = vsel %vm627_vm0, %v841_v1, 0.0  ;;  %v783_v39 = vsub.f32 %v2289_v0, %v2435_v18 }
 0x18f   :  { %v912_v59 = vadd.f32 %v911_v34, %v910_v14  ;;  %v843_v34 = vmul.f32 %v779_v52, %v779_v52  ;;  %v921_v40 = vsel %vm627_vm0, %v842_v21, 0.0  ;;  %v784_v52 = vsub.f32 %v2273_v45, %v2435_v18 }
 0x191   :  { %v914_v31 = vadd.f32 %v913_v8, %v912_v59  ;;  %v844_v8 = vmul.f32 %v780_v35, %v780_v35  ;;  %v923_v22 = vsel %vm627_vm0, %v843_v34, 0.0  ;;  %v785_v35 = vsub.f32 %v2283_v57, %v2435_v18 }
 0x193   :  { %v916_v46 = vadd.f32 %v915_v38, %v914_v31  ;;  %v845_v38 = vmul.f32 %v781_v10, %v781_v10  ;;  %v925_v1 = vsel %vm627_vm0, %v844_v8, 0.0  ;;  %v786_v10 = vsub.f32 %v2299_v11, %v2435_v18 }
 0x195   :  { %v918_v14 = vadd.f32 %v917_v28, %v916_v46  ;;  %v846_v28 = vmul.f32 %v782_v25, %v782_v25  ;;  %v927_v21 = vsel %vm627_vm0, %v845_v38, 0.0  ;;  %v787_v25 = vsub.f32 %v2309_v24, %v2435_v18 }
 0x197   :  { %v920_v59 = vadd.f32 %v919_v42, %v918_v14  ;;  %v847_v42 = vmul.f32 %v783_v39, %v783_v39  ;;  %v929_v34 = vsel %vm627_vm0, %v846_v28, 0.0  ;;  %v788_v39 = vsub.f32 %v2293_v4, %v2435_v18 }
 0x199   :  { %v922_v31 = vadd.f32 %v921_v40, %v920_v59  ;;  %v848_v40 = vmul.f32 %v784_v52, %v784_v52  ;;  %v931_v8 = vsel %vm627_vm0, %v847_v42, 0.0  ;;  %v789_v52 = vsub.f32 %v2303_v17, %v2435_v18 }
 0x19b   :  { %v924_v46 = vadd.f32 %v923_v22, %v922_v31  ;;  %v849_v22 = vmul.f32 %v785_v35, %v785_v35  ;;  %v933_v38 = vsel %vm627_vm0, %v848_v40, 0.0  ;;  %v790_v35 = vsub.f32 %v2319_v36, %v2435_v18 }
 0x19d   :  { %v926_v14 = vadd.f32 %v925_v1, %v924_v46  ;;  %v850_v1 = vmul.f32 %v786_v10, %v786_v10  ;;  %v935_v28 = vsel %vm627_vm0, %v849_v22, 0.0  ;;  %v791_v10 = vsub.f32 %v2329_v60, %v2435_v18 }
 0x19f   :  { %v928_v59 = vadd.f32 %v927_v21, %v926_v14  ;;  %v851_v21 = vmul.f32 %v787_v25, %v787_v25  ;;  %v937_v42 = vsel %vm627_vm0, %v850_v1, 0.0  ;;  %v792_v25 = vsub.f32 %v2313_v29, %v2435_v18 }
 0x1a1   :  { %v930_v31 = vadd.f32 %v929_v34, %v928_v59  ;;  %v852_v34 = vmul.f32 %v788_v39, %v788_v39  ;;  %v939_v40 = vsel %vm627_vm0, %v851_v21, 0.0  ;;  %v793_v39 = vsub.f32 %v2323_v47, %v2435_v18 }
 0x1a3   :  { %v932_v46 = vadd.f32 %v931_v8, %v930_v31  ;;  %v853_v8 = vmul.f32 %v789_v52, %v789_v52  ;;  %v941_v22 = vsel %vm627_vm0, %v852_v34, 0.0  ;;  %v794_v52 = vsub.f32 %v2195_v49, %v2435_v18 }
 0x1a5   :  { %v934_v14 = vadd.f32 %v933_v38, %v932_v46  ;;  %v854_v38 = vmul.f32 %v790_v35, %v790_v35  ;;  %v943_v1 = vsel %vm627_vm0, %v853_v8, 0.0  ;;  %v795_v35 = vsub.f32 %v2215_v63, %v2435_v18 }
 0x1a7   :  { %v936_v59 = vadd.f32 %v935_v28, %v934_v14  ;;  %v855_v28 = vmul.f32 %v791_v10, %v791_v10  ;;  %v945_v21 = vsel %vm627_vm0, %v854_v38, 0.0  ;;  %v796_v10 = vsub.f32 %v2185_v43, %v2435_v18 }
 0x1a9   :  { %v938_v31 = vadd.f32 %v937_v42, %v936_v59  ;;  %v856_v42 = vmul.f32 %v792_v25, %v792_v25  ;;  %v947_v34 = vsel %vm627_vm0, %v855_v28, 0.0  ;;  %v797_v25 = vsub.f32 %v2205_v56, %v2435_v18 }
 0x1ab   :  { %v940_v46 = vadd.f32 %v939_v40, %v938_v31  ;;  %v857_v40 = vmul.f32 %v793_v39, %v793_v39  ;;  %v949_v8 = vsel %vm627_vm0, %v856_v42, 0.0  ;;  %v798_v39 = vsub.f32 %v2235_v13, %v2435_v18 }
 0x1ad   :  { %v942_v14 = vadd.f32 %v941_v22, %v940_v46  ;;  %v858_v22 = vmul.f32 %v794_v52, %v794_v52  ;;  %v951_v38 = vsel %vm627_vm0, %v857_v40, 0.0  ;;  %v799_v52 = vsub.f32 %v2255_v27, %v2435_v18 }
 0x1af   :  { %v944_v59 = vadd.f32 %v943_v1, %v942_v14  ;;  %v859_v1 = vmul.f32 %v795_v35, %v795_v35  ;;  %v953_v28 = vsel %vm627_vm0, %v858_v22, 0.0  ;;  %v800_v35 = vsub.f32 %v2225_v6, %v2435_v18 }
 0x1b1   :  { %v946_v31 = vadd.f32 %v945_v21, %v944_v59  ;;  %v860_v21 = vmul.f32 %v796_v10, %v796_v10  ;;  %v955_v42 = vsel %vm627_vm0, %v859_v1, 0.0  ;;  %v801_v10 = vsub.f32 %v2245_v20, %v2435_v18 }
 0x1b2   :  { %v864_v27 = vmul.f32 %v800_v35, %v800_v35  ;;  %v805_v35 = vsub.f32 %v2285_v58, %v2435_v18 }
 0x1b3   :  { %v948_v46 = vadd.f32 %v947_v34, %v946_v31  ;;  %v861_v34 = vmul.f32 %v797_v25, %v797_v25  ;;  %v957_v40 = vsel %vm627_vm0, %v860_v21, 0.0 }
 0x1b5   :  { %v950_v14 = vadd.f32 %v949_v8, %v948_v46  ;;  %v862_v8 = vmul.f32 %v798_v39, %v798_v39  ;;  %v959_v22 = vsel %vm627_vm0, %v861_v34, 0.0  ;;  %v803_v39 = vsub.f32 %v2295_v7, %v2435_v18 }
 0x1b6   :  { %v965_v34 = vsel %vm627_vm0, %v864_v27, 0.0 }
 0x1b7   :  { %v952_v59 = vadd.f32 %v951_v38, %v950_v14  ;;  %v863_v38 = vmul.f32 %v799_v52, %v799_v52  ;;  %v961_v1 = vsel %vm627_vm0, %v862_v8, 0.0 }
 0x1b9   :  { %v954_v31 = vadd.f32 %v953_v28, %v952_v59  ;;  %v4226_v28 = vld [vmem:[#allocation9_spill] sm:$0xff]  ;;  %v963_v21 = vsel %vm627_vm0, %v863_v38, 0.0 }
 0x1ba   :  { %v802_v25 = vsub.f32 %v4226_v28, %v2435_v18 }
 0x1bb   :  { %v956_v46 = vadd.f32 %v955_v42, %v954_v31  ;;  %v865_v42 = vmul.f32 %v801_v10, %v801_v10 }
 0x1bc   :  { %v866_v20 = vmul.f32 %v802_v25, %v802_v25  ;;  %v807_v25 = vsub.f32 %v2333_v3, %v2435_v18 }
 0x1bd   :  { %v958_v14 = vadd.f32 %v957_v40, %v956_v46  ;;  %v4227_v40 = vld [vmem:[#allocation8_spill] sm:$0xff]  ;;  %v967_v8 = vsel %vm627_vm0, %v865_v42, 0.0 }
 0x1be   :  { %v804_v52 = vsub.f32 %v4227_v40, %v2435_v18  ;;  %v969_v38 = vsel %vm627_vm0, %v866_v20, 0.0 }
 0x1bf   :  { %v960_v59 = vadd.f32 %v959_v22, %v958_v14  ;;  %v867_v22 = vmul.f32 %v803_v39, %v803_v39 }
 0x1c0   :  { %v868_v7 = vmul.f32 %v804_v52, %v804_v52  ;;  %v809_v52 = vsub.f32 %v2325_v50, %v2435_v18 }
 0x1c1   :  { %v962_v31 = vadd.f32 %v961_v1, %v960_v59  ;;  %v4228_v1 = vld [vmem:[#allocation13_spill] sm:$0xff]  ;;  %v971_v27 = vsel %vm627_vm0, %v867_v22, 0.0 }
 0x1c2   :  { %v806_v10 = vsub.f32 %v4228_v1, %v2435_v18  ;;  %v973_v42 = vsel %vm627_vm0, %v868_v7, 0.0 }
 0x1c3   :  { %v964_v46 = vadd.f32 %v963_v21, %v962_v31  ;;  %v869_v21 = vmul.f32 %v805_v35, %v805_v35 }
 0x1c4   :  { %v870_v58 = vmul.f32 %v806_v10, %v806_v10  ;;  %v811_v10 = vsub.f32 %v2357_v15, %v2435_v18 }
 0x1c5   :  { %v966_v14 = vadd.f32 %v965_v34, %v964_v46  ;;  %v4229_v34 = vld [vmem:[#allocation12_spill] sm:$0xff]  ;;  %v975_v20 = vsel %vm627_vm0, %v869_v21, 0.0 }
 0x1c6   :  { %v808_v39 = vsub.f32 %v4229_v34, %v2435_v18  ;;  %v977_v22 = vsel %vm627_vm0, %v870_v58, 0.0 }
 0x1c7   :  { %v968_v59 = vadd.f32 %v967_v8, %v966_v14  ;;  %v871_v8 = vmul.f32 %v807_v25, %v807_v25 }
 0x1c8   :  { %v872_v3 = vmul.f32 %v808_v39, %v808_v39  ;;  %v813_v39 = vsub.f32 %v2351_v61, %v2435_v18 }
 0x1c9   :  { %v970_v31 = vadd.f32 %v969_v38, %v968_v59  ;;  %v4230_v38 = vld [vmem:[#allocation17_spill] sm:$0xff]  ;;  %v979_v7 = vsel %vm627_vm0, %v871_v8, 0.0 }
 0x1ca   :  { %v810_v35 = vsub.f32 %v4230_v38, %v2435_v18  ;;  %v981_v21 = vsel %vm627_vm0, %v872_v3, 0.0 }
 0x1cb   :  { %v972_v46 = vadd.f32 %v971_v27, %v970_v31  ;;  %v873_v27 = vmul.f32 %v809_v52, %v809_v52 }
 0x1cc   :  { %v874_v50 = vmul.f32 %v810_v35, %v810_v35  ;;  %v815_v35 = vsub.f32 %v2381_v54, %v2435_v18 }
 0x1cd   :  { %v974_v14 = vadd.f32 %v973_v42, %v972_v46  ;;  %v4231_v42 = vld [vmem:[#allocation16_spill] sm:$0xff]  ;;  %v983_v58 = vsel %vm627_vm0, %v873_v27, 0.0 }
 0x1ce   :  { %v812_v25 = vsub.f32 %v4231_v42, %v2435_v18  ;;  %v985_v8 = vsel %vm627_vm0, %v874_v50, 0.0 }
 0x1cf   :  { %v976_v59 = vadd.f32 %v975_v20, %v974_v14  ;;  %v875_v20 = vmul.f32 %v811_v10, %v811_v10 }
 0x1d0   :  { %v876_v15 = vmul.f32 %v812_v25, %v812_v25 }
 0x1d1   :  { %v978_v31 = vadd.f32 %v977_v22, %v976_v59  ;;  %v4232_v22 = vld [vmem:[#allocation21_spill] sm:$0xff]  ;;  %v987_v3 = vsel %vm627_vm0, %v875_v20, 0.0 }
 0x1d2   :  { %v814_v52 = vsub.f32 %v4232_v22, %v2435_v18  ;;  %v989_v27 = vsel %vm627_vm0, %v876_v15, 0.0  ;;  %v879_v22 = vmul.f32 %v815_v35, %v815_v35 }
 0x1d3   :  { %v980_v46 = vadd.f32 %v979_v7, %v978_v31  ;;  %v877_v7 = vmul.f32 %v813_v39, %v813_v39 }
 0x1d4   :  { %v878_v61 = vmul.f32 %v814_v52, %v814_v52  ;;  %v995_v15 = vsel %vm627_vm0, %v879_v22, 0.0 }
 0x1d5   :  { %v982_v14 = vadd.f32 %v981_v21, %v980_v46  ;;  %v4233_v21 = vld [vmem:[#allocation20_spill] sm:$0xff]  ;;  %v991_v50 = vsel %vm627_vm0, %v877_v7, 0.0 }
 0x1d6   :  { %v816_v10 = vsub.f32 %v4233_v21, %v2435_v18  ;;  %v993_v20 = vsel %vm627_vm0, %v878_v61, 0.0 }
 0x1d7   :  { %v984_v59 = vadd.f32 %v983_v58, %v982_v14  ;;  %v4234_v58 = vld [vmem:[#allocation22_spill] sm:$0xff] }
 0x1d8   :  { %v817_v25 = vsub.f32 %v4234_v58, %v2435_v18  ;;  %v880_v54 = vmul.f32 %v816_v10, %v816_v10 }
 0x1d9   :  { %v986_v31 = vadd.f32 %v985_v8, %v984_v59  ;;  %v4235_v8 = vld [vmem:[#allocation25_spill] sm:$0xff] }
 0x1da   :  { %v818_v39 = vsub.f32 %v4235_v8, %v2435_v18  ;;  %v881_v21 = vmul.f32 %v817_v25, %v817_v25  ;;  %v997_v7 = vsel %vm627_vm0, %v880_v54, 0.0 }
 0x1db   :  { %v988_v46 = vadd.f32 %v987_v3, %v986_v31  ;;  %v4236_v3 = vld [vmem:[#allocation27_spill] sm:$0xff] }
 0x1dc   :  { %v819_v52 = vsub.f32 %v4236_v3, %v2435_v18  ;;  %v882_v58 = vmul.f32 %v818_v39, %v818_v39  ;;  %v999_v61 = vsel %vm627_vm0, %v881_v21, 0.0 }
 0x1dd   :  { %v990_v14 = vadd.f32 %v989_v27, %v988_v46  ;;  %v4237_v27 = vld [vmem:[#allocation24_spill] sm:$0xff] }
 0x1de   :  { %v820_v35 = vsub.f32 %v4237_v27, %v2435_v18  ;;  %v883_v8 = vmul.f32 %v819_v52, %v819_v52  ;;  %v1001_v22 = vsel %vm627_vm0, %v882_v58, 0.0  ;;  %v824_v52 = vsub.f32 %v2411_v53, %v2435_v18 }
 0x1df   :  { %v992_v59 = vadd.f32 %v991_v50, %v990_v14  ;;  %v4238_v50 = vld [vmem:[#allocation26_spill] sm:$0xff] }
 0x1e0   :  { %v821_v10 = vsub.f32 %v4238_v50, %v2435_v18  ;;  %v884_v3 = vmul.f32 %v820_v35, %v820_v35  ;;  %v1003_v54 = vsel %vm627_vm0, %v883_v8, 0.0  ;;  %v825_v35 = vsub.f32 %v2423_v32, %v2435_v18 }
 0x1e1   :  { %v994_v31 = vadd.f32 %v993_v20, %v992_v59  ;;  %v4239_v20 = vld [vmem:[#allocation29_spill] sm:$0xff] }
 0x1e2   :  { %v822_v25 = vsub.f32 %v4239_v20, %v2435_v18  ;;  %v885_v27 = vmul.f32 %v821_v10, %v821_v10  ;;  %v1005_v21 = vsel %vm627_vm0, %v884_v3, 0.0  ;;  %v889_v8 = vmul.f32 %v825_v35, %v825_v35 }
 0x1e3   :  { %v996_v46 = vadd.f32 %v995_v15, %v994_v31  ;;  %v4240_v15 = vld [vmem:[#allocation31_spill] sm:$0xff] }
 0x1e4   :  { %v823_v39 = vsub.f32 %v4240_v15, %v2435_v18  ;;  %v1007_v58 = vsel %vm627_vm0, %v885_v27, 0.0  ;;  %v1015_v3 = vsel %vm627_vm0, %v889_v8, 0.0 }
 0x1e5   :  { %v998_v14 = vadd.f32 %v997_v7, %v996_v46  ;;  %v886_v7 = vmul.f32 %v822_v25, %v822_v25 }
 0x1e7   :  { %v1000_v59 = vadd.f32 %v999_v61, %v998_v14  ;;  %v887_v61 = vmul.f32 %v823_v39, %v823_v39  ;;  %v1009_v10 = vsel %vm627_vm0, %v886_v7, 0.0  ;;  %v1032_v7 = vlaneseq }
 0x1e9   :  { %v1002_v31 = vadd.f32 %v1001_v22, %v1000_v59  ;;  %v888_v22 = vmul.f32 %v824_v52, %v824_v52 }
 0x1eb   :  { %v1004_v46 = vadd.f32 %v1003_v54, %v1002_v31  ;;  %v1011_v31 = vsel %vm627_vm0, %v887_v61, 0.0  ;;  %v1013_v25 = vsel %vm627_vm0, %v888_v22, 0.0  ;;  %v1033_v61 = vshrl.u32 %v1032_v7, 7  ;;  %v4245_v7 = vld [vmem:[#allocation7_spill] sm:$0xff] }
 0x1ed   :  { %v1006_v14 = vadd.f32 %v1005_v21, %v1004_v46  ;;  %v1034_v22 = vsub.s32 0, %v1033_v61 }
 0x1ef   :  { %v1008_v59 = vadd.f32 %v1007_v58, %v1006_v14 }
 0x1f1   :  { %v1010_v15 = vadd.f32 %v1009_v10, %v1008_v59 }
 0x1f3   :  { %v1012_v54 = vadd.f32 %v1011_v31, %v1010_v15  ;;  %v1024_v15 = vld [vmem:[%s4115_s2] sm:$0x1] }
 0x1f5   :  { %v1014_v53 = vadd.f32 %v1013_v25, %v1012_v54  ;;  %v4241_v54 = vld [vmem:[#allocation2_spill] sm:$0xff] }
 0x1f7   :  { %v1016_v46 = vadd.f32 %v1015_v3, %v1014_v53 }
 0x1f9   :  { %v1017_v21 = vrot.slane %v1016_v46, 4 }
 0x1fb   :  { %v1018_v32 = vadd.f32 %v1017_v21, %v1016_v46  ;;  %v4243_v46 = vld [vmem:[#allocation4_spill] sm:$0xff] }
 0x1fd   :  { %v1019_v39 = vrot.slane %v1018_v32, 2 }
 0x1ff   :  { %v1020_v20 = vadd.f32 %v1019_v39, %v1018_v32  ;;  %v1028_v32 = vld [vmem:[%s4116_s3] sm:$0x1]  ;;  %v4244_v39 = vld [vmem:[#allocation5_spill] sm:$0xff] }
 0x201   :  { %v1021_v27 = vrot.slane %v1020_v20, 1 }
 0x203   :  { %v1022_v14 = vadd.f32 %v1021_v27, %v1020_v20 }
 0x205   :  { %v1023_v52 = vmul.f32 0.001953125, %v1022_v14 }
 0x207   :  { %v1025_v58 = vadd.f32 1e-05, %v1023_v52 }
 0x209   :  { %2032 = vrsqrt.f32 %v1025_v58 }
 0x216   :  { %v2033_v35 = vpop.eup %2032 }
 0x217   :  { %v1027_v59 = vmul.f32 %v2033_v35, %v1024_v15  ;;  %v4246_v35 = vld [vmem:[#allocation6_spill] sm:$0xff]  ;;  %v4247_v15 = vld [vmem:[#allocation11_spill] sm:$0xff] }
 0x219   :  { %v1029_v53 = vmul.f32 %v1027_v59, %v2435_v18  ;;  %v2636_v10 = vrot.slane %v1027_v59, %v1034_v22  ;;  %v4242_v18 = vld [vmem:[#allocation3_spill] sm:$0xff]  ;;  %v4248_v59 = vld [vmem:[#allocation10_spill] sm:$0xff] }
 0x21b   :  { %v1030_v20 = vsub.f32 %v1028_v32, %v1029_v53  ;;  %v2640_v8 = vmul.f32 %v2636_v10, %v2181_v41  ;;  %v2644_v31 = vmul.f32 %v2636_v10, %v2187_v44  ;;  %v2648_v25 = vmul.f32 %v4241_v54, %v2636_v10  ;;  %v4249_v32 = vld [vmem:[#allocation15_spill] sm:$0xff] }
 0x21c   :  { %v2652_v3 = vmul.f32 %v4242_v18, %v2636_v10  ;;  %v2656_v21 = vmul.f32 %v2636_v10, %v4243_v46  ;;  %v2660_v41 = vmul.f32 %v2636_v10, %v4244_v39  ;;  %v2664_v44 = vmul.f32 %v2193_v48, %v2636_v10  ;;  %v4250_v18 = vld [vmem:[#allocation14_spill] sm:$0xff]  ;;  %v4251_v39 = vld [vmem:[#allocation19_spill] sm:$0xff] }
 0x21d   :  { %v2668_v27 = vmul.f32 %v2203_v55, %v2636_v10  ;;  %v2672_v14 = vmul.f32 %v2636_v10, %v2219_v2  ;;  %v2676_v52 = vmul.f32 %v2636_v10, %v2229_v9  ;;  %v2680_v58 = vmul.f32 %v2213_v62, %v2636_v10 }
 0x21e   :  { %v2684_v48 = vmul.f32 %v2223_v5, %v2636_v10  ;;  %v2688_v55 = vmul.f32 %v2636_v10, %v2239_v16  ;;  %v2692_v2 = vmul.f32 %v2636_v10, %v2249_v23  ;;  %v2696_v9 = vmul.f32 %v2233_v12, %v2636_v10 }
 0x21f   :  { %v2700_v62 = vmul.f32 %v2243_v19, %v2636_v10  ;;  %v2704_v5 = vmul.f32 %v2636_v10, %v2259_v30  ;;  %v2708_v16 = vmul.f32 %v2636_v10, %v2269_v37  ;;  %v2712_v23 = vmul.f32 %v2253_v26, %v2636_v10 }
 0x220   :  { %v2716_v12 = vmul.f32 %v2263_v33, %v2636_v10  ;;  %v2720_v19 = vmul.f32 %v2636_v10, %v2279_v51  ;;  %v2724_v30 = vmul.f32 %v2636_v10, %v2289_v0  ;;  %v2728_v37 = vmul.f32 %v2273_v45, %v2636_v10 }
 0x221   :  { %v2732_v26 = vmul.f32 %v2283_v57, %v2636_v10  ;;  %v2736_v33 = vmul.f32 %v2636_v10, %v2299_v11  ;;  %v2740_v51 = vmul.f32 %v2636_v10, %v2309_v24  ;;  %v2744_v0 = vmul.f32 %v2293_v4, %v2636_v10 }
 0x222   :  { %v2748_v45 = vmul.f32 %v2303_v17, %v2636_v10  ;;  %v2752_v57 = vmul.f32 %v2636_v10, %v2319_v36  ;;  %v2756_v11 = vmul.f32 %v2636_v10, %v2329_v60  ;;  %v2760_v24 = vmul.f32 %v2313_v29, %v2636_v10 }
 0x223   :  { %v2764_v4 = vmul.f32 %v2323_v47, %v2636_v10  ;;  %v2768_v17 = vmul.f32 %v2636_v10, %v2195_v49  ;;  %v2772_v36 = vmul.f32 %v2636_v10, %v2215_v63  ;;  %v2776_v60 = vmul.f32 %v2185_v43, %v2636_v10 }
 0x224   :  { %v2780_v29 = vmul.f32 %v2205_v56, %v2636_v10  ;;  %v2784_v47 = vmul.f32 %v2636_v10, %v2235_v13  ;;  %v2788_v49 = vmul.f32 %v2636_v10, %v4245_v7  ;;  %v2792_v63 = vmul.f32 %v2225_v6, %v2636_v10 }
 0x225   :  { %v2796_v43 = vmul.f32 %v4246_v35, %v2636_v10  ;;  %v2800_v56 = vmul.f32 %v2636_v10, %v4226_v28  ;;  %v2804_v13 = vmul.f32 %v2636_v10, %v4247_v15  ;;  %v2808_v61 = vmul.f32 %v4227_v40, %v2636_v10 }
 0x226   :  { %v2812_v6 = vmul.f32 %v4248_v59, %v2636_v10  ;;  %v2816_v53 = vmul.f32 %v2636_v10, %v4228_v1  ;;  %v2820_v28 = vmul.f32 %v2636_v10, %v4249_v32  ;;  %v2824_v54 = vmul.f32 %v4229_v34, %v2636_v10  ;;  %v4253_v34 = vld [vmem:[#allocation18_spill] sm:$0xff]  ;;  %v4255_v59 = vld [vmem:[#allocation21_spill] sm:$0xff] }
 0x227   :  { %v2828_v40 = vmul.f32 %v4250_v18, %v2636_v10  ;;  %v2832_v46 = vmul.f32 %v2636_v10, %v4230_v38  ;;  %v2836_v1 = vmul.f32 %v2636_v10, %v4251_v39  ;;  %v2840_v7 = vmul.f32 %v4231_v42, %v2636_v10  ;;  %v4257_v38 = vld [vmem:[#allocation23_spill] sm:$0xff]  ;;  %v4258_v39 = vld [vmem:[#allocation20_spill] sm:$0xff]  ;;  %v4260_v42 = vld [vmem:[#allocation22_spill] sm:$0xff] }
 0x228   :  { %v2842_v35 = vrot.slane %v1030_v20, %v1034_v22  ;;  %v2846_v15 = vmul.f32 %v4253_v34, %v2636_v10  ;;  %v2850_v32 = vmul.f32 %v2636_v10, %v4255_v59  ;;  %v2854_v18 = vmul.f32 %v2636_v10, %v4257_v38  ;;  %v4262_v20 = vld [vmem:[#allocation25_spill] sm:$0xff] }
 0x229   :  { %4252 = vst [vmem:[#allocation9_spill] sm:$0xff] %v2836_v1  ;;  %v2858_v1 = vmul.f32 %v4258_v39, %v2636_v10  ;;  %v2862_v22 = vmul.f32 %v4260_v42, %v2636_v10  ;;  %v2866_v34 = vmul.f32 %v2636_v10, %v4262_v20  ;;  %v2878_v39 = vmul.f32 %v4238_v50, %v2636_v10 }
 0x22a   :  { %4254 = vst [vmem:[#allocation8_spill] sm:$0xff] %v2846_v15  ;;  %4256 = vst [vmem:[#allocation13_spill] sm:$0xff] %v2850_v32  ;;  %v4264_v15 = vld [vmem:[#allocation27_spill] sm:$0xff]  ;;  %v4266_v32 = vld [vmem:[#allocation24_spill] sm:$0xff]  ;;  %v2898_v50 = vadd.f32 %v2842_v35, %v2640_v8  ;;  %v2918_v8 = vadd.f32 %v2842_v35, %v2660_v41  ;;  %v2938_v41 = vadd.f32 %v2842_v35, %v2680_v58 }
 0x22b   :  { %4259 = vst [vmem:[#allocation12_spill] sm:$0xff] %v2858_v1  ;;  %4261 = vst [vmem:[#allocation17_spill] sm:$0xff] %v2862_v22  ;;  %v2870_v59 = vmul.f32 %v2636_v10, %v4264_v15  ;;  %v2874_v38 = vmul.f32 %v4266_v32, %v2636_v10  ;;  %v4267_v1 = vld [vmem:[#allocation29_spill] sm:$0xff]  ;;  %v4268_v22 = vld [vmem:[#allocation31_spill] sm:$0xff]  ;;  %v2958_v58 = vadd.f32 %v2842_v35, %v2700_v62 }
 0x22c   :  { %4263 = vst [vmem:[#allocation16_spill] sm:$0xff] %v2866_v34  ;;  %v2882_v42 = vmul.f32 %v2636_v10, %v4267_v1  ;;  %v2886_v20 = vmul.f32 %v2636_v10, %v4268_v22  ;;  %v4269_v34 = vld [vmem:[#allocation28_spill] sm:$0xff]  ;;  %v2902_v1 = vadd.f32 %v2842_v35, %v2644_v31  ;;  %v2906_v22 = vadd.f32 %v2842_v35, %v2648_v25 }
 0x22d   :  { %4265 = vst [vmem:[#allocation26_spill] sm:$0xff] %v2870_v59  ;;  %v2890_v15 = vmul.f32 %v4269_v34, %v2636_v10  ;;  %v4270_v59 = vld [vmem:[#allocation30_spill] sm:$0xff]  ;;  %v2910_v34 = vadd.f32 %v2842_v35, %v2652_v3  ;;  %v2922_v31 = vadd.f32 %v2842_v35, %v2664_v44  ;;  %v2926_v25 = vadd.f32 %v2842_v35, %v2668_v27 }
 0x22e   :  { %v2894_v32 = vmul.f32 %v4270_v59, %v2636_v10  ;;  %v2914_v10 = vadd.f32 %v2842_v35, %v2656_v21  ;;  %v2930_v3 = vadd.f32 %v2842_v35, %v2672_v14  ;;  %v2934_v21 = vadd.f32 %v2842_v35, %v2676_v52 }
 0x22f   :  { %v2942_v44 = vadd.f32 %v2842_v35, %v2684_v48  ;;  %v2946_v27 = vadd.f32 %v2842_v35, %v2688_v55  ;;  %v2950_v14 = vadd.f32 %v2842_v35, %v2692_v2  ;;  %v2954_v52 = vadd.f32 %v2842_v35, %v2696_v9 }
 0x230   :  { %v2962_v48 = vadd.f32 %v2842_v35, %v2704_v5  ;;  %v2966_v55 = vadd.f32 %v2842_v35, %v2708_v16  ;;  %v2970_v2 = vadd.f32 %v2842_v35, %v2712_v23  ;;  %v2974_v9 = vadd.f32 %v2842_v35, %v2716_v12  ;;  %v4275_v59 = vld [vmem:[#allocation9_spill] sm:$0xff] }
 0x231   :  { %v2978_v62 = vadd.f32 %v2842_v35, %v2720_v19  ;;  %v2982_v5 = vadd.f32 %v2842_v35, %v2724_v30  ;;  %v2986_v16 = vadd.f32 %v2842_v35, %v2728_v37  ;;  %v2990_v23 = vadd.f32 %v2842_v35, %v2732_v26 }
 0x232   :  { %v2994_v12 = vadd.f32 %v2842_v35, %v2736_v33  ;;  %v2998_v19 = vadd.f32 %v2842_v35, %v2740_v51  ;;  %v3002_v30 = vadd.f32 %v2842_v35, %v2744_v0  ;;  %v3006_v37 = vadd.f32 %v2842_v35, %v2748_v45 }
 0x233   :  { %v3010_v26 = vadd.f32 %v2842_v35, %v2752_v57  ;;  %v3014_v33 = vadd.f32 %v2842_v35, %v2756_v11  ;;  %v3018_v51 = vadd.f32 %v2842_v35, %v2760_v24  ;;  %v3022_v0 = vadd.f32 %v2842_v35, %v2764_v4 }
 0x234   :  { %v3026_v45 = vadd.f32 %v2842_v35, %v2768_v17  ;;  %v3030_v57 = vadd.f32 %v2842_v35, %v2772_v36  ;;  %v3034_v11 = vadd.f32 %v2842_v35, %v2776_v60  ;;  %v3038_v24 = vadd.f32 %v2842_v35, %v2780_v29 }
 0x235   :  { %v3042_v4 = vadd.f32 %v2842_v35, %v2784_v47  ;;  %v3046_v17 = vadd.f32 %v2842_v35, %v2788_v49  ;;  %v3050_v36 = vadd.f32 %v2842_v35, %v2792_v63  ;;  %v3054_v60 = vadd.f32 %v2842_v35, %v2796_v43 }
 0x236   :  { %v3058_v29 = vadd.f32 %v2842_v35, %v2800_v56  ;;  %v3062_v47 = vadd.f32 %v2842_v35, %v2804_v13  ;;  %v3066_v49 = vadd.f32 %v2842_v35, %v2808_v61  ;;  %v3070_v63 = vadd.f32 %v2842_v35, %v2812_v6 }
 0x237   :  { %v3074_v43 = vadd.f32 %v2842_v35, %v2816_v53  ;;  %v3078_v56 = vadd.f32 %v2842_v35, %v2820_v28  ;;  %v3082_v13 = vadd.f32 %v2842_v35, %v2824_v54  ;;  %v3086_v61 = vadd.f32 %v2842_v35, %v2828_v40 }
 0x238   :  { %4271 = vst [vmem:[#allocation2_spill] sm:$0xff] %v3062_v47  ;;  %v3090_v6 = vadd.f32 %v2842_v35, %v2832_v46  ;;  %v3094_v53 = vadd.f32 %v2842_v35, %v4275_v59  ;;  %v3098_v28 = vadd.f32 %v2842_v35, %v2840_v7  ;;  %v3110_v46 = vadd.f32 %v2842_v35, %v2854_v18 }
 0x239   :  { %4272 = vst [vmem:[#allocation3_spill] sm:$0xff] %v3078_v56  ;;  %4273 = vst [vmem:[#allocation4_spill] sm:$0xff] %v3082_v13  ;;  %v4278_v56 = vld [vmem:[#allocation8_spill] sm:$0xff]  ;;  %v4280_v13 = vld [vmem:[#allocation13_spill] sm:$0xff]  ;;  %v3130_v18 = vadd.f32 %v2842_v35, %v2874_v38  ;;  %vm1171_vm1 = vcmp.ge.f32.partialorder %v2898_v50, 0.0  ;;  %vm1172_vm2 = vcmp.ge.f32.partialorder %v2902_v1, 0.0  ;;  %v3155_v38 = vadd.f32 %v2842_v35, %v2890_v15 }
 0x23a   :  { %4274 = vst [vmem:[#allocation5_spill] sm:$0xff] %v3090_v6  ;;  %4276 = vst [vmem:[#allocation7_spill] sm:$0xff] %v3094_v53  ;;  %v3102_v54 = vadd.f32 %v2842_v35, %v4278_v56  ;;  %v3106_v40 = vadd.f32 %v2842_v35, %v4280_v13  ;;  %v4283_v6 = vld [vmem:[#allocation12_spill] sm:$0xff]  ;;  %v4285_v53 = vld [vmem:[#allocation17_spill] sm:$0xff]  ;;  %vm1173_vm3 = vcmp.ge.f32.partialorder %v2906_v22, 0.0  ;;  %vm1174_vm4 = vcmp.ge.f32.partialorder %v2910_v34, 0.0 }
 0x23b   :  { %4277 = vst [vmem:[#allocation6_spill] sm:$0xff] %v3098_v28  ;;  %4282 = vst [vmem:[#allocation15_spill] sm:$0xff] %v3110_v46  ;;  %v3114_v59 = vadd.f32 %v2842_v35, %v4283_v6  ;;  %v3118_v7 = vadd.f32 %v2842_v35, %v4285_v53  ;;  %v4287_v28 = vld [vmem:[#allocation16_spill] sm:$0xff]  ;;  %v3134_v6 = vadd.f32 %v2842_v35, %v2878_v39  ;;  %vm1175_vm5 = vcmp.ge.f32.partialorder %v2914_v10, 0.0 }
 0x23c   :  { %4279 = vst [vmem:[#allocation11_spill] sm:$0xff] %v3102_v54  ;;  %4281 = vst [vmem:[#allocation10_spill] sm:$0xff] %v3106_v40  ;;  %v3122_v56 = vadd.f32 %v2842_v35, %v4287_v28  ;;  %v4289_v54 = vld [vmem:[#allocation26_spill] sm:$0xff]  ;;  %v3138_v53 = vadd.f32 %v2842_v35, %v2882_v42  ;;  %v3142_v28 = vadd.f32 %v2842_v35, %v2886_v20  ;;  %vm1176_vm6 = vcmp.ge.f32.partialorder %v2918_v8, 0.0 }
 0x23d   :  { %4284 = vst [vmem:[#allocation14_spill] sm:$0xff] %v3114_v59  ;;  %4286 = vst [vmem:[#allocation19_spill] sm:$0xff] %v3118_v7  ;;  %v3126_v13 = vadd.f32 %v2842_v35, %v4289_v54  ;;  %vm1177_vm7 = vcmp.ge.f32.partialorder %v2922_v31, 0.0  ;;  %vm1178_vm8 = vcmp.ge.f32.partialorder %v2926_v25, 0.0  ;;  %vm1179_vm9 = vcmp.ge.f32.partialorder %v2930_v3, 0.0 }
 0x23e   :  { %4288 = vst [vmem:[#allocation18_spill] sm:$0xff] %v3122_v56  ;;  %4291 = vst [vmem:[#allocation23_spill] sm:$0xff] %v3130_v18  ;;  %vm1180_vm10 = vcmp.ge.f32.partialorder %v2934_v21, 0.0  ;;  %v1235_v39 = vmul.f32 0.2, %v2898_v50  ;;  %v3163_v54 = vadd.f32 %v2842_v35, %v2894_v32  ;;  %vm1181_vm11 = vcmp.ge.f32.partialorder %v2938_v41, 0.0 }
 0x23f   :  { %4290 = vst [vmem:[#allocation21_spill] sm:$0xff] %v3126_v13  ;;  %4292 = vst [vmem:[#allocation20_spill] sm:$0xff] %v3134_v6  ;;  %v1236_v42 = vmul.f32 0.2, %v2902_v1  ;;  %v1237_v20 = vmul.f32 0.2, %v2906_v22 }
 0x240   :  { %4293 = vst [vmem:[#allocation22_spill] sm:$0xff] %v3138_v53  ;;  %4294 = vst [vmem:[#allocation25_spill] sm:$0xff] %v3142_v28  ;;  %v1238_v28 = vmul.f32 0.2, %v2910_v34  ;;  %v1239_v53 = vmul.f32 0.2, %v2914_v10  ;;  %v3176_v35 = vsel %vm1171_vm1, %v2898_v50, %v1235_v39 }
 0x241   :  { %4295 = vst [vmem:[#allocation27_spill] sm:$0xff] %v3155_v38  ;;  %4296 = vst [vmem:[#allocation24_spill] sm:$0xff] %v3163_v54  ;;  %v1240_v15 = vmul.f32 0.2, %v2918_v8  ;;  %vm1182_vm12 = vcmp.ge.f32.partialorder %v2942_v44, 0.0  ;;  %vm1183_vm13 = vcmp.ge.f32.partialorder %v2946_v27, 0.0  ;;  %v3187_v56 = vsel %vm1172_vm2, %v2902_v1, %v1236_v42 }
 0x242   :  { %v1241_v38 = vmul.f32 0.2, %v2922_v31  ;;  %v1242_v6 = vmul.f32 0.2, %v2926_v25  ;;  %v1243_v18 = vmul.f32 0.2, %v2930_v3  ;;  %v3217_v59 = vsel %vm1174_vm4, %v2910_v34, %v1238_v28 }
 0x243   :  { %4297 = vst [vmem:[#allocation29_spill] sm:$0xff] %v3176_v35  ;;  %v1244_v32 = vmul.f32 0.2, %v2934_v21  ;;  %v1245_v54 = vmul.f32 0.2, %v2938_v41  ;;  %4298 = vst [vmem:[#allocation31_spill] sm:$0xff] %v3187_v56  ;;  %v3202_v35 = vsel %vm1173_vm3, %v2906_v22, %v1237_v20 }
 0x244   :  { %v3182_v13 = vmul.f32 0.2, %v2942_v44  ;;  %vm1184_vm14 = vcmp.ge.f32.partialorder %v2950_v14, 0.0  ;;  %v3191_v7 = vmul.f32 0.2, %v2946_v27  ;;  %4299 = vst [vmem:[#allocation28_spill] sm:$0xff] %v3202_v35 }
 0x245   :  { %v3194_v50 = vmul.f32 0.2, %v2950_v14  ;;  %v3197_v39 = vmul.f32 0.2, %v2954_v52  ;;  %vm1185_vm15 = vcmp.ge.f32.partialorder %v2954_v52, 0.0  ;;  %4301 = vst [vmem:[#allocation9_spill] sm:$0xff] %v3217_v59 }
 0x246   :  { %v3206_v1 = vmul.f32 0.2, %v2958_v58  ;;  %v3209_v42 = vmul.f32 0.2, %v2962_v48  ;;  %v3212_v56 = vmul.f32 0.2, %v2966_v55 }
 0x247   :  { %vm1186_vm0 = vcmp.ge.f32.partialorder %v2958_v58, 0.0  ;;  %v3221_v22 = vmul.f32 0.2, %v2970_v2  ;;  %v3224_v20 = vmul.f32 0.2, %v2974_v9  ;;  %vm1187_vm1 = vcmp.ge.f32.partialorder %v2962_v48, 0.0 }
 0x248   :  { %4300 = vst [vmem:[#allocation30_spill] sm:$0xff] %v3212_v56  ;;  %v3227_v35 = vmul.f32 0.2, %v2978_v62  ;;  %v3232_v56 = vsel %vm1175_vm5, %v2914_v10, %v1239_v53  ;;  %v3236_v34 = vmul.f32 0.2, %v2982_v5  ;;  %vm1188_vm2 = vcmp.ge.f32.partialorder %v2966_v55, 0.0 }
 0x249   :  { %4303 = vst [vmem:[#allocation13_spill] sm:$0xff] %v3232_v56  ;;  %v3239_v28 = vmul.f32 0.2, %v2986_v16  ;;  %v3242_v59 = vmul.f32 0.2, %v2990_v23  ;;  %vm1189_vm3 = vcmp.ge.f32.partialorder %v2970_v2, 0.0 }
 0x24a   :  { %4302 = vst [vmem:[#allocation8_spill] sm:$0xff] %v3227_v35  ;;  %v3247_v35 = vsel %vm1176_vm6, %v2918_v8, %v1240_v15  ;;  %v3251_v10 = vmul.f32 0.2, %v2994_v12  ;;  %v3254_v53 = vmul.f32 0.2, %v2998_v19  ;;  %vm1190_vm4 = vcmp.ge.f32.partialorder %v2974_v9, 0.0 }
 0x24b   :  { %4304 = vst [vmem:[#allocation12_spill] sm:$0xff] %v3242_v59  ;;  %4305 = vst [vmem:[#allocation17_spill] sm:$0xff] %v3247_v35  ;;  %v3257_v56 = vmul.f32 0.2, %v3002_v30  ;;  %v3262_v59 = vsel %vm1177_vm7, %v2922_v31, %v1241_v38  ;;  %v3266_v8 = vmul.f32 0.2, %v3006_v37 }
 0x24c   :  { %4307 = vst [vmem:[#allocation26_spill] sm:$0xff] %v3262_v59  ;;  %v3269_v15 = vmul.f32 0.2, %v3010_v26  ;;  %v3272_v35 = vmul.f32 0.2, %v3014_v33  ;;  %vm1193_vm7 = vcmp.ge.f32.partialorder %v2986_v16, 0.0 }
 0x24d   :  { %4306 = vst [vmem:[#allocation16_spill] sm:$0xff] %v3257_v56  ;;  %v3277_v56 = vsel %vm1178_vm8, %v2926_v25, %v1242_v6  ;;  %v3283_v31 = vmul.f32 0.2, %v3018_v51  ;;  %v3286_v38 = vmul.f32 0.2, %v3022_v0  ;;  %v3294_v25 = vsel %vm1179_vm9, %v2930_v3, %v1243_v18 }
 0x24e   :  { %4308 = vst [vmem:[#allocation32_spill] sm:$0xff] %v3277_v56  ;;  %v3289_v59 = vmul.f32 0.2, %v3026_v45  ;;  %4310 = vst [vmem:[#allocation34_spill] sm:$0xff] %v3294_v25  ;;  %v3301_v6 = vmul.f32 0.2, %v3030_v57  ;;  %v3312_v3 = vsel %vm1180_vm10, %v2934_v21, %v1244_v32  ;;  %v3330_v21 = vsel %vm1181_vm11, %v2938_v41, %v1245_v54 }
 0x24f   :  { %v3304_v56 = vmul.f32 0.2, %v3034_v11  ;;  %4312 = vst [vmem:[#allocation36_spill] sm:$0xff] %v3312_v3  ;;  %vm1197_vm9 = vcmp.ge.f32.partialorder %v3002_v30, 0.0  ;;  %v3319_v18 = vmul.f32 0.2, %v3042_v4  ;;  %v3349_v41 = vsel %vm1182_vm12, %v2942_v44, %v3182_v13 }
 0x250   :  { %4309 = vst [vmem:[#allocation33_spill] sm:$0xff] %v3289_v59  ;;  %v3307_v59 = vmul.f32 0.2, %v3038_v24  ;;  %v3322_v25 = vmul.f32 0.2, %v3046_v17  ;;  %4314 = vst [vmem:[#allocation38_spill] sm:$0xff] %v3330_v21  ;;  %v3368_v44 = vsel %vm1183_vm13, %v2946_v27, %v3191_v7  ;;  %v3387_v27 = vsel %vm1184_vm14, %v2950_v14, %v3194_v50 }
 0x251   :  { %vm1201_vm10 = vcmp.ge.f32.partialorder %v3018_v51, 0.0  ;;  %v3337_v32 = vmul.f32 0.2, %v3054_v60  ;;  %v3340_v3 = vmul.f32 0.2, %v3058_v29  ;;  %4316 = vst [vmem:[#allocation40_spill] sm:$0xff] %v3349_v41  ;;  %v3406_v14 = vsel %vm1185_vm15, %v2954_v52, %v3197_v39 }
 0x252   :  { %4311 = vst [vmem:[#allocation35_spill] sm:$0xff] %v3307_v59  ;;  %v3325_v59 = vmul.f32 0.2, %v3050_v36  ;;  %vm1205_vm11 = vcmp.ge.f32.partialorder %v3034_v11, 0.0  ;;  %v3356_v54 = vmul.f32 0.2, %v3066_v49  ;;  %v3425_v52 = vsel %vm1186_vm0, %v2958_v58, %v3206_v1 }
 0x253   :  { %v3359_v21 = vmul.f32 0.2, %v3070_v63  ;;  %4320 = vst [vmem:[#allocation44_spill] sm:$0xff] %v3368_v44  ;;  %vm1209_vm12 = vcmp.ge.f32.partialorder %v3050_v36, 0.0  ;;  %v4321_v13 = vld [vmem:[#allocation3_spill] sm:$0xff]  ;;  %4326 = vst [vmem:[#allocation46_spill] sm:$0xff] %v3387_v27  ;;  %v3438_v58 = vsel %vm1187_vm1, %v2962_v48, %v3209_v42 }
 0x254   :  { %4313 = vst [vmem:[#allocation37_spill] sm:$0xff] %v3325_v59  ;;  %v3343_v59 = vmul.f32 0.2, %v3062_v47  ;;  %4317 = vst [vmem:[#allocation41_spill] sm:$0xff] %v3356_v54  ;;  %v3375_v41 = vmul.f32 0.2, %v4321_v13 }
 0x255   :  { %4318 = vst [vmem:[#allocation42_spill] sm:$0xff] %v3359_v21  ;;  %v4323_v21 = vld [vmem:[#allocation4_spill] sm:$0xff]  ;;  %vm1213_vm13 = vcmp.ge.f32.partialorder %v3066_v49, 0.0  ;;  %v4327_v7 = vld [vmem:[#allocation5_spill] sm:$0xff]  ;;  %4332 = vst [vmem:[#allocation49_spill] sm:$0xff] %v3406_v14  ;;  %vm4352_vm8 = vcmp.ge.f32.partialorder %v2978_v62, 0.0 }
 0x256   :  { %4315 = vst [vmem:[#allocation39_spill] sm:$0xff] %v3343_v59  ;;  %v3362_v59 = vmul.f32 0.2, %v3074_v43  ;;  %4322 = vst [vmem:[#allocation3_spill] sm:$0xff] %v3375_v41  ;;  %v3378_v54 = vmul.f32 0.2, %v4323_v21 }
 0x257   :  { %v3394_v44 = vmul.f32 0.2, %v4327_v7  ;;  %vm1217_vm14 = vcmp.ge.f32.partialorder %v4323_v21, 0.0  ;;  %v4333_v50 = vld [vmem:[#allocation11_spill] sm:$0xff]  ;;  %4337 = vst [vmem:[#allocation53_spill] sm:$0xff] %v3425_v52  ;;  %v4338_v39 = vld [vmem:[#allocation14_spill] sm:$0xff] }
 0x258   :  { %4319 = vst [vmem:[#allocation43_spill] sm:$0xff] %v3362_v59  ;;  %4324 = vst [vmem:[#allocation4_spill] sm:$0xff] %v3378_v54  ;;  %v3381_v59 = vmul.f32 0.2, %v3086_v61  ;;  %v4328_v54 = vld [vmem:[#allocation7_spill] sm:$0xff]  ;;  %vm1225_vm0 = vcmp.ge.f32.partialorder %v4338_v39, 0.0 }
 0x259   :  { %v3397_v41 = vmul.f32 0.2, %v4328_v54  ;;  %v3413_v27 = vmul.f32 0.2, %v4333_v50  ;;  %v1289_v14 = vmul.f32 0.2, %v4338_v39 }
 0x25a   :  { %4325 = vst [vmem:[#allocation45_spill] sm:$0xff] %v3381_v59  ;;  %v4330_v59 = vld [vmem:[#allocation6_spill] sm:$0xff]  ;;  %4341 = vst [vmem:[#allocation54_spill] sm:$0xff] %v3438_v58  ;;  %v4342_v1 = vld [vmem:[#allocation21_spill] sm:$0xff] }
 0x25b   :  { %4329 = vst [vmem:[#allocation47_spill] sm:$0xff] %v3397_v41  ;;  %v3400_v47 = vmul.f32 0.2, %v4330_v59  ;;  %4334 = vst [vmem:[#allocation50_spill] sm:$0xff] %v3413_v27  ;;  %v3416_v41 = vmul.f32 0.2, %v3106_v40 }
 0x25c   :  { %vm1221_vm15 = vcmp.ge.f32.partialorder %v4330_v59, 0.0  ;;  %v4340_v54 = vld [vmem:[#allocation18_spill] sm:$0xff]  ;;  %v1292_v52 = vmul.f32 0.2, %v4342_v1  ;;  %v4344_v50 = vld [vmem:[#allocation20_spill] sm:$0xff]  ;;  %v4348_v58 = vld [vmem:[#allocation25_spill] sm:$0xff] }
 0x25d   :  { %4331 = vst [vmem:[#allocation48_spill] sm:$0xff] %v3400_v47  ;;  %4335 = vst [vmem:[#allocation51_spill] sm:$0xff] %v3416_v41  ;;  %v3419_v47 = vmul.f32 0.2, %v3110_v46  ;;  %v4339_v41 = vld [vmem:[#allocation19_spill] sm:$0xff]  ;;  %v4345_v7 = vld [vmem:[#allocation30_spill] sm:$0xff] }
 0x25e   :  { %v1290_v27 = vmul.f32 0.2, %v4339_v41  ;;  %v4343_v46 = vld [vmem:[#allocation23_spill] sm:$0xff]  ;;  %v1294_v59 = vmul.f32 0.2, %v4344_v50  ;;  %v3451_v48 = vsel %vm1188_vm2, %v2966_v55, %v4345_v7  ;;  %v4347_v42 = vld [vmem:[#allocation22_spill] sm:$0xff]  ;;  %v3464_v55 = vsel %vm1189_vm3, %v2970_v2, %v3221_v22 }
 0x25f   :  { %4336 = vst [vmem:[#allocation52_spill] sm:$0xff] %v3419_v47  ;;  %v1291_v47 = vmul.f32 0.2, %v4340_v54  ;;  %v1293_v40 = vmul.f32 0.2, %v4343_v46  ;;  %4346 = vst [vmem:[#allocation23_spill] sm:$0xff] %v3451_v48  ;;  %v3491_v22 = vsel %vm1193_vm7, %v2986_v16, %v3239_v28 }
 0x260   :  { %vm1229_vm1 = vcmp.ge.f32.partialorder %v4343_v46, 0.0  ;;  %vm1231_vm5 = vcmp.ge.f32.partialorder %v4347_v42, 0.0  ;;  %v1295_v1 = vmul.f32 0.2, %v4347_v42  ;;  %v1296_v54 = vmul.f32 0.2, %v4348_v58 }
 0x261   :  { %v4349_v41 = vld [vmem:[#allocation27_spill] sm:$0xff]  ;;  %v4350_v7 = vld [vmem:[#allocation24_spill] sm:$0xff]  ;;  %v3473_v42 = vsel %vm1190_vm4, %v2974_v9, %v3224_v20  ;;  %vm4353_vm3 = vcmp.ge.f32.partialorder %v2982_v5, 0.0  ;;  %vm4355_vm4 = vcmp.ge.f32.partialorder %v2990_v23, 0.0  ;;  %vm4359_vm7 = vcmp.ge.f32.partialorder %v3006_v37, 0.0 }
 0x262   :  { %v1297_v39 = vmul.f32 0.2, %v4349_v41  ;;  %vm1233_vm2 = vcmp.ge.f32.partialorder %v4349_v41, 0.0  ;;  %vm1234_vm6 = vcmp.ge.f32.partialorder %v4350_v7, 0.0  ;;  %v1298_v48 = vmul.f32 0.2, %v4350_v7 }
 0x263   :  { %v4351_v58 = vld [vmem:[#allocation8_spill] sm:$0xff]  ;;  %v3485_v2 = vsel %vm4353_vm3, %v2982_v5, %v3236_v34  ;;  %vm4357_vm3 = vcmp.ge.f32.partialorder %v2998_v19, 0.0 }
 0x264   :  { %v3479_v50 = vsel %vm4352_vm8, %v2978_v62, %v4351_v58  ;;  %v4354_v9 = vld [vmem:[#allocation12_spill] sm:$0xff]  ;;  %vm4356_vm8 = vcmp.ge.f32.partialorder %v2994_v12, 0.0  ;;  %v3509_v5 = vsel %vm4357_vm3, %v2998_v19, %v3254_v53  ;;  %vm4362_vm3 = vcmp.ge.f32.partialorder %v3022_v0, 0.0 }
 0x265   :  { %v3497_v20 = vsel %vm4355_vm4, %v2990_v23, %v4354_v9  ;;  %v3503_v62 = vsel %vm4356_vm8, %v2994_v12, %v3251_v10  ;;  %v4358_v16 = vld [vmem:[#allocation16_spill] sm:$0xff]  ;;  %v3521_v23 = vsel %vm4359_vm7, %v3006_v37, %v3266_v8  ;;  %vm4360_vm4 = vcmp.ge.f32.partialorder %v3010_v26, 0.0  ;;  %v4374_v10 = vld [vmem:[#allocation2_spill] sm:$0xff] }
 0x266   :  { %v3515_v34 = vsel %vm1197_vm9, %v3002_v30, %v4358_v16  ;;  %v3527_v12 = vsel %vm4360_vm4, %v3010_v26, %v3269_v15  ;;  %vm4361_vm8 = vcmp.ge.f32.partialorder %v3014_v33, 0.0  ;;  %vm1619_vm9 = vcmask 60416   ;;  %v4363_v26 = vld [vmem:[#allocation33_spill] sm:$0xff]  ;;  %v4392_v9 = vld [vmem:[#allocation6_spill] sm:$0xff] }
 0x267   :  { %v3533_v19 = vsel %vm4361_vm8, %v3014_v33, %v3272_v35  ;;  %v3539_v30 = vsel %vm1201_vm10, %v3018_v51, %v3283_v31  ;;  %v3545_v37 = vsel %vm4362_vm3, %v3022_v0, %v3286_v38  ;;  %vm4364_vm7 = vcmp.ge.f32.partialorder %v3026_v45, 0.0  ;;  %v4366_v0 = vld [vmem:[#allocation35_spill] sm:$0xff] }
 0x268   :  { %v3551_v28 = vsel %vm4364_vm7, %v3026_v45, %v4363_v26  ;;  %vm4365_vm4 = vcmp.ge.f32.partialorder %v3030_v57, 0.0  ;;  %v3563_v51 = vsel %vm1205_vm11, %v3034_v11, %v3304_v56  ;;  %vm4367_vm10 = vcmp.ge.f32.partialorder %v3038_v24, 0.0  ;;  %v4370_v11 = vld [vmem:[#allocation37_spill] sm:$0xff]  ;;  %v4381_v38 = vld [vmem:[#allocation3_spill] sm:$0xff] }
 0x269   :  { %v3557_v33 = vsel %vm4365_vm4, %v3030_v57, %v3301_v6  ;;  %v3569_v35 = vsel %vm4367_vm10, %v3038_v24, %v4366_v0  ;;  %vm4368_vm8 = vcmp.ge.f32.partialorder %v3042_v4, 0.0  ;;  %vm4369_vm3 = vcmp.ge.f32.partialorder %v3046_v17, 0.0  ;;  %v4394_v26 = vld [vmem:[#allocation11_spill] sm:$0xff] }
 0x26a   :  { %v3575_v45 = vsel %vm4368_vm8, %v3042_v4, %v3319_v18  ;;  %v3581_v57 = vsel %vm4369_vm3, %v3046_v17, %v3322_v25  ;;  %v3587_v56 = vsel %vm1209_vm12, %v3050_v36, %v4370_v11  ;;  %vm4371_vm11 = vcmp.ge.f32.partialorder %v3054_v60, 0.0  ;;  %v4373_v17 = vld [vmem:[#allocation39_spill] sm:$0xff]  ;;  %v4376_v36 = vld [vmem:[#allocation41_spill] sm:$0xff]  ;;  %v4397_v11 = vld [vmem:[#allocation10_spill] sm:$0xff] }
 0x26b   :  { %v3593_v24 = vsel %vm4371_vm11, %v3054_v60, %v3337_v32  ;;  %vm4372_vm7 = vcmp.ge.f32.partialorder %v3058_v29, 0.0  ;;  %vm4375_vm4 = vcmp.ge.f32.partialorder %v4374_v10, 0.0  ;;  %v3611_v8 = vsel %vm1213_vm13, %v3066_v49, %v4376_v36  ;;  %v4377_v60 = vld [vmem:[#allocation42_spill] sm:$0xff]  ;;  %v4383_v49 = vld [vmem:[#allocation4_spill] sm:$0xff]  ;;  %v4388_v32 = vld [vmem:[#allocation47_spill] sm:$0xff] }
 0x26c   :  { %v3599_v4 = vsel %vm4372_vm7, %v3058_v29, %v3340_v3  ;;  %v3605_v53 = vsel %vm4375_vm4, %v4374_v10, %v4373_v17  ;;  %vm4378_vm12 = vcmp.ge.f32.partialorder %v3070_v63, 0.0  ;;  %v4379_v29 = vld [vmem:[#allocation43_spill] sm:$0xff]  ;;  %vm4380_vm10 = vcmp.ge.f32.partialorder %v3074_v43, 0.0  ;;  %v4399_v10 = vld [vmem:[#allocation52_spill] sm:$0xff] }
 0x26d   :  { %v3617_v15 = vsel %vm4378_vm12, %v3070_v63, %v4377_v60  ;;  %v3623_v31 = vsel %vm4380_vm10, %v3074_v43, %v4379_v29  ;;  %vm4382_vm8 = vcmp.ge.f32.partialorder %v4321_v13, 0.0  ;;  %v3635_v6 = vsel %vm1217_vm14, %v4323_v21, %v4383_v49  ;;  %v4384_v63 = vld [vmem:[#allocation45_spill] sm:$0xff]  ;;  %v4391_v21 = vld [vmem:[#allocation48_spill] sm:$0xff]  ;;  %v4400_v36 = vld [vmem:[#allocation15_spill] sm:$0xff] }
 0x26e   :  { %v3629_v25 = vsel %vm4382_vm8, %v4321_v13, %v4381_v38  ;;  %vm4385_vm13 = vcmp.ge.f32.partialorder %v3086_v61, 0.0  ;;  %v4386_v43 = vld [vmem:[#allocation5_spill] sm:$0xff]  ;;  %v4389_v13 = vld [vmem:[#allocation7_spill] sm:$0xff]  ;;  %v3659_v16 = vsel %vm1221_vm15, %v4392_v9, %v4391_v21  ;;  %vm4395_vm14 = vcmp.ge.f32.partialorder %v4394_v26, 0.0  ;;  %v4402_v29 = vld [vmem:[#allocation14_spill] sm:$0xff] }
 0x26f   :  { %v3641_v3 = vsel %vm4385_vm13, %v3086_v61, %v4384_v63  ;;  %vm4387_vm3 = vcmp.ge.f32.partialorder %v4386_v43, 0.0  ;;  %vm4390_vm11 = vcmp.ge.f32.partialorder %v4389_v13, 0.0  ;;  %v4393_v61 = vld [vmem:[#allocation50_spill] sm:$0xff]  ;;  %vm4398_vm7 = vcmp.ge.f32.partialorder %v4397_v11, 0.0  ;;  %v4403_v49 = vld [vmem:[#allocation19_spill] sm:$0xff]  ;;  %v4409_v9 = vld [vmem:[#allocation20_spill] sm:$0xff] }
 0x270   :  { %v3647_v18 = vsel %vm4387_vm3, %v4386_v43, %v3394_v44  ;;  %v3653_v58 = vsel %vm4390_vm11, %v4389_v13, %v4388_v32  ;;  %v3665_v0 = vsel %vm4395_vm14, %v4394_v26, %v4393_v61  ;;  %v4396_v44 = vld [vmem:[#allocation51_spill] sm:$0xff]  ;;  %vm4401_vm4 = vcmp.ge.f32.partialorder %v4400_v36, 0.0  ;;  %v4405_v43 = vld [vmem:[#allocation18_spill] sm:$0xff]  ;;  %v4407_v13 = vld [vmem:[#allocation21_spill] sm:$0xff] }
 0x271   :  { %v3671_v17 = vsel %vm4398_vm7, %v4397_v11, %v4396_v44  ;;  %v3677_v60 = vsel %vm4401_vm4, %v4400_v36, %v4399_v10  ;;  %v3682_v38 = vsel %vm1225_vm0, %v4402_v29, %v1289_v14  ;;  %vm4404_vm15 = vcmp.ge.f32.partialorder %v4403_v49, 0.0  ;;  %v4411_v61 = vld [vmem:[#allocation22_spill] sm:$0xff]  ;;  %v4412_v26 = vld [vmem:[#allocation25_spill] sm:$0xff]  ;;  %v4416_v10 = vld [vmem:[#allocation28_spill] sm:$0xff] }
 0x272   :  { %v3687_v63 = vsel %vm4404_vm15, %v4403_v49, %v1290_v27  ;;  %vm4406_vm12 = vcmp.ge.f32.partialorder %v4405_v43, 0.0  ;;  %vm4408_vm10 = vcmp.ge.f32.partialorder %v4407_v13, 0.0  ;;  %v3702_v14 = vsel %vm1229_vm1, %v4343_v46, %v1293_v40  ;;  %v4417_v36 = vld [vmem:[#allocation9_spill] sm:$0xff] }
 0x273   :  { %v3692_v32 = vsel %vm4406_vm12, %v4405_v43, %v1291_v47  ;;  %v3697_v21 = vsel %vm4408_vm10, %v4407_v13, %v1292_v52  ;;  %vm4410_vm0 = vcmp.ge.f32.partialorder %v4409_v9, 0.0  ;;  %v3712_v47 = vsel %vm1231_vm5, %v4411_v61, %v1295_v1  ;;  %v4415_v1 = vld [vmem:[#allocation31_spill] sm:$0xff]  ;;  %v4418_v49 = vld [vmem:[#allocation13_spill] sm:$0xff]  ;;  %v4421_v13 = vld [vmem:[#allocation32_spill] sm:$0xff] }
 0x274   :  { %v3707_v27 = vsel %vm4410_vm0, %v4409_v9, %v1294_v59  ;;  %vm4413_vm8 = vcmp.ge.f32.partialorder %v4412_v26, 0.0  ;;  %v3722_v40 = vsel %vm1233_vm2, %v4349_v41, %v1297_v39  ;;  %v3727_v46 = vsel %vm1234_vm6, %v4350_v7, %v1298_v48  ;;  %v4414_v59 = vld [vmem:[#allocation29_spill] sm:$0xff]  ;;  %v4420_v48 = vld [vmem:[#allocation26_spill] sm:$0xff] }
 0x275   :  { %v3717_v52 = vsel %vm4413_vm8, %v4412_v26, %v1296_v54  ;;  %v1792_v44 = vpack.c.bf16 %v4414_v59, %v4414_v59  ;;  %v1793_v11 = vpack.c.bf16 %v4415_v1, %v4415_v1  ;;  %v1794_v54 = vpack.c.bf16 %v4416_v10, %v4416_v10  ;;  %v4419_v39 = vld [vmem:[#allocation17_spill] sm:$0xff]  ;;  %v4422_v61 = vld [vmem:[#allocation34_spill] sm:$0xff]  ;;  %v4423_v59 = vld [vmem:[#allocation36_spill] sm:$0xff] }
 0x276   :  { %v1795_v29 = vpack.c.bf16 %v4417_v36, %v4417_v36  ;;  %v1796_v41 = vpack.c.bf16 %v4418_v49, %v4418_v49  ;;  %v1797_v43 = vpack.c.bf16 %v4419_v39, %v4419_v39  ;;  %v1798_v7 = vpack.c.bf16 %v4420_v48, %v4420_v48  ;;  %v4424_v10 = vld [vmem:[#allocation38_spill] sm:$0xff]  ;;  %v4425_v49 = vld [vmem:[#allocation40_spill] sm:$0xff] }
 0x277   :  { %v1799_v9 = vpack.c.bf16 %v4421_v13, %v4421_v13  ;;  %v1800_v26 = vpack.c.bf16 %v4422_v61, %v4422_v61  ;;  %v1801_v1 = vpack.c.bf16 %v4423_v59, %v4423_v59  ;;  %1620 = vst.msk [vmem:[%s4117_s4] sm:$0xf] %vm1619_vm9, %v1792_v44  ;;  %1621 = vst.msk [vmem:[%s4117_s4 + $0x4] sm:$0xf] %vm1619_vm9, %v1793_v11  ;;  %v4426_v48 = vld [vmem:[#allocation44_spill] sm:$0xff]  ;;  %v4427_v61 = vld [vmem:[#allocation46_spill] sm:$0xff] }
 0x278   :  { %v1802_v36 = vpack.c.bf16 %v4424_v10, %v4424_v10  ;;  %v1803_v39 = vpack.c.bf16 %v4425_v49, %v4425_v49  ;;  %v1804_v13 = vpack.c.bf16 %v4426_v48, %v4426_v48  ;;  %v1805_v59 = vpack.c.bf16 %v4427_v61, %v4427_v61  ;;  %1622 = vst.msk [vmem:[%s4117_s4 + $0x8] sm:$0xf] %vm1619_vm9, %v1794_v54  ;;  %v4428_v44 = vld [vmem:[#allocation49_spill] sm:$0xff]  ;;  %v4430_v49 = vld [vmem:[#allocation54_spill] sm:$0xff] }
 0x279   :  { %1623 = vst.msk [vmem:[%s4117_s4 + $0xc] sm:$0xf] %vm1619_vm9, %v1795_v29  ;;  %1624 = vst.msk [vmem:[%s4117_s4 + $0x10] sm:$0xf] %vm1619_vm9, %v1796_v41  ;;  %v1806_v11 = vpack.c.bf16 %v4428_v44, %v4428_v44  ;;  %v4429_v10 = vld [vmem:[#allocation53_spill] sm:$0xff]  ;;  %v1808_v48 = vpack.c.bf16 %v4430_v49, %v4430_v49  ;;  %v4431_v29 = vld [vmem:[#allocation23_spill] sm:$0xff]  ;;  %v1810_v41 = vpack.c.bf16 %v3464_v55, %v3464_v55 }
 0x27a   :  { %1625 = vst.msk [vmem:[%s4117_s4 + $0x14] sm:$0xf] %vm1619_vm9, %v1797_v43  ;;  %v1807_v54 = vpack.c.bf16 %v4429_v10, %v4429_v10  ;;  %v1809_v61 = vpack.c.bf16 %v4431_v29, %v4431_v29  ;;  %1626 = vst.msk [vmem:[%s4117_s4 + $0x18] sm:$0xf] %vm1619_vm9, %v1798_v7  ;;  %v1811_v43 = vpack.c.bf16 %v3473_v42, %v3473_v42 }
 0x27b   :  { %1627 = vst.msk [vmem:[%s4117_s4 + $0x1c] sm:$0xf] %vm1619_vm9, %v1799_v9  ;;  %1628 = vst.msk [vmem:[%s4117_s4 + $0x20] sm:$0xf] %vm1619_vm9, %v1800_v26  ;;  %v1812_v7 = vpack.c.bf16 %v3479_v50, %v3479_v50  ;;  %v1813_v9 = vpack.c.bf16 %v3485_v2, %v3485_v2  ;;  %v1814_v50 = vpack.c.bf16 %v3491_v22, %v3491_v22 }
 0x27c   :  { %1629 = vst.msk [vmem:[%s4117_s4 + $0x24] sm:$0xf] %vm1619_vm9, %v1801_v1  ;;  %1630 = vst.msk [vmem:[%s4117_s4 + $0x28] sm:$0xf] %vm1619_vm9, %v1802_v36  ;;  %v1815_v42 = vpack.c.bf16 %v3497_v20, %v3497_v20  ;;  %v1816_v55 = vpack.c.bf16 %v3503_v62, %v3503_v62  ;;  %v1817_v2 = vpack.c.bf16 %v3509_v5, %v3509_v5 }
 0x27d   :  { %1631 = vst.msk [vmem:[%s4117_s4 + $0x2c] sm:$0xf] %vm1619_vm9, %v1803_v39  ;;  %1632 = vst.msk [vmem:[%s4117_s4 + $0x30] sm:$0xf] %vm1619_vm9, %v1804_v13  ;;  %v1818_v22 = vpack.c.bf16 %v3515_v34, %v3515_v34  ;;  %v1819_v20 = vpack.c.bf16 %v3521_v23, %v3521_v23  ;;  %v1820_v62 = vpack.c.bf16 %v3527_v12, %v3527_v12 }
 0x27e   :  { %1633 = vst.msk [vmem:[%s4117_s4 + $0x34] sm:$0xf] %vm1619_vm9, %v1805_v59  ;;  %1634 = vst.msk [vmem:[%s4117_s4 + $0x38] sm:$0xf] %vm1619_vm9, %v1806_v11  ;;  %v1821_v5 = vpack.c.bf16 %v3533_v19, %v3533_v19  ;;  %v1822_v34 = vpack.c.bf16 %v3539_v30, %v3539_v30  ;;  %v1823_v23 = vpack.c.bf16 %v3545_v37, %v3545_v37 }
 0x27f   :  { %1635 = vst.msk [vmem:[%s4117_s4 + $0x3c] sm:$0xf] %vm1619_vm9, %v1807_v54  ;;  %1636 = vst.msk [vmem:[%s4117_s4 + $0x40] sm:$0xf] %vm1619_vm9, %v1808_v48  ;;  %v1824_v12 = vpack.c.bf16 %v3551_v28, %v3551_v28  ;;  %v1825_v19 = vpack.c.bf16 %v3557_v33, %v3557_v33  ;;  %v1826_v30 = vpack.c.bf16 %v3563_v51, %v3563_v51 }
 0x280   :  { %1637 = vst.msk [vmem:[%s4117_s4 + $0x44] sm:$0xf] %vm1619_vm9, %v1809_v61  ;;  %1638 = vst.msk [vmem:[%s4117_s4 + $0x48] sm:$0xf] %vm1619_vm9, %v1810_v41  ;;  %v1827_v37 = vpack.c.bf16 %v3569_v35, %v3569_v35  ;;  %v1828_v28 = vpack.c.bf16 %v3575_v45, %v3575_v45  ;;  %v1829_v33 = vpack.c.bf16 %v3581_v57, %v3581_v57 }
 0x281   :  { %1639 = vst.msk [vmem:[%s4117_s4 + $0x4c] sm:$0xf] %vm1619_vm9, %v1811_v43  ;;  %1640 = vst.msk [vmem:[%s4117_s4 + $0x50] sm:$0xf] %vm1619_vm9, %v1812_v7  ;;  %v1830_v51 = vpack.c.bf16 %v3587_v56, %v3587_v56  ;;  %v1831_v35 = vpack.c.bf16 %v3593_v24, %v3593_v24  ;;  %v1832_v45 = vpack.c.bf16 %v3599_v4, %v3599_v4 }
 0x282   :  { %1641 = vst.msk [vmem:[%s4117_s4 + $0x54] sm:$0xf] %vm1619_vm9, %v1813_v9  ;;  %1642 = vst.msk [vmem:[%s4117_s4 + $0x58] sm:$0xf] %vm1619_vm9, %v1814_v50  ;;  %v1833_v57 = vpack.c.bf16 %v3605_v53, %v3605_v53  ;;  %v1834_v56 = vpack.c.bf16 %v3611_v8, %v3611_v8  ;;  %v1835_v24 = vpack.c.bf16 %v3617_v15, %v3617_v15 }
 0x283   :  { %1643 = vst.msk [vmem:[%s4117_s4 + $0x5c] sm:$0xf] %vm1619_vm9, %v1815_v42  ;;  %1644 = vst.msk [vmem:[%s4117_s4 + $0x60] sm:$0xf] %vm1619_vm9, %v1816_v55  ;;  %v1836_v4 = vpack.c.bf16 %v3623_v31, %v3623_v31  ;;  %v1837_v53 = vpack.c.bf16 %v3629_v25, %v3629_v25  ;;  %v1838_v8 = vpack.c.bf16 %v3635_v6, %v3635_v6 }
 0x284   :  { %1645 = vst.msk [vmem:[%s4117_s4 + $0x64] sm:$0xf] %vm1619_vm9, %v1817_v2  ;;  %1646 = vst.msk [vmem:[%s4117_s4 + $0x68] sm:$0xf] %vm1619_vm9, %v1818_v22  ;;  %v1839_v15 = vpack.c.bf16 %v3641_v3, %v3641_v3  ;;  %v1840_v31 = vpack.c.bf16 %v3647_v18, %v3647_v18  ;;  %v1841_v25 = vpack.c.bf16 %v3653_v58, %v3653_v58 }
 0x285   :  { %1647 = vst.msk [vmem:[%s4117_s4 + $0x6c] sm:$0xf] %vm1619_vm9, %v1819_v20  ;;  %1648 = vst.msk [vmem:[%s4117_s4 + $0x70] sm:$0xf] %vm1619_vm9, %v1820_v62  ;;  %v1842_v6 = vpack.c.bf16 %v3659_v16, %v3659_v16  ;;  %v1843_v3 = vpack.c.bf16 %v3665_v0, %v3665_v0  ;;  %v1844_v18 = vpack.c.bf16 %v3671_v17, %v3671_v17 }
 0x286   :  { %1649 = vst.msk [vmem:[%s4117_s4 + $0x74] sm:$0xf] %vm1619_vm9, %v1821_v5  ;;  %1650 = vst.msk [vmem:[%s4117_s4 + $0x78] sm:$0xf] %vm1619_vm9, %v1822_v34  ;;  %v1845_v58 = vpack.c.bf16 %v3677_v60, %v3677_v60  ;;  %v1846_v16 = vpack.c.bf16 %v3682_v38, %v3682_v38  ;;  %v1847_v0 = vpack.c.bf16 %v3687_v63, %v3687_v63 }
 0x287   :  { %1651 = vst.msk [vmem:[%s4117_s4 + $0x7c] sm:$0xf] %vm1619_vm9, %v1823_v23  ;;  %1652 = vst.msk [vmem:[%s4117_s4 + $0x80] sm:$0xf] %vm1619_vm9, %v1824_v12  ;;  %v1848_v17 = vpack.c.bf16 %v3692_v32, %v3692_v32  ;;  %v1849_v60 = vpack.c.bf16 %v3697_v21, %v3697_v21  ;;  %v1850_v38 = vpack.c.bf16 %v3702_v14, %v3702_v14 }
 0x288   :  { %1653 = vst.msk [vmem:[%s4117_s4 + $0x84] sm:$0xf] %vm1619_vm9, %v1825_v19  ;;  %1654 = vst.msk [vmem:[%s4117_s4 + $0x88] sm:$0xf] %vm1619_vm9, %v1826_v30  ;;  %v1851_v63 = vpack.c.bf16 %v3707_v27, %v3707_v27  ;;  %v1852_v32 = vpack.c.bf16 %v3712_v47, %v3712_v47  ;;  %v1853_v21 = vpack.c.bf16 %v3717_v52, %v3717_v52 }
 0x289   :  { %1655 = vst.msk [vmem:[%s4117_s4 + $0x8c] sm:$0xf] %vm1619_vm9, %v1827_v37  ;;  %1656 = vst.msk [vmem:[%s4117_s4 + $0x90] sm:$0xf] %vm1619_vm9, %v1828_v28  ;;  %v1854_v14 = vpack.c.bf16 %v3722_v40, %v3722_v40  ;;  %v1855_v27 = vpack.c.bf16 %v3727_v46, %v3727_v46 }
 0x28a   :  { %1657 = vst.msk [vmem:[%s4117_s4 + $0x94] sm:$0xf] %vm1619_vm9, %v1829_v33  ;;  %1658 = vst.msk [vmem:[%s4117_s4 + $0x98] sm:$0xf] %vm1619_vm9, %v1830_v51 }
 0x28b   :  { %1659 = vst.msk [vmem:[%s4117_s4 + $0x9c] sm:$0xf] %vm1619_vm9, %v1831_v35  ;;  %1660 = vst.msk [vmem:[%s4117_s4 + $0xa0] sm:$0xf] %vm1619_vm9, %v1832_v45 }
 0x28c   :  { %1661 = vst.msk [vmem:[%s4117_s4 + $0xa4] sm:$0xf] %vm1619_vm9, %v1833_v57  ;;  %1662 = vst.msk [vmem:[%s4117_s4 + $0xa8] sm:$0xf] %vm1619_vm9, %v1834_v56 }
 0x28d   :  { %1663 = vst.msk [vmem:[%s4117_s4 + $0xac] sm:$0xf] %vm1619_vm9, %v1835_v24  ;;  %1664 = vst.msk [vmem:[%s4117_s4 + $0xb0] sm:$0xf] %vm1619_vm9, %v1836_v4 }
 0x28e   :  { %1665 = vst.msk [vmem:[%s4117_s4 + $0xb4] sm:$0xf] %vm1619_vm9, %v1837_v53  ;;  %1666 = vst.msk [vmem:[%s4117_s4 + $0xb8] sm:$0xf] %vm1619_vm9, %v1838_v8 }
 0x28f   :  { %1667 = vst.msk [vmem:[%s4117_s4 + $0xbc] sm:$0xf] %vm1619_vm9, %v1839_v15  ;;  %1668 = vst.msk [vmem:[%s4117_s4 + $0xc0] sm:$0xf] %vm1619_vm9, %v1840_v31 }
 0x290   :  { %1669 = vst.msk [vmem:[%s4117_s4 + $0xc4] sm:$0xf] %vm1619_vm9, %v1841_v25  ;;  %1670 = vst.msk [vmem:[%s4117_s4 + $0xc8] sm:$0xf] %vm1619_vm9, %v1842_v6 }
 0x291   :  { %1671 = vst.msk [vmem:[%s4117_s4 + $0xcc] sm:$0xf] %vm1619_vm9, %v1843_v3  ;;  %1672 = vst.msk [vmem:[%s4117_s4 + $0xd0] sm:$0xf] %vm1619_vm9, %v1844_v18 }
 0x292   :  { %1673 = vst.msk [vmem:[%s4117_s4 + $0xd4] sm:$0xf] %vm1619_vm9, %v1845_v58  ;;  %1674 = vst.msk [vmem:[%s4117_s4 + $0xd8] sm:$0xf] %vm1619_vm9, %v1846_v16 }
 0x293   :  { %1675 = vst.msk [vmem:[%s4117_s4 + $0xdc] sm:$0xf] %vm1619_vm9, %v1847_v0  ;;  %1676 = vst.msk [vmem:[%s4117_s4 + $0xe0] sm:$0xf] %vm1619_vm9, %v1848_v17 }
 0x294   :  { %1677 = vst.msk [vmem:[%s4117_s4 + $0xe4] sm:$0xf] %vm1619_vm9, %v1849_v60  ;;  %1678 = vst.msk [vmem:[%s4117_s4 + $0xe8] sm:$0xf] %vm1619_vm9, %v1850_v38 }
 0x295   :  { %1679 = vst.msk [vmem:[%s4117_s4 + $0xec] sm:$0xf] %vm1619_vm9, %v1851_v63  ;;  %1680 = vst.msk [vmem:[%s4117_s4 + $0xf0] sm:$0xf] %vm1619_vm9, %v1852_v32 }
 0x296   :  { %1681 = vst.msk [vmem:[%s4117_s4 + $0xf4] sm:$0xf] %vm1619_vm9, %v1853_v21  ;;  %1682 = vst.msk [vmem:[%s4117_s4 + $0xf8] sm:$0xf] %vm1619_vm9, %v1854_v14 }
 0x297   :  { %1683 = vst.msk [vmem:[%s4117_s4 + $0xfc] sm:$0xf] %vm1619_vm9, %v1855_v27 }

// kernel: discriminator_forward.6
= control target key start
LH: loop header
LB: loop body
LE: loop exit
PB: predicated region body
PF: predicated region fallthrough
CT: control target
= control target key end

     0   :  { %vm243_vm0 = vcmask 130048   ;;  %s956_s1 = inlined_call_operand.vmem [shape: bf16[128,16], index: 1, kind: input, shape index: {}]   ;;  %s957_s0 = inlined_call_operand.vmem [shape: bf16[128,128], index: 0, kind: input, shape index: {}]   ;;  %s958_s2 = inlined_call_operand.vmem [shape: f32[1,16], index: 2, kind: input, shape index: {}]   ;;  %s959_s3 = inlined_call_operand.vmem [shape: f32[1,16], index: 3, kind: input, shape index: {}]   ;;  %s960_s4 = inlined_call_operand.vmem [shape: bf16[128,16], index: 4, kind: output, shape index: {}]  }
   0x1   :  { %v648_v0 = vld [vmem:[%s956_s1 + $0x38] sm:$0xff]   ;;  %v649_v1 = vld [vmem:[%s956_s1 + $0x30] sm:$0xff]   ;;  %v650_v2 = vld [vmem:[%s956_s1 + $0x28] sm:$0xff]  }
   0x2   :  { %600 = vmatprep.subr.bf16.mxu0 %v648_v0  ;;  %632 = vmatprep.subr.bf16.mxu1 %v648_v0  ;;  %v651_v3 = vld [vmem:[%s956_s1 + $0x20] sm:$0xff]   ;;  %v652_v5 = vld [vmem:[%s956_s1 + $0x18] sm:$0xff]   ;;  %v653_v7 = vld [vmem:[%s956_s1 + $0x10] sm:$0xff]  }
   0x3   :  { %601 = vmatpush3.bf16.msra.mxu0 %v648_v0  ;;  %640 = vmatpush3.bf16.msra.mxu1 %v648_v0  ;;  %v656_v4 = vld [vmem:[%s957_s0] sm:$0xff]   ;;  %v654_v8 = vld [vmem:[%s956_s1 + $0x8] sm:$0xff]   ;;  %v658_v12 = vld [vmem:[%s957_s0 + $0x10] sm:$0xff]  }
   0x4   :  { %602 = vmatprep.subr.bf16.mxu0 %v649_v1  ;;  %633 = vmatprep.subr.bf16.mxu1 %v649_v1  ;;  %v660_v6 = vld [vmem:[%s957_s0 + $0x20] sm:$0xff]   ;;  %v657_v10 = vld [vmem:[%s957_s0 + $0x8] sm:$0xff]   ;;  %v662_v13 = vld [vmem:[%s957_s0 + $0x30] sm:$0xff]  }
   0x5   :  { %616 = vmatprep.mubr.bf16.mxu0 %v656_v4  ;;  %624 = vmatprep.mubr.bf16.mxu1 %v660_v6  ;;  %v655_v9 = vld [vmem:[%s956_s1] sm:$0xff]   ;;  %v661_v11 = vld [vmem:[%s957_s0 + $0x28] sm:$0xff]   ;;  %v659_v14 = vld [vmem:[%s957_s0 + $0x18] sm:$0xff]  }
   0x6   :  { %v663_v15 = vld [vmem:[%s957_s0 + $0x38] sm:$0xff]  }
   0x7   :  { %603 = vmatpush3.bf16.msra.mxu0 %v649_v1  ;;  %641 = vmatpush3.bf16.msra.mxu1 %v649_v1 }
   0x8   :  { %604 = vmatprep.subr.bf16.mxu0 %v650_v2  ;;  %634 = vmatprep.subr.bf16.mxu1 %v650_v2 }
   0xb   :  { %605 = vmatpush3.bf16.msra.mxu0 %v650_v2  ;;  %642 = vmatpush3.bf16.msra.mxu1 %v650_v2 }
   0xc   :  { %606 = vmatprep.subr.bf16.mxu0 %v651_v3  ;;  %635 = vmatprep.subr.bf16.mxu1 %v651_v3 }
   0xf   :  { %607 = vmatpush3.bf16.msra.mxu0 %v651_v3  ;;  %643 = vmatpush3.bf16.msra.mxu1 %v651_v3 }
  0x10   :  { %608 = vmatprep.subr.bf16.mxu0 %v652_v5  ;;  %636 = vmatprep.subr.bf16.mxu1 %v652_v5 }
  0x13   :  { %609 = vmatpush3.bf16.msra.mxu0 %v652_v5  ;;  %644 = vmatpush3.bf16.msra.mxu1 %v652_v5 }
  0x14   :  { %610 = vmatprep.subr.bf16.mxu0 %v653_v7  ;;  %637 = vmatprep.subr.bf16.mxu1 %v653_v7 }
  0x17   :  { %611 = vmatpush3.bf16.msra.mxu0 %v653_v7  ;;  %645 = vmatpush3.bf16.msra.mxu1 %v653_v7 }
  0x18   :  { %612 = vmatprep.subr.bf16.mxu0 %v654_v8  ;;  %638 = vmatprep.subr.bf16.mxu1 %v654_v8 }
  0x1b   :  { %613 = vmatpush3.bf16.msra.mxu0 %v654_v8  ;;  %646 = vmatpush3.bf16.msra.mxu1 %v654_v8 }
  0x1c   :  { %614 = vmatprep.subr.bf16.mxu0 %v655_v9  ;;  %639 = vmatprep.subr.bf16.mxu1 %v655_v9 }
  0x1f   :  { %615 = vmatpush3.bf16.msra.mxu0 %v655_v9  ;;  %647 = vmatpush3.bf16.msra.mxu1 %v655_v9 }
  0x22   :  { %617 = vmatmul.mubr.bf16.vlgmr.msra.gmra.mxu0 %v657_v10  ;;  %625 = vmatmul.mubr.bf16.vlgmr.msra.gmra.mxu1 %v661_v11 }
  0x23   :  { %620 = vmatprep.mubr.bf16.mxu0 %v658_v12  ;;  %628 = vmatprep.mubr.bf16.mxu1 %v662_v13 }
  0x2a   :  { %621 = vmatmul.mubr.bf16.gmra.mxu0 %v659_v14  ;;  %629 = vmatmul.mubr.bf16.gmra.mxu1 %v663_v15 }
  0xe2   :  { %v739_v16 = vpop.f32.mrf.mxu0  ;;  %v741_v17 = vpop.f32.mrf.mxu1 }
  0xe3   :  { %v247_v27 = vsel %vm243_vm0, %v739_v16, 0.0  ;;  %v263_v50 = vsel %vm243_vm0, %v741_v17, 0.0 }
  0xe4   :  { %v743_v18 = vpop.f32.mrf.mxu0  ;;  %v747_v20 = vpop.f32.mrf.mxu1 }
  0xe5   :  { %v244_v22 = vsel %vm243_vm0, %v743_v18, 0.0  ;;  %v259_v45 = vsel %vm243_vm0, %v747_v20, 0.0 }
  0xe6   :  { %v745_v19 = vpop.f32.mrf.mxu0  ;;  %v757_v26 = vpop.f32.mrf.mxu1 }
  0xe7   :  { %v249_v30 = vsel %vm243_vm0, %v745_v19, 0.0  ;;  %v265_v52 = vsel %vm243_vm0, %v757_v26, 0.0 }
  0xe8   :  { %v749_v21 = vpop.f32.mrf.mxu0  ;;  %v767_v33 = vpop.f32.mrf.mxu1 }
  0xe9   :  { %v245_v23 = vsel %vm243_vm0, %v749_v21, 0.0  ;;  %v261_v47 = vsel %vm243_vm0, %v767_v33, 0.0 }
  0xea   :  { %v246_v24 = vadd.f32 %v245_v23, %v244_v22  ;;  %v755_v25 = vpop.f32.mrf.mxu0  ;;  %v775_v39 = vpop.f32.mrf.mxu1 }
  0xeb   :  { %v255_v40 = vsel %vm243_vm0, %v755_v25, 0.0  ;;  %v271_v59 = vsel %vm243_vm0, %v775_v39, 0.0 }
  0xec   :  { %v248_v28 = vadd.f32 %v247_v27, %v246_v24  ;;  %v761_v29 = vpop.f32.mrf.mxu0  ;;  %v781_v44 = vpop.f32.mrf.mxu1 }
  0xed   :  { %v251_v34 = vsel %vm243_vm0, %v761_v29, 0.0  ;;  %v267_v55 = vsel %vm243_vm0, %v781_v44, 0.0 }
  0xee   :  { %v250_v31 = vadd.f32 %v249_v30, %v248_v28  ;;  %v765_v32 = vpop.f32.mrf.mxu0  ;;  %v787_v49 = vpop.f32.mrf.mxu1 }
  0xef   :  { %v257_v42 = vsel %vm243_vm0, %v765_v32, 0.0  ;;  %v273_v61 = vsel %vm243_vm0, %v787_v49, 0.0 }
  0xf0   :  { %v252_v35 = vadd.f32 %v251_v34, %v250_v31  ;;  %v771_v36 = vpop.f32.mrf.mxu0  ;;  %v793_v54 = vpop.f32.mrf.mxu1 }
  0xf1   :  { %v253_v37 = vsel %vm243_vm0, %v771_v36, 0.0  ;;  %v269_v57 = vsel %vm243_vm0, %v793_v54, 0.0 }
  0xf2   :  { %v254_v38 = vadd.f32 %v253_v37, %v252_v35 }
  0xf4   :  { %v256_v41 = vadd.f32 %v255_v40, %v254_v38 }
  0xf6   :  { %v258_v43 = vadd.f32 %v257_v42, %v256_v41 }
  0xf8   :  { %v260_v46 = vadd.f32 %v259_v45, %v258_v43 }
  0xfa   :  { %v262_v48 = vadd.f32 %v261_v47, %v260_v46 }
  0xfc   :  { %v264_v51 = vadd.f32 %v263_v50, %v262_v48 }
  0xfe   :  { %v266_v53 = vadd.f32 %v265_v52, %v264_v51 }
 0x100   :  { %v268_v56 = vadd.f32 %v267_v55, %v266_v53 }
 0x102   :  { %v270_v58 = vadd.f32 %v269_v57, %v268_v56 }
 0x104   :  { %v272_v60 = vadd.f32 %v271_v59, %v270_v58 }
 0x106   :  { %v274_v62 = vadd.f32 %v273_v61, %v272_v60 }
 0x108   :  { %v275_v63 = vrot.slane %v274_v62, 4 }
 0x10a   :  { %v276_v0 = vadd.f32 %v275_v63, %v274_v62 }
 0x10c   :  { %v277_v1 = vrot.slane %v276_v0, 2 }
 0x10e   :  { %v278_v2 = vadd.f32 %v277_v1, %v276_v0 }
 0x110   :  { %v279_v3 = vrot.slane %v278_v2, 1 }
 0x112   :  { %v280_v4 = vadd.f32 %v279_v3, %v278_v2 }
 0x114   :  { %v803_v5 = vmul.f32 0.0078125, %v280_v4 }
 0x116   :  { %v282_v6 = vsub.f32 %v743_v18, %v803_v5  ;;  %v283_v7 = vsub.f32 %v749_v21, %v803_v5  ;;  %v284_v8 = vsub.f32 %v739_v16, %v803_v5  ;;  %v285_v9 = vsub.f32 %v745_v19, %v803_v5 }
 0x117   :  { %v286_v12 = vsub.f32 %v761_v29, %v803_v5  ;;  %v287_v14 = vsub.f32 %v771_v36, %v803_v5  ;;  %v288_v27 = vsub.f32 %v755_v25, %v803_v5  ;;  %v289_v34 = vsub.f32 %v765_v32, %v803_v5 }
 0x118   :  { %v298_v10 = vmul.f32 %v282_v6, %v282_v6  ;;  %v299_v11 = vmul.f32 %v283_v7, %v283_v7  ;;  %v300_v13 = vmul.f32 %v284_v8, %v284_v8  ;;  %v301_v15 = vmul.f32 %v285_v9, %v285_v9 }
 0x119   :  { %v302_v28 = vmul.f32 %v286_v12, %v286_v12  ;;  %v303_v35 = vmul.f32 %v287_v14, %v287_v14  ;;  %v290_v40 = vsub.f32 %v747_v20, %v803_v5  ;;  %v304_v41 = vmul.f32 %v288_v27, %v288_v27 }
 0x11a   :  { %v314_v22 = vsel %vm243_vm0, %v298_v10, 0.0  ;;  %v315_v23 = vsel %vm243_vm0, %v299_v11, 0.0  ;;  %v317_v30 = vsel %vm243_vm0, %v300_v13, 0.0  ;;  %v319_v37 = vsel %vm243_vm0, %v301_v15, 0.0 }
 0x11b   :  { %v316_v24 = vadd.f32 %v315_v23, %v314_v22  ;;  %v321_v42 = vsel %vm243_vm0, %v302_v28, 0.0  ;;  %v291_v45 = vsub.f32 %v767_v33, %v803_v5  ;;  %v305_v46 = vmul.f32 %v289_v34, %v289_v34 }
 0x11c   :  { %v323_v47 = vsel %vm243_vm0, %v303_v35, 0.0  ;;  %v292_v50 = vsub.f32 %v741_v17, %v803_v5  ;;  %v306_v51 = vmul.f32 %v290_v40, %v290_v40  ;;  %v325_v52 = vsel %vm243_vm0, %v304_v41, 0.0 }
 0x11d   :  { %v318_v31 = vadd.f32 %v317_v30, %v316_v24  ;;  %v293_v55 = vsub.f32 %v757_v26, %v803_v5  ;;  %v307_v56 = vmul.f32 %v291_v45, %v291_v45  ;;  %v327_v57 = vsel %vm243_vm0, %v305_v46, 0.0  ;;  %v352_v46 = vld [vmem:[%s958_s2] sm:$0x1] }
 0x11e   :  { %v294_v59 = vsub.f32 %v781_v44, %v803_v5  ;;  %v308_v60 = vmul.f32 %v292_v50, %v292_v50  ;;  %v329_v61 = vsel %vm243_vm0, %v306_v51, 0.0  ;;  %v295_v63 = vsub.f32 %v793_v54, %v803_v5  ;;  %v356_v51 = vld [vmem:[%s959_s3] sm:$0x1] }
 0x11f   :  { %v320_v38 = vadd.f32 %v319_v37, %v318_v31  ;;  %v309_v0 = vmul.f32 %v293_v55, %v293_v55  ;;  %v331_v1 = vsel %vm243_vm0, %v307_v56, 0.0  ;;  %v296_v3 = vsub.f32 %v775_v39, %v803_v5 }
 0x120   :  { %v310_v4 = vmul.f32 %v294_v59, %v294_v59  ;;  %v333_v6 = vsel %vm243_vm0, %v308_v60, 0.0  ;;  %v297_v8 = vsub.f32 %v787_v49, %v803_v5  ;;  %v311_v9 = vmul.f32 %v295_v63, %v295_v63 }
 0x121   :  { %v322_v43 = vadd.f32 %v321_v42, %v320_v38  ;;  %v335_v10 = vsel %vm243_vm0, %v309_v0, 0.0  ;;  %v312_v12 = vmul.f32 %v296_v3, %v296_v3 }
 0x122   :  { %v337_v13 = vsel %vm243_vm0, %v310_v4, 0.0  ;;  %v313_v15 = vmul.f32 %v297_v8, %v297_v8  ;;  %v339_v22 = vsel %vm243_vm0, %v311_v9, 0.0 }
 0x123   :  { %v324_v48 = vadd.f32 %v323_v47, %v322_v43  ;;  %v341_v24 = vsel %vm243_vm0, %v312_v12, 0.0  ;;  %v360_v43 = vlaneseq }
 0x124   :  { %v343_v28 = vsel %vm243_vm0, %v313_v15, 0.0 }
 0x125   :  { %v326_v53 = vadd.f32 %v325_v52, %v324_v48  ;;  %v361_v45 = vshrl.u32 %v360_v43, 7 }
 0x127   :  { %v328_v58 = vadd.f32 %v327_v57, %v326_v53  ;;  %v362_v47 = vsub.s32 0, %v361_v45 }
 0x129   :  { %v330_v62 = vadd.f32 %v329_v61, %v328_v58 }
 0x12b   :  { %v332_v2 = vadd.f32 %v331_v1, %v330_v62 }
 0x12d   :  { %v334_v7 = vadd.f32 %v333_v6, %v332_v2 }
 0x12f   :  { %v336_v11 = vadd.f32 %v335_v10, %v334_v7 }
 0x131   :  { %v338_v14 = vadd.f32 %v337_v13, %v336_v11 }
 0x133   :  { %v340_v23 = vadd.f32 %v339_v22, %v338_v14 }
 0x135   :  { %v342_v27 = vadd.f32 %v341_v24, %v340_v23 }
 0x137   :  { %v344_v30 = vadd.f32 %v343_v28, %v342_v27 }
 0x139   :  { %v345_v31 = vrot.slane %v344_v30, 4 }
 0x13b   :  { %v346_v34 = vadd.f32 %v345_v31, %v344_v30 }
 0x13d   :  { %v347_v35 = vrot.slane %v346_v34, 2 }
 0x13f   :  { %v348_v37 = vadd.f32 %v347_v35, %v346_v34 }
 0x141   :  { %v349_v38 = vrot.slane %v348_v37, 1 }
 0x143   :  { %v350_v40 = vadd.f32 %v349_v38, %v348_v37 }
 0x145   :  { %v351_v41 = vmul.f32 0.0078125, %v350_v40 }
 0x147   :  { %v353_v42 = vadd.f32 1e-05, %v351_v41 }
 0x149   :  { %664 = vrsqrt.f32 %v353_v42 }
 0x156   :  { %v665_v48 = vpop.eup %664 }
 0x157   :  { %v355_v50 = vmul.f32 %v665_v48, %v352_v46 }
 0x159   :  { %v357_v52 = vmul.f32 %v355_v50, %v803_v5  ;;  %v363_v53 = vrot.slane %v355_v50, %v362_v47 }
 0x15b   :  { %v358_v55 = vsub.f32 %v356_v51, %v357_v52  ;;  %v365_v56 = vmul.f32 %v363_v53, %v743_v18  ;;  %v366_v57 = vmul.f32 %v363_v53, %v749_v21  ;;  %v367_v58 = vmul.f32 %v739_v16, %v363_v53 }
 0x15c   :  { %v368_v59 = vmul.f32 %v745_v19, %v363_v53  ;;  %v369_v60 = vmul.f32 %v363_v53, %v761_v29  ;;  %v370_v61 = vmul.f32 %v363_v53, %v771_v36  ;;  %v371_v62 = vmul.f32 %v755_v25, %v363_v53 }
 0x15d   :  { %v372_v63 = vmul.f32 %v765_v32, %v363_v53  ;;  %v373_v5 = vmul.f32 %v363_v53, %v747_v20  ;;  %v374_v0 = vmul.f32 %v363_v53, %v767_v33  ;;  %v375_v18 = vmul.f32 %v741_v17, %v363_v53 }
 0x15e   :  { %v376_v21 = vmul.f32 %v757_v26, %v363_v53  ;;  %v385_v1 = vrot.slane %v358_v55, %v362_v47  ;;  %v377_v16 = vmul.f32 %v363_v53, %v781_v44  ;;  %v378_v19 = vmul.f32 %v363_v53, %v793_v54 }
 0x15f   :  { %v379_v29 = vmul.f32 %v775_v39, %v363_v53  ;;  %v380_v36 = vmul.f32 %v787_v49, %v363_v53 }
 0x160   :  { %v387_v25 = vadd.f32 %v385_v1, %v365_v56  ;;  %v388_v2 = vadd.f32 %v385_v1, %v366_v57  ;;  %v389_v32 = vadd.f32 %v385_v1, %v367_v58  ;;  %v390_v3 = vadd.f32 %v385_v1, %v368_v59 }
 0x161   :  { %v391_v20 = vadd.f32 %v385_v1, %v369_v60  ;;  %v392_v4 = vadd.f32 %v385_v1, %v370_v61  ;;  %v393_v33 = vadd.f32 %v385_v1, %v371_v62  ;;  %v394_v6 = vadd.f32 %v385_v1, %v372_v63 }
 0x162   :  { %v395_v17 = vadd.f32 %v385_v1, %v373_v5  ;;  %v396_v7 = vadd.f32 %v385_v1, %v374_v0  ;;  %v397_v26 = vadd.f32 %v385_v1, %v375_v18  ;;  %v398_v8 = vadd.f32 %v385_v1, %v376_v21 }
 0x163   :  { %v399_v9 = vadd.f32 %v385_v1, %v377_v16  ;;  %v400_v44 = vadd.f32 %v385_v1, %v378_v19  ;;  %v401_v10 = vadd.f32 %v385_v1, %v379_v29  ;;  %v402_v54 = vadd.f32 %v385_v1, %v380_v36 }
 0x164   :  { %vm404_vm2 = vcmp.ge.f32.partialorder %v388_v2, 0.0  ;;  %vm405_vm3 = vcmp.ge.f32.partialorder %v389_v32, 0.0  ;;  %vm406_vm4 = vcmp.ge.f32.partialorder %v390_v3, 0.0  ;;  %vm407_vm5 = vcmp.ge.f32.partialorder %v391_v20, 0.0 }
 0x165   :  { %vm408_vm6 = vcmp.ge.f32.partialorder %v392_v4, 0.0  ;;  %vm410_vm8 = vcmp.ge.f32.partialorder %v394_v6, 0.0  ;;  %vm411_vm9 = vcmp.ge.f32.partialorder %v395_v17, 0.0  ;;  %vm412_vm10 = vcmp.ge.f32.partialorder %v396_v7, 0.0 }
 0x166   :  { %vm413_vm11 = vcmp.ge.f32.partialorder %v397_v26, 0.0  ;;  %vm414_vm12 = vcmp.ge.f32.partialorder %v398_v8, 0.0  ;;  %vm415_vm13 = vcmp.ge.f32.partialorder %v399_v9, 0.0  ;;  %vm416_vm14 = vcmp.ge.f32.partialorder %v400_v44, 0.0 }
 0x167   :  { %vm417_vm15 = vcmp.ge.f32.partialorder %v401_v10, 0.0  ;;  %vm418_vm0 = vcmp.ge.f32.partialorder %v402_v54, 0.0  ;;  %v419_v39 = vmul.f32 0.2, %v387_v25  ;;  %v420_v49 = vmul.f32 0.2, %v388_v2 }
 0x168   :  { %v421_v11 = vmul.f32 0.2, %v389_v32  ;;  %v422_v12 = vmul.f32 0.2, %v390_v3  ;;  %v423_v13 = vmul.f32 0.2, %v391_v20 }
 0x169   :  { %v424_v14 = vmul.f32 0.2, %v392_v4  ;;  %v425_v15 = vmul.f32 0.2, %v393_v33  ;;  %v426_v22 = vmul.f32 0.2, %v394_v6  ;;  %v436_v31 = vsel %vm404_vm2, %v388_v2, %v420_v49 }
 0x16a   :  { %v427_v23 = vmul.f32 0.2, %v395_v17  ;;  %vm961_vm7 = vcmp.ge.f32.partialorder %v387_v25, 0.0  ;;  %v428_v27 = vmul.f32 0.2, %v396_v7  ;;  %v437_v38 = vsel %vm405_vm3, %v389_v32, %v421_v11 }
 0x16b   :  { %v435_v24 = vsel %vm961_vm7, %v387_v25, %v419_v39  ;;  %v429_v28 = vmul.f32 0.2, %v397_v26  ;;  %v430_v30 = vmul.f32 0.2, %v398_v8  ;;  %v431_v34 = vmul.f32 0.2, %v399_v9 }
 0x16c   :  { %v432_v35 = vmul.f32 0.2, %v400_v44  ;;  %v433_v37 = vmul.f32 0.2, %v401_v10  ;;  %v434_v40 = vmul.f32 0.2, %v402_v54  ;;  %v438_v41 = vsel %vm406_vm4, %v390_v3, %v422_v12 }
 0x16d   :  { %v439_v42 = vsel %vm407_vm5, %v391_v20, %v423_v13  ;;  %v440_v43 = vsel %vm408_vm6, %v392_v4, %v424_v14  ;;  %vm962_vm1 = vcmp.ge.f32.partialorder %v393_v33, 0.0  ;;  %v442_v46 = vsel %vm410_vm8, %v394_v6, %v426_v22 }
 0x16e   :  { %v441_v45 = vsel %vm962_vm1, %v393_v33, %v425_v15  ;;  %v443_v47 = vsel %vm411_vm9, %v395_v17, %v427_v23  ;;  %v444_v48 = vsel %vm412_vm10, %v396_v7, %v428_v27  ;;  %v445_v50 = vsel %vm413_vm11, %v397_v26, %v429_v28 }
 0x16f   :  { %v446_v51 = vsel %vm414_vm12, %v398_v8, %v430_v30  ;;  %v447_v52 = vsel %vm415_vm13, %v399_v9, %v431_v34  ;;  %v448_v53 = vsel %vm416_vm14, %v400_v44, %v432_v35  ;;  %v449_v55 = vsel %vm417_vm15, %v401_v10, %v433_v37 }
 0x170   :  { %v450_v56 = vsel %vm418_vm0, %v402_v54, %v434_v40  ;;  %v568_v57 = vpack.c.bf16 %v435_v24, %v435_v24  ;;  %v569_v58 = vpack.c.bf16 %v436_v31, %v436_v31  ;;  %v570_v59 = vpack.c.bf16 %v437_v38, %v437_v38 }
 0x171   :  { %v571_v60 = vpack.c.bf16 %v438_v41, %v438_v41  ;;  %v572_v61 = vpack.c.bf16 %v439_v42, %v439_v42  ;;  %v573_v62 = vpack.c.bf16 %v440_v43, %v440_v43  ;;  %v574_v63 = vpack.c.bf16 %v441_v45, %v441_v45 }
 0x172   :  { %v575_v5 = vpack.c.bf16 %v442_v46, %v442_v46  ;;  %v576_v0 = vpack.c.bf16 %v443_v47, %v443_v47  ;;  %v577_v18 = vpack.c.bf16 %v444_v48, %v444_v48  ;;  %vm963_vm1 = vcmask 125952  }
 0x173   :  { %516 = vst.msk [vmem:[%s960_s4] sm:$0xf] %vm963_vm1, %v568_v57  ;;  %vm964_vm2 = vmmov %vm963_vm1  ;;  %v578_v21 = vpack.c.bf16 %v445_v50, %v445_v50  ;;  %v579_v1 = vpack.c.bf16 %v446_v51, %v446_v51  ;;  %v580_v16 = vpack.c.bf16 %v447_v52, %v447_v52  ;;  %v581_v19 = vpack.c.bf16 %v448_v53, %v448_v53 }
 0x174   :  { %517 = vst.msk [vmem:[%s960_s4 + $0x4] sm:$0xf] %vm964_vm2, %v569_v58  ;;  %vm965_vm3 = vmmov %vm963_vm1  ;;  %v582_v29 = vpack.c.bf16 %v449_v55, %v449_v55  ;;  %v583_v36 = vpack.c.bf16 %v450_v56, %v450_v56 }
 0x175   :  { %518 = vst.msk [vmem:[%s960_s4 + $0x8] sm:$0xf] %vm965_vm3, %v570_v59  ;;  %vm966_vm4 = vmmov %vm963_vm1 }
 0x176   :  { %519 = vst.msk [vmem:[%s960_s4 + $0xc] sm:$0xf] %vm966_vm4, %v571_v60  ;;  %vm967_vm5 = vmmov %vm963_vm1 }
 0x177   :  { %520 = vst.msk [vmem:[%s960_s4 + $0x10] sm:$0xf] %vm967_vm5, %v572_v61  ;;  %vm968_vm6 = vmmov %vm963_vm1 }
 0x178   :  { %521 = vst.msk [vmem:[%s960_s4 + $0x14] sm:$0xf] %vm968_vm6, %v573_v62  ;;  %vm969_vm7 = vmmov %vm963_vm1 }
 0x179   :  { %522 = vst.msk [vmem:[%s960_s4 + $0x18] sm:$0xf] %vm969_vm7, %v574_v63  ;;  %vm970_vm8 = vmmov %vm963_vm1 }
 0x17a   :  { %523 = vst.msk [vmem:[%s960_s4 + $0x1c] sm:$0xf] %vm970_vm8, %v575_v5  ;;  %vm971_vm9 = vmmov %vm963_vm1 }
 0x17b   :  { %524 = vst.msk [vmem:[%s960_s4 + $0x20] sm:$0xf] %vm971_vm9, %v576_v0  ;;  %vm972_vm10 = vmmov %vm963_vm1 }
 0x17c   :  { %525 = vst.msk [vmem:[%s960_s4 + $0x24] sm:$0xf] %vm972_vm10, %v577_v18  ;;  %vm973_vm11 = vmmov %vm963_vm1 }
 0x17d   :  { %526 = vst.msk [vmem:[%s960_s4 + $0x28] sm:$0xf] %vm973_vm11, %v578_v21  ;;  %vm974_vm12 = vmmov %vm963_vm1 }
 0x17e   :  { %527 = vst.msk [vmem:[%s960_s4 + $0x2c] sm:$0xf] %vm974_vm12, %v579_v1  ;;  %vm975_vm13 = vmmov %vm963_vm1 }
 0x17f   :  { %528 = vst.msk [vmem:[%s960_s4 + $0x30] sm:$0xf] %vm975_vm13, %v580_v16  ;;  %vm976_vm14 = vmmov %vm963_vm1 }
 0x180   :  { %529 = vst.msk [vmem:[%s960_s4 + $0x34] sm:$0xf] %vm976_vm14, %v581_v19  ;;  %vm977_vm15 = vmmov %vm963_vm1 }
 0x181   :  { %530 = vst.msk [vmem:[%s960_s4 + $0x38] sm:$0xf] %vm977_vm15, %v582_v29  ;;  %vm978_vm0 = vmmov %vm963_vm1 }
 0x182   :  { %531 = vst.msk [vmem:[%s960_s4 + $0x3c] sm:$0xf] %vm978_vm0, %v583_v36 }

// kernel: discriminator_forward.7
= control target key start
LH: loop header
LB: loop body
LE: loop exit
PB: predicated region body
PF: predicated region fallthrough
CT: control target
= control target key end

     0   :  { %vm219_vm0 = vcmask 261120   ;;  %vm311_vm5 = vcmask 257024   ;;  %s527_s1 = inlined_call_operand.vmem [shape: bf16[256,32], index: 1, kind: input, shape index: {}]   ;;  %s528_s0 = inlined_call_operand.vmem [shape: bf16[32,256], index: 0, kind: input, shape index: {}]   ;;  %s529_s2 = inlined_call_operand.vmem [shape: f32[1,32], index: 2, kind: input, shape index: {}]   ;;  %s530_s3 = inlined_call_operand.vmem [shape: f32[1,32], index: 3, kind: input, shape index: {}]   ;;  %s531_s4 = inlined_call_operand.vmem [shape: bf16[32,32], index: 4, kind: output, shape index: {}]  }
   0x1   :  { %v392_v0 = vld [vmem:[%s527_s1 + $0x78] sm:$0xff]   ;;  %v394_v2 = vld [vmem:[%s527_s1 + $0x70] sm:$0xff]   ;;  %v396_v4 = vld [vmem:[%s527_s1 + $0x68] sm:$0xff]  }
   0x2   :  { %v393_v1 = vld [vmem:[%s527_s1 + $0x38] sm:$0xff]   ;;  %348 = vmatprep.subr.bf16.mxu0 %v392_v0  ;;  %376 = vmatprep.subr.bf16.mxu1 %v392_v0  ;;  %v395_v3 = vld [vmem:[%s527_s1 + $0x30] sm:$0xff]   ;;  %v397_v5 = vld [vmem:[%s527_s1 + $0x28] sm:$0xff]  }
   0x3   :  { %349 = vmatpush3.bf16.msra.mxu0 %v393_v1  ;;  %384 = vmatpush3.bf16.msra.mxu1 %v393_v1  ;;  %v398_v6 = vld [vmem:[%s527_s1 + $0x60] sm:$0xff]   ;;  %v400_v8 = vld [vmem:[%s527_s1 + $0x58] sm:$0xff]   ;;  %v402_v10 = vld [vmem:[%s527_s1 + $0x50] sm:$0xff]  }
   0x4   :  { %350 = vmatprep.subr.bf16.mxu0 %v394_v2  ;;  %377 = vmatprep.subr.bf16.mxu1 %v394_v2  ;;  %v399_v7 = vld [vmem:[%s527_s1 + $0x20] sm:$0xff]   ;;  %v401_v9 = vld [vmem:[%s527_s1 + $0x18] sm:$0xff]   ;;  %v403_v13 = vld [vmem:[%s527_s1 + $0x10] sm:$0xff]  }
   0x5   :  { %v410_v11 = vld [vmem:[%s528_s0 + $0x4] ss:$8 sps:$4 sm:$0xff]   ;;  %v413_v12 = vld [vmem:[%s528_s0 + $0x14] ss:$8 sps:$4 sm:$0xff]   ;;  %v408_v18 = vld [vmem:[%s528_s0] ss:$8 sps:$4 sm:$0xff]  }
   0x6   :  { %v404_v14 = vld [vmem:[%s527_s1 + $0x48] sm:$0xff]   ;;  %202 = vmatprep.mubr.bf16.mxu0 %v410_v11  ;;  %210 = vmatprep.mubr.bf16.mxu1 %v413_v12  ;;  %v406_v16 = vld [vmem:[%s527_s1 + $0x40] sm:$0xff]   ;;  %v411_v19 = vld [vmem:[%s528_s0 + $0x10] ss:$8 sps:$4 sm:$0xff]  }
   0x7   :  { %351 = vmatpush3.bf16.msra.mxu0 %v395_v3  ;;  %385 = vmatpush3.bf16.msra.mxu1 %v395_v3  ;;  %v405_v15 = vld [vmem:[%s527_s1 + $0x8] sm:$0xff]   ;;  %v407_v17 = vld [vmem:[%s527_s1] sm:$0xff]  }
   0x8   :  { %352 = vmatprep.subr.bf16.mxu0 %v396_v4  ;;  %378 = vmatprep.subr.bf16.mxu1 %v396_v4  ;;  %v260_v11 = vld [vmem:[%s530_s3] sm:$0x1] }
   0xb   :  { %353 = vmatpush3.bf16.msra.mxu0 %v397_v5  ;;  %386 = vmatpush3.bf16.msra.mxu1 %v397_v5  ;;  %v264_v5 = vlaneseq }
   0xc   :  { %354 = vmatprep.subr.bf16.mxu0 %v398_v6  ;;  %379 = vmatprep.subr.bf16.mxu1 %v398_v6 }
   0xd   :  { %v265_v6 = vshrl.u32 %v264_v5, 7 }
   0xf   :  { %355 = vmatpush3.bf16.msra.mxu0 %v399_v7  ;;  %387 = vmatpush3.bf16.msra.mxu1 %v399_v7  ;;  %v256_v7 = vld [vmem:[%s529_s2] sm:$0x1] }
  0x10   :  { %356 = vmatprep.subr.bf16.mxu0 %v400_v8  ;;  %380 = vmatprep.subr.bf16.mxu1 %v400_v8  ;;  %v266_v8 = vsub.s32 0, %v265_v6 }
  0x13   :  { %357 = vmatpush3.bf16.msra.mxu0 %v401_v9  ;;  %388 = vmatpush3.bf16.msra.mxu1 %v401_v9 }
  0x14   :  { %358 = vmatprep.subr.bf16.mxu0 %v402_v10  ;;  %381 = vmatprep.subr.bf16.mxu1 %v402_v10 }
  0x17   :  { %359 = vmatpush3.bf16.msra.mxu0 %v403_v13  ;;  %389 = vmatpush3.bf16.msra.mxu1 %v403_v13 }
  0x18   :  { %360 = vmatprep.subr.bf16.mxu0 %v404_v14  ;;  %382 = vmatprep.subr.bf16.mxu1 %v404_v14 }
  0x1b   :  { %361 = vmatpush3.bf16.msra.mxu0 %v405_v15  ;;  %390 = vmatpush3.bf16.msra.mxu1 %v405_v15 }
  0x1c   :  { %362 = vmatprep.subr.bf16.mxu0 %v406_v16  ;;  %383 = vmatprep.subr.bf16.mxu1 %v406_v16 }
  0x1f   :  { %363 = vmatpush3.bf16.msra.mxu0 %v407_v17  ;;  %391 = vmatpush3.bf16.msra.mxu1 %v407_v17 }
  0x22   :  { %203 = vmatmul.mubr.bf16.vlgmr.msra.gmra.mxu0 %v408_v18  ;;  %211 = vmatmul.mubr.bf16.vlgmr.msra.gmra.mxu1 %v411_v19 }
  0xe2   :  { %v364_v20 = vpop.f32.mrf.mxu0  ;;  %v370_v21 = vpop.f32.mrf.mxu1 }
  0xe4   :  { %v365_v22 = vpop.f32.mrf.mxu0  ;;  %v371_v23 = vpop.f32.mrf.mxu1 }
  0xe5   :  { %v366_v26 = vadd.f32 %v365_v22, %v364_v20  ;;  %v372_v29 = vadd.f32 %v371_v23, %v370_v21 }
  0xe6   :  { %v367_v24 = vpop.f32.mrf.mxu0  ;;  %v373_v25 = vpop.f32.mrf.mxu1 }
  0xe7   :  { %v220_v31 = vsel %vm219_vm0, %v366_v26, 0.0  ;;  %v223_v35 = vsel %vm219_vm0, %v372_v29, 0.0 }
  0xe8   :  { %v368_v27 = vpop.f32.mrf.mxu0  ;;  %v374_v28 = vpop.f32.mrf.mxu1 }
  0xe9   :  { %v369_v30 = vadd.f32 %v368_v27, %v367_v24  ;;  %v375_v33 = vadd.f32 %v374_v28, %v373_v25 }
  0xeb   :  { %v221_v32 = vsel %vm219_vm0, %v369_v30, 0.0  ;;  %v225_v37 = vsel %vm219_vm0, %v375_v33, 0.0 }
  0xec   :  { %v222_v34 = vadd.f32 %v221_v32, %v220_v31 }
  0xee   :  { %v224_v36 = vadd.f32 %v223_v35, %v222_v34 }
  0xf0   :  { %v226_v38 = vadd.f32 %v225_v37, %v224_v36 }
  0xf2   :  { %v227_v39 = vrot.slane %v226_v38, 4 }
  0xf4   :  { %v228_v40 = vadd.f32 %v227_v39, %v226_v38 }
  0xf6   :  { %v229_v41 = vrot.slane %v228_v40, 2 }
  0xf8   :  { %v230_v42 = vadd.f32 %v229_v41, %v228_v40 }
  0xfa   :  { %v231_v43 = vrot.slane %v230_v42, 1 }
  0xfc   :  { %v232_v44 = vadd.f32 %v231_v43, %v230_v42 }
  0xfe   :  { %v233_v45 = vmul.f32 0.03125, %v232_v44 }
 0x100   :  { %v234_v46 = vsub.f32 %v366_v26, %v233_v45  ;;  %v235_v47 = vsub.f32 %v369_v30, %v233_v45  ;;  %v236_v48 = vsub.f32 %v372_v29, %v233_v45  ;;  %v237_v49 = vsub.f32 %v375_v33, %v233_v45 }
 0x102   :  { %v238_v50 = vmul.f32 %v234_v46, %v234_v46  ;;  %v239_v51 = vmul.f32 %v235_v47, %v235_v47  ;;  %v240_v52 = vmul.f32 %v236_v48, %v236_v48  ;;  %v241_v53 = vmul.f32 %v237_v49, %v237_v49 }
 0x104   :  { %v242_v54 = vsel %vm219_vm0, %v238_v50, 0.0  ;;  %v243_v55 = vsel %vm219_vm0, %v239_v51, 0.0  ;;  %v245_v57 = vsel %vm219_vm0, %v240_v52, 0.0  ;;  %v247_v59 = vsel %vm219_vm0, %v241_v53, 0.0 }
 0x105   :  { %v244_v56 = vadd.f32 %v243_v55, %v242_v54 }
 0x107   :  { %v246_v58 = vadd.f32 %v245_v57, %v244_v56 }
 0x109   :  { %v248_v60 = vadd.f32 %v247_v59, %v246_v58 }
 0x10b   :  { %v249_v61 = vrot.slane %v248_v60, 4 }
 0x10d   :  { %v250_v62 = vadd.f32 %v249_v61, %v248_v60 }
 0x10f   :  { %v251_v63 = vrot.slane %v250_v62, 2 }
 0x111   :  { %v252_v0 = vadd.f32 %v251_v63, %v250_v62 }
 0x113   :  { %v253_v1 = vrot.slane %v252_v0, 1 }
 0x115   :  { %v254_v2 = vadd.f32 %v253_v1, %v252_v0 }
 0x117   :  { %v255_v3 = vmul.f32 0.03125, %v254_v2 }
 0x119   :  { %v257_v4 = vadd.f32 1e-05, %v255_v3 }
 0x11b   :  { %414 = vrsqrt.f32 %v257_v4 }
 0x128   :  { %v415_v9 = vpop.eup %414 }
 0x129   :  { %v259_v10 = vmul.f32 %v415_v9, %v256_v7 }
 0x12b   :  { %v261_v12 = vmul.f32 %v259_v10, %v233_v45  ;;  %v267_v13 = vrot.slane %v259_v10, %v266_v8 }
 0x12d   :  { %v262_v14 = vsub.f32 %v260_v11, %v261_v12  ;;  %v269_v15 = vmul.f32 %v366_v26, %v267_v13  ;;  %v270_v16 = vmul.f32 %v369_v30, %v267_v13  ;;  %v271_v17 = vmul.f32 %v372_v29, %v267_v13 }
 0x12e   :  { %v272_v18 = vmul.f32 %v375_v33, %v267_v13 }
 0x12f   :  { %v277_v19 = vrot.slane %v262_v14, %v266_v8 }
 0x131   :  { %v279_v20 = vadd.f32 %v277_v19, %v269_v15  ;;  %v280_v21 = vadd.f32 %v277_v19, %v270_v16  ;;  %v281_v22 = vadd.f32 %v277_v19, %v271_v17  ;;  %v282_v23 = vadd.f32 %v277_v19, %v272_v18 }
 0x133   :  { %vm283_vm1 = vcmp.ge.f32.partialorder %v279_v20, 0.0  ;;  %vm284_vm2 = vcmp.ge.f32.partialorder %v280_v21, 0.0  ;;  %vm285_vm3 = vcmp.ge.f32.partialorder %v281_v22, 0.0  ;;  %vm286_vm4 = vcmp.ge.f32.partialorder %v282_v23, 0.0 }
 0x134   :  { %v287_v24 = vmul.f32 0.2, %v279_v20  ;;  %v288_v25 = vmul.f32 0.2, %v280_v21  ;;  %v289_v27 = vmul.f32 0.2, %v281_v22 }
 0x135   :  { %v290_v28 = vmul.f32 0.2, %v282_v23 }
 0x136   :  { %v291_v31 = vsel %vm283_vm1, %v279_v20, %v287_v24  ;;  %v292_v32 = vsel %vm284_vm2, %v280_v21, %v288_v25  ;;  %v293_v34 = vsel %vm285_vm3, %v281_v22, %v289_v27 }
 0x137   :  { %v294_v26 = vsel %vm286_vm4, %v282_v23, %v290_v28  ;;  %v344_v29 = vpack.c.bf16 %v291_v31, %v291_v31  ;;  %v345_v30 = vpack.c.bf16 %v292_v32, %v292_v32  ;;  %v346_v33 = vpack.c.bf16 %v293_v34, %v293_v34 }
 0x138   :  { %v347_v35 = vpack.c.bf16 %v294_v26, %v294_v26 }
 0x139   :  { %312 = vst.msk [vmem:[%s531_s4] sm:$0xf] %vm311_vm5, %v344_v29  ;;  %313 = vst.msk [vmem:[%s531_s4 + $0x4] sm:$0xf] %vm311_vm5, %v345_v30 }
 0x13a   :  { %314 = vst.msk [vmem:[%s531_s4 + $0x8] sm:$0xf] %vm311_vm5, %v346_v33  ;;  %315 = vst.msk [vmem:[%s531_s4 + $0xc] sm:$0xf] %vm311_vm5, %v347_v35 }

</bundles_post_ra>
